<compile_context>
chip_gen: v5e
topology: v5e:2x2
jax: 0.10.0
libtpu: 0.0.40
codegen_flags: <defaults>
</compile_context>

<pallas_src>
import functools

import jax
import jax.numpy as jnp
from jax import lax
from jax.experimental import pallas as pl
from jax.experimental.pallas import tpu as pltpu

P_DROP = 0.1


def _lowbias32(h):
    """lowbias32 integer hash; int32 arithmetic wraps mod 2^32 (two's complement)."""
    h = h ^ lax.shift_right_logical(h, 16)
    h = h * jnp.int32(0x7FEB352D)
    h = h ^ lax.shift_right_logical(h, 15)
    h = h * jnp.int32(-2073319797)          # 0x846CA68B as int32
    h = h ^ lax.shift_right_logical(h, 16)
    return h


def _dropout_add_kernel(x_ref, r_ref, o_ref, *, p, seed_mix, hidden):
    rows, cols = x_ref.shape
    row0 = pl.program_id(0) * rows

    # Global element index -> counter-based PRNG (tiling-invariant).
    row_ids = lax.broadcasted_iota(jnp.int32, (rows, cols), 0) + row0
    col_ids = lax.broadcasted_iota(jnp.int32, (rows, cols), 1)
    idx = row_ids * jnp.int32(hidden) + col_ids

    h = _lowbias32(idx + jnp.int32(seed_mix))

    # Low 24 bits of the hash as a uniform integer in [0, 2^24).
    u24 = lax.shift_right_logical(h, 8)
    thresh = jnp.int32(int(round(p * (1 << 24))))
    keep = u24 >= thresh                     # P(keep) = 1 - p

    scale = jnp.float32(1.0 / (1.0 - p))
    x = x_ref[...]
    o_ref[...] = r_ref[...] + jnp.where(keep, x * scale, jnp.float32(0.0))


def dropout_add(x, residual, seed, *, p=P_DROP, block_rows=192):
    """x, residual: (B, S, H) float32.  Returns dropout(x, p) + residual."""
    B, S, H = x.shape
    assert B == 1, "glue handles only the squeezed batch=1 case"
    x2 = x.reshape(S, H)
    r2 = residual.reshape(S, H)

    block_rows = min(block_rows, S)
    grid = (pl.cdiv(S, block_rows),)

    # Mix the user seed into the hash counter (golden-ratio constant, mod 2^32,
    # re-expressed as signed int32).
    seed_mix = (int(seed) * 0x9E3779B9) & 0xFFFFFFFF
    if seed_mix >= (1 << 31):
        seed_mix -= 1 << 32

    kernel = functools.partial(
        _dropout_add_kernel, p=p, seed_mix=seed_mix, hidden=H)

    out = pl.pallas_call(
        kernel,
        out_shape=jax.ShapeDtypeStruct((S, H), x.dtype),
        grid=grid,
        in_specs=[
            pl.BlockSpec((block_rows, H), lambda i: (i, 0)),
            pl.BlockSpec((block_rows, H), lambda i: (i, 0)),
        ],
        out_specs=pl.BlockSpec((block_rows, H), lambda i: (i, 0)),
        compiler_params=pltpu.CompilerParams(
            # Counter-based PRNG is tiling-invariant -> row axis is truly
            # parallel; lets v7x split the mem-bound work across its 2 TCs.
            dimension_semantics=("parallel",)),
    )(x2, r2)

    return out.reshape(B, S, H)


if __name__ == "__main__":
    key = jax.random.PRNGKey(0)
    k1, k2 = jax.random.split(key)

    # Shapes from the module: (1, 384, 768)
    x439 = jax.random.normal(k1, (1, 384, 768), dtype=jnp.float32)
    x406 = jax.random.normal(k2, (1, 384, 768), dtype=jnp.float32)

    out = dropout_add(x439, x406, seed=0)
    out = jax.block_until_ready(out)

    # Sanity checks: shape/dtype, every element is either x/(1-p)+r (kept)
    # or r (dropped), and the drop fraction is close to p.
    assert out.shape == (1, 384, 768) and out.dtype == jnp.float32
    expected_kept = x439 / (1.0 - P_DROP) + x406
    is_kept = jnp.isclose(out, expected_kept, atol=1e-5)
    is_dropped = jnp.isclose(out, x406, atol=1e-5)
    assert bool(jnp.all(is_kept | is_dropped))
    frac_dropped = float(jnp.mean(jnp.where(is_kept, 0.0, 1.0)))
    assert 0.05 < frac_dropped < 0.15, f"drop fraction off: {frac_dropped}"

    print("KERNEL_OK")
</pallas_src>

<mosaic_0001>
module attributes {stable_mosaic.version = 11 : i64} {
  func.func @_dropout_add_kernel(%arg0: i32, %arg1: memref<192x768xf32, #tpu.memory_space<vmem>>, %arg2: memref<192x768xf32, #tpu.memory_space<vmem>>, %arg3: memref<192x768xf32, #tpu.memory_space<vmem>>) attributes {dimension_semantics = [#tpu.dimension_semantics<parallel>], iteration_bounds = array<i64: 2>, scalar_prefetch = 0 : i64, scratch_operands = 0 : i64, tpu.core_type = #tpu.core_type<tc>, window_params = [{transform_indices = @transform_0, window_bounds = array<i64: 192, 768>}, {transform_indices = @transform_1, window_bounds = array<i64: 192, 768>}, {transform_indices = @transform_2, window_bounds = array<i64: 192, 768>}]} {
    %c192_i32 = arith.constant 192 : i32
    %0 = arith.muli %arg0, %c192_i32 : i32
    %1 = tpu.iota {dimensions = array<i32: 0>} : vector<192x768xi32>
    %2 = vector.broadcast %0 : i32 to vector<192x768xi32>
    %3 = arith.addi %1, %2 : vector<192x768xi32>
    %4 = tpu.iota {dimensions = array<i32: 1>} : vector<192x768xi32>
    %c768_i32 = arith.constant 768 : i32
    %5 = vector.broadcast %c768_i32 : i32 to vector<192x768xi32>
    %6 = arith.muli %3, %5 : vector<192x768xi32>
    %7 = arith.addi %6, %4 : vector<192x768xi32>
    %c0_i32 = arith.constant 0 : i32
    %8 = vector.broadcast %c0_i32 : i32 to vector<192x768xi32>
    %9 = arith.addi %7, %8 : vector<192x768xi32>
    %c16_i32 = arith.constant 16 : i32
    %10 = vector.broadcast %c16_i32 : i32 to vector<192x768xi32>
    %11 = arith.shrui %9, %10 : vector<192x768xi32>
    %12 = arith.xori %9, %11 : vector<192x768xi32>
    %c2146121005_i32 = arith.constant 2146121005 : i32
    %13 = vector.broadcast %c2146121005_i32 : i32 to vector<192x768xi32>
    %14 = arith.muli %12, %13 : vector<192x768xi32>
    %c15_i32 = arith.constant 15 : i32
    %15 = vector.broadcast %c15_i32 : i32 to vector<192x768xi32>
    %16 = arith.shrui %14, %15 : vector<192x768xi32>
    %17 = arith.xori %14, %16 : vector<192x768xi32>
    %c-2073319797_i32 = arith.constant -2073319797 : i32
    %18 = vector.broadcast %c-2073319797_i32 : i32 to vector<192x768xi32>
    %19 = arith.muli %17, %18 : vector<192x768xi32>
    %c16_i32_0 = arith.constant 16 : i32
    %20 = vector.broadcast %c16_i32_0 : i32 to vector<192x768xi32>
    %21 = arith.shrui %19, %20 : vector<192x768xi32>
    %22 = arith.xori %19, %21 : vector<192x768xi32>
    %c8_i32 = arith.constant 8 : i32
    %23 = vector.broadcast %c8_i32 : i32 to vector<192x768xi32>
    %24 = arith.shrui %22, %23 : vector<192x768xi32>
    %c1677722_i32 = arith.constant 1677722 : i32
    %25 = vector.broadcast %c1677722_i32 : i32 to vector<192x768xi32>
    %26 = arith.cmpi sge, %24, %25 : vector<192x768xi32>
    %c0 = arith.constant 0 : index
    %c0_1 = arith.constant 0 : index
    %27 = vector.load %arg1[%c0, %c0_1] : memref<192x768xf32, #tpu.memory_space<vmem>>, vector<192x768xf32>
    %c0_2 = arith.constant 0 : index
    %c0_3 = arith.constant 0 : index
    %28 = vector.load %arg2[%c0_2, %c0_3] : memref<192x768xf32, #tpu.memory_space<vmem>>, vector<192x768xf32>
    %cst = arith.constant 1.11111116 : f32
    %29 = vector.broadcast %cst : f32 to vector<192x768xf32>
    %30 = arith.mulf %27, %29 : vector<192x768xf32>
    %cst_4 = arith.constant 0.000000e+00 : f32
    %31 = vector.broadcast %cst_4 : f32 to vector<192x768xf32>
    %32 = arith.select %26, %30, %31 : vector<192x768xi1>, vector<192x768xf32>
    %33 = arith.addf %28, %32 : vector<192x768xf32>
    %c0_5 = arith.constant 0 : index
    %c0_6 = arith.constant 0 : index
    %34 = vector.load %arg3[%c0_5, %c0_6] : memref<192x768xf32, #tpu.memory_space<vmem>>, vector<192x768xf32>
    tpu.vector_store %arg3[%c0_5, %c0_6], %33 {strides = array<i32>} : memref<192x768xf32, #tpu.memory_space<vmem>>, vector<192x768xf32>,
    return
  }
  func.func @transform_0(%arg0: i32) -> (i32, i32) {
    %c0_i32 = arith.constant 0 : i32
    %c0_i32_0 = arith.constant 0 : i32
    return %arg0, %c0_i32 : i32, i32
  }
  func.func @transform_1(%arg0: i32) -> (i32, i32) {
    %c0_i32 = arith.constant 0 : i32
    %c0_i32_0 = arith.constant 0 : i32
    return %arg0, %c0_i32 : i32, i32
  }
  func.func @transform_2(%arg0: i32) -> (i32, i32) {
    %c0_i32 = arith.constant 0 : i32
    %c0_i32_0 = arith.constant 0 : i32
    return %arg0, %c0_i32 : i32, i32
  }
}

</mosaic_0001>

<bundles_post_ra>
// kernel: tpu_custom_call.1
= control target key start
LH: loop header
LB: loop body
LE: loop exit
PB: predicated region body
PF: predicated region fallthrough
CT: control target
= control target key end

     0   :  { %7 = vsyncpa [#allocation3], 0  ;;  %s4394_s0 = inlined_call_operand.hbm [shape: f32[384,768], index: 0, kind: input, shape index: {}]   ;;  %s4395_s1 = inlined_call_operand.hbm [shape: f32[384,768], index: 1, kind: input, shape index: {}]   ;;  %s4396_s2 = inlined_call_operand.hbm [shape: f32[384,768], index: 2, kind: output, shape index: {}]  }
   0x1   :  { %9 = vsyncpa [#allocation3 + $0x1], 0 }
   0x2   :  { %10 = vsyncpa [#allocation6], 0 }
   0x3   :  { %12 = vsyncpa [#allocation6 + $0x1], 0 }
   0x4   :  { %13 = vsyncpa [#allocation4], 0 }
   0x5   :  { %15 = vsyncpa [#allocation4 + $0x1], 0  ;;  %s3078_s9 = smov 0   ;;  %s3080_s10 = smov 0  }
   0x6   :  { %s3082_s11 = smov 0   ;;  %s3084_s12 = smov 0  }
   0x7 LB: > { %s3099_s13 = sadd.s32 4294967295, %s3057_s12   ;;  %s2854_s14 = sadd.s32 4294967294, %s3057_s12   ;;  %s3057_s12 = sphi %s3084_s12, %s4405_s12   ;;  %s3053_s11 = sphi %s3082_s11, %s4404_s11   ;;  %s3049_s10 = sphi %s3080_s10, %s4403_s10   ;;  %s3045_s9 = sphi %s3078_s9, %s4402_s9  }
   0x8   : > { %s3103_s15 = sadd.s32 1, %s3057_s12   ;;  %s28_s16 = sadd.s32 1, %s3053_s11 }
   0x9   : > { %s25_s17 = ssub.s32 %s3057_s12, %s3103_s15  ;;  %p35_p0 = scmp.ne.s32.totalorder %s3053_s11, %s3049_s10 }
   0xa   : > { %p26_p1 = scmp.eq.s32.totalorder %s25_s17, 0  ;;  %p36_p2 = scmp.eq.s32.totalorder %s3057_s12, 0 }
   0xb   : > { %p41_p3 = scmp.ne.s32.totalorder %s3049_s10, %s3045_s9  ;;  %p42_p4 = scmp.eq.s32.totalorder %s3099_s13, 0 }
   0xc   : > { %s3115_s18 = scalar_select %p26_p1, %s3053_s11, %s28_s16  }
   0xd   : > { %p37_p5 = por %p36_p2, %p35_p0  ;;  %p3117_p6 = por %p42_p4, %p41_p3 }
   0xe   : > { %p91_p7 = scmp.eq.s32.totalorder %s3099_s13, 1  ;;  %p97_p8 = scmp.eq.s32.totalorder %s2854_s14, 1 }
   0xf   : > { %p2856_p9 = scmp.ge.s32.totalorder %s3057_s12, 2  ;;  %p2886_p10 = scmp.lt.s32.totalorder %s3057_s12, 2 }
  0x10   : > { %p3124_p11 = por %p91_p7, %p35_p0  ;;  %p3128_p12 = por %p97_p8, %p41_p3 }
  0x11   : > { %s3133_s22 = sand.u32 1, %s3053_s11   ;;  %s2887_s24 = smul.u32 1152, %s3057_s12 }
  0x12   : > { %s2863_s23 = smul.u32 1152, %s3133_s22  ;;  %p3137_p13 = pnand %p2886_p10, %p37_p5 }
  0x13   : > { %s127_s28 = scalar_lea.hbm %s4394_s0, %s2887_s24  ;;  %p2859_p0 = scmp.ge.s32.totalorder %s3057_s12, 1 }
  0x14   : > { %s121_s29 = scalar_lea.vmem [#allocation2], %s2863_s23  ;;  %s128_s3 = sshll.u32 %s127_s28, 4  ;;  %s129_s3 = int_to_ptr.hbm [resolvable:$true] %s128_s3 }
  0x15   : > { %s130_s30 = sshll.u32 %s121_s29, 4  ;;  %s118_s4 = scalar_lea.sflag [#allocation3], %s3133_s22  ;;  %s131_s30 = int_to_ptr.vmem [resolvable:$true] %s130_s30 }
  0x16   : > { %s2927_s5 = sshra.s32 %s129_s3, 4  ;;  %p2931_p2 = pneg %p3137_p13  ;;  %s2928_s5 = int_to_ptr.hbm [resolvable:$true] %s2927_s5 }
  0x17   : > { %s2929_s6 = scalar_lea.hbm %s2928_s5, 1152  ;;  %s2934_s14 = scalar_lea.hbm %s4394_s0, 2304 }
  0x18   : > { %p2930_p1 = scmp.ne.s32.totalorder %s2928_s5, %s2929_s6  ;;  %p2935_p5 = scmp.lt.s32.totalorder %s2928_s5, %s4394_s0 }
  0x19   : > { %p2936_p7 = scmp.lt.s32.totalorder %s2934_s14, %s2929_s6 }
  0x1a   : > { %p2932_p3 = pnand %p2931_p2, %p2930_p1 }
  0x1b   : > { %p2937_p8 = por %p2936_p7, %p2935_p5 }
  0x1c   : > { %p2933_p4 = pneg %p2932_p3 }
  0x1e   : > { %p2938_p10 = pnand %p2937_p8, %p2933_p4 }
  0x20   : > { %2941 = shalt.err (!%p2938_p10)
}
  0x21   : > { %s3059_s26 = smov 768   ;;  %s3060_s27 = smov 48  }
  0x22   : > { %2878 = dma.hbm_to_vmem [thread:$0]  (!%p3137_p13), %s129_s3, 18432, %s131_s30, %s118_s4, %s3059_s26, %s3059_s26, %s3060_s27  }
  0x23   : > { %p161_p1 = scmp.lt.s32.totalorder %s3057_s12, 3  ;;  %s150_s5 = scalar_lea.hbm %s4395_s1, %s2887_s24 }
  0x24   : > { %s151_s7 = sshll.u32 %s150_s5, 4  ;;  %s144_s8 = scalar_lea.vmem [#allocation5], %s2863_s23  ;;  %s152_s7 = int_to_ptr.hbm [resolvable:$true] %s151_s7 }
  0x25   : > { %p3171_p3 = pnand %p2859_p0, %p161_p1  ;;  %s153_s14 = sshll.u32 %s144_s8, 4  ;;  %s154_s14 = int_to_ptr.vmem [resolvable:$true] %s153_s14 }
  0x26   : > { %s141_s16 = scalar_lea.sflag [#allocation6], %s3133_s22  ;;  %s2957_s17 = sshra.s32 %s152_s7, 4  ;;  %s2958_s17 = int_to_ptr.hbm [resolvable:$true] %s2957_s17 }
  0x27   : > { %s2959_s30 = scalar_lea.hbm %s2958_s17, 1152  ;;  %s2964_s4 = scalar_lea.hbm %s4395_s1, 2304 }
  0x28   : > { %p2960_p4 = scmp.ne.s32.totalorder %s2958_s17, %s2959_s30  ;;  %p2965_p0 = scmp.lt.s32.totalorder %s2958_s17, %s4395_s1 }
  0x29   : > { %p2966_p8 = scmp.lt.s32.totalorder %s2964_s4, %s2959_s30 }
  0x2a   : > { %p2962_p5 = pnand %p2960_p4, %p2931_p2 }
  0x2b   : > { %p2967_p10 = por %p2966_p8, %p2965_p0 }
  0x2c   : > { %p2963_p7 = pneg %p2962_p5 }
  0x2e   : > { %p2968_p1 = pnand %p2967_p10, %p2963_p7 }
  0x30   : > { %2971 = shalt.err (!%p2968_p1)
}
  0x31   : > { %2881 = dma.hbm_to_vmem [thread:$0]  (!%p3137_p13), %s152_s7, 18432, %s154_s14, %s141_s16, %s3059_s26, %s3059_s26, %s3060_s27  }
  0x32   : > { %165 = sbr.rel (%p3171_p3) target bundleno = 598 (0x256), region = 28  ;;  %s3192_s22 = sand.u32 (!%p3171_p3), 1, %s3049_s10  }
  0x33   : > { %s3195_s23 = smul.u32 (!%p3171_p3), 1152, %s3192_s22  ;;  %s168_s5 = scalar_lea.sflag (!%p3171_p3), [#allocation3], %s3192_s22 }
  0x35   : > { %s3199_s8 = scalar_lea.vmem (!%p3171_p3), [#allocation2], %s3195_s23 }
  0x37   : > { %3032 = dma.done.wait (%p3117_p6), %s168_s5, 18432  }
  0x38   : > { %3034 = vsyncadd (%p3117_p6), %s168_s5, 4294948864  ;;  %s178_s25 = scalar_lea.sflag [#allocation6], %s3192_s22  ;;  %s3207_s26 = scalar_lea.vmem [#allocation5], %s3195_s23 }
  0x39   : > { %3036 = dma.done.wait (%p3117_p6), %s178_s25, 18432  }
  0x3a   : > { %3038 = vsyncadd (%p3117_p6), %s178_s25, 4294948864  ;;  %s211_s27 = smul.u32 192, %s3099_s13  ;;  %v212_v0 = vlaneseq  ;;  %v1877_v13 = vld [vmem:[%s3199_s8] sm:$0xff]  ;;  %v1878_v14 = vld [vmem:[%s3199_s8 + $0x8] sm:$0xff]  ;;  %s3292_s19 = scalar_lea.vmem [#allocation7], %s3195_s23 }
  0x3b   : > { %v3246_v18 = vmul.f32 1.1111112, %v1877_v13  ;;  %v3249_v20 = vmul.f32 1.1111112, %v1878_v14  ;;  %v1879_v21 = vld [vmem:[%s3199_s8 + $0x10] sm:$0xff]  ;;  %v1880_v25 = vld [vmem:[%s3199_s8 + $0x18] sm:$0xff] }
  0x3c   : > { %v3214_v1 = vshrl.u32 %v212_v0, 7  ;;  %v3216_v2 = vstv %s211_s27  ;;  %v3218_v3 = vand.u32 127, %v212_v0  ;;  %v3253_v23 = vmul.f32 1.1111112, %v1879_v21  ;;  %v1881_v30 = vld [vmem:[%s3199_s8 + $0x20] sm:$0xff]  ;;  %v1882_v36 = vld [vmem:[%s3199_s8 + $0x28] sm:$0xff] }
  0x3d   : > { %v3258_v29 = vmul.f32 1.1111112, %v1880_v25  ;;  %v3262_v35 = vmul.f32 1.1111112, %v1881_v30  ;;  %v3265_v40 = vmul.f32 1.1111112, %v1882_v36 }
  0x3e   : > { %v238_v4 = vadd.s32 %v3216_v2, %v3214_v1  ;;  %v3223_v5 = vadd.s32 128, %v3218_v3  ;;  %v3226_v6 = vadd.s32 256, %v3218_v3  ;;  %v3229_v7 = vadd.s32 384, %v3218_v3  ;;  %v1883_v41 = vld [vmem:[%s3199_s8 + $0x30] sm:$0xff]  ;;  %s2889_s6 = smul.u32 1152, %s3099_s13  ;;  %s2755_s16 = sshll.u32 %s3292_s19, 4  ;;  %s2756_s16 = int_to_ptr.vmem [resolvable:$true] %s2755_s16 }
  0x3f   : > { %v3232_v8 = vadd.s32 512, %v3218_v3  ;;  %v214_v9 = vadd.s32 8, %v3214_v1  ;;  %v215_v10 = vadd.s32 16, %v3214_v1  ;;  %v3237_v12 = vadd.s32 640, %v3218_v3  ;;  %s2742_s30 = scalar_lea.sflag [#allocation4], %s3192_s22  ;;  %s3007_s29 = scalar_lea.hbm %s4396_s2, 2304 }
  0x40   : > { %v269_v11 = vmul.u32 768, %v238_v4  ;;  %v3270_v49 = vmul.f32 1.1111112, %v1883_v41  ;;  %s2754_s14 = scalar_lea.hbm %s4396_s2, %s2889_s6 }
  0x41   : > { %v239_v15 = vadd.s32 %v3216_v2, %v214_v9  ;;  %v3243_v16 = vadd.s32 %v3216_v2, %v215_v10  ;;  %s2757_s17 = sshll.u32 %s2754_s14, 4  ;;  %s2758_s17 = int_to_ptr.hbm [resolvable:$true] %s2757_s17 }
  0x42   : > { %v293_v17 = vadd.s32 %v269_v11, %v3218_v3  ;;  %v294_v19 = vadd.s32 %v269_v11, %v3223_v5  ;;  %v295_v22 = vadd.s32 %v269_v11, %v3226_v6  ;;  %v296_v24 = vadd.s32 %v269_v11, %v3229_v7  ;;  %s3001_s24 = sshra.s32 %s2758_s17, 4  ;;  %s3002_s24 = int_to_ptr.hbm [resolvable:$true] %s3001_s24 }
  0x43   : > { %v297_v26 = vadd.s32 %v269_v11, %v3232_v8  ;;  %v298_v31 = vadd.s32 %v269_v11, %v3237_v12  ;;  %v3268_v45 = vmul.u32 768, %v239_v15  ;;  %s3003_s3 = scalar_lea.hbm %s3002_s24, 1152  ;;  %p3008_p3 = scmp.lt.s32.totalorder %s3002_s24, %s4396_s2 }
  0x44   : > { %v437_v27 = vshrl.u32 %v293_v17, 16  ;;  %v438_v28 = vshrl.u32 %v294_v19, 16  ;;  %v439_v32 = vshrl.u32 %v295_v22, 16  ;;  %v440_v33 = vshrl.u32 %v296_v24, 16  ;;  %p3004_p6 = scmp.ne.s32.totalorder %s3002_s24, %s3003_s3  ;;  %p3009_p4 = scmp.lt.s32.totalorder %s3007_s29, %s3003_s3 }
  0x45   : > { %v441_v34 = vshrl.u32 %v297_v26, 16  ;;  %v442_v39 = vshrl.u32 %v298_v31, 16  ;;  %v299_v53 = vadd.s32 %v3268_v45, %v3218_v3  ;;  %v300_v57 = vadd.s32 %v3268_v45, %v3223_v5 }
  0x46   : > { %v581_v37 = vxor.u32 %v437_v27, %v293_v17  ;;  %v582_v38 = vxor.u32 %v438_v28, %v294_v19  ;;  %v583_v42 = vxor.u32 %v439_v32, %v295_v22  ;;  %v584_v43 = vxor.u32 %v440_v33, %v296_v24  ;;  %p3005_p13 = pnand %p3004_p6, %p3124_p11  ;;  %p3010_p5 = por %p3009_p4, %p3008_p3 }
  0x47   : > { %v585_v44 = vxor.u32 %v441_v34, %v297_v26  ;;  %v586_v48 = vxor.u32 %v442_v39, %v298_v31  ;;  %v443_v61 = vshrl.u32 %v299_v53, 16  ;;  %v444_v4 = vshrl.u32 %v300_v57, 16 }
  0x48   : > { %v725_v46 = vmul.u32 2146121005, %v581_v37  ;;  %v726_v47 = vmul.u32 2146121005, %v582_v38  ;;  %v727_v50 = vmul.u32 2146121005, %v583_v42  ;;  %v301_v25 = vadd.s32 %v3268_v45, %v3226_v6  ;;  %p3006_p2 = pneg %p3005_p13 }
  0x49   : > { %v728_v51 = vmul.u32 2146121005, %v584_v43  ;;  %v729_v52 = vmul.u32 2146121005, %v585_v44  ;;  %v730_v56 = vmul.u32 2146121005, %v586_v48  ;;  %v587_v13 = vxor.u32 %v443_v61, %v299_v53 }
  0x4a   : > { %v869_v54 = vshrl.u32 %v725_v46, 15  ;;  %v870_v55 = vshrl.u32 %v726_v47, 15  ;;  %v871_v58 = vshrl.u32 %v727_v50, 15  ;;  %v588_v19 = vxor.u32 %v444_v4, %v300_v57  ;;  %p3011_p7 = pnand %p3010_p5, %p3006_p2 }
  0x4b   : > { %v872_v59 = vshrl.u32 %v728_v51, 15  ;;  %v873_v60 = vshrl.u32 %v729_v52, 15  ;;  %v874_v0 = vshrl.u32 %v730_v56, 15  ;;  %v731_v30 = vmul.u32 2146121005, %v587_v13  ;;  %v1884_v13 = vld [vmem:[%s3199_s8 + $0x38] sm:$0xff] }
  0x4c   : > { %v1013_v62 = vxor.u32 %v869_v54, %v725_v46  ;;  %v1014_v63 = vxor.u32 %v870_v55, %v726_v47  ;;  %v1015_v9 = vxor.u32 %v871_v58, %v727_v50  ;;  %v732_v34 = vmul.u32 2146121005, %v588_v19  ;;  %v2021_v47 = vld [vmem:[%s3207_s26] sm:$0xff]  ;;  %v2023_v54 = vld [vmem:[%s3207_s26 + $0x10] sm:$0xff] }
  0x4d   : > { %v1016_v10 = vxor.u32 %v872_v59, %v728_v51  ;;  %v1017_v11 = vxor.u32 %v873_v60, %v729_v52  ;;  %v1018_v17 = vxor.u32 %v874_v0, %v730_v56  ;;  %v875_v39 = vshrl.u32 %v731_v30, 15  ;;  %v2022_v52 = vld [vmem:[%s3207_s26 + $0x8] sm:$0xff]  ;;  %v2024_v56 = vld [vmem:[%s3207_s26 + $0x18] sm:$0xff] }
  0x4e   : > { %v1157_v14 = vmul.u32 2221647499, %v1013_v62  ;;  %v1158_v15 = vmul.u32 2221647499, %v1014_v63  ;;  %v1159_v21 = vmul.u32 2221647499, %v1015_v9 }
  0x4f   : > { %v1160_v22 = vmul.u32 2221647499, %v1016_v10  ;;  %v1161_v24 = vmul.u32 2221647499, %v1017_v11  ;;  %v1162_v28 = vmul.u32 2221647499, %v1018_v17  ;;  %v1019_v51 = vxor.u32 %v875_v39, %v731_v30 }
  0x50   : > { %v1301_v26 = vshrl.u32 %v1157_v14, 16  ;;  %v1302_v27 = vshrl.u32 %v1158_v15, 16  ;;  %v1303_v31 = vshrl.u32 %v1159_v21, 16  ;;  %v876_v44 = vshrl.u32 %v732_v34, 15  ;;  %v2025_v10 = vld [vmem:[%s3207_s26 + $0x20] sm:$0xff]  ;;  %v2026_v11 = vld [vmem:[%s3207_s26 + $0x28] sm:$0xff] }
  0x51   : > { %v1304_v32 = vshrl.u32 %v1160_v22, 16  ;;  %v1305_v33 = vshrl.u32 %v1161_v24, 16  ;;  %v1306_v38 = vshrl.u32 %v1162_v28, 16  ;;  %v445_v60 = vshrl.u32 %v301_v25, 16  ;;  %v1886_v17 = vld [vmem:[%s3199_s8 + $0x48] sm:$0xff] }
  0x52   : > { %v1445_v36 = vxor.u32 %v1301_v26, %v1157_v14  ;;  %v1446_v37 = vxor.u32 %v1302_v27, %v1158_v15  ;;  %v1447_v41 = vxor.u32 %v1303_v31, %v1159_v21  ;;  %v1020_v58 = vxor.u32 %v876_v44, %v732_v34  ;;  %v1887_v27 = vld [vmem:[%s3199_s8 + $0x50] sm:$0xff] }
  0x53   : > { %v1448_v42 = vxor.u32 %v1304_v32, %v1160_v22  ;;  %v1449_v43 = vxor.u32 %v1305_v33, %v1161_v24  ;;  %v1450_v50 = vxor.u32 %v1306_v38, %v1162_v28  ;;  %v2172_v24 = vmul.f32 1.1111112, %v1884_v13 }
  0x54   : > { %v1589_v46 = vshrl.u32 %v1445_v36, 8  ;;  %v1590_v48 = vshrl.u32 %v1446_v37, 8  ;;  %v1591_v53 = vshrl.u32 %v1447_v41, 8  ;;  %v1164_v19 = vmul.u32 2221647499, %v1020_v58  ;;  %v1889_v41 = vld [vmem:[%s3199_s8 + $0x60] sm:$0xff] }
  0x55   : > { %v1592_v55 = vshrl.u32 %v1448_v42, 8  ;;  %v1593_v57 = vshrl.u32 %v1449_v43, 8  ;;  %v1594_v59 = vshrl.u32 %v1450_v50, 8  ;;  %v589_v26 = vxor.u32 %v445_v60, %v301_v25 }
  0x56   : > { %vm1733_vm0 = vcmp.ge.s32.totalorder %v1589_v46, 1677722  ;;  %vm1734_vm1 = vcmp.ge.s32.totalorder %v1590_v48, 1677722  ;;  %vm1735_vm2 = vcmp.ge.s32.totalorder %v1591_v53, 1677722  ;;  %v303_v34 = vadd.s32 %v3268_v45, %v3232_v8 }
  0x57   : > { %v2309_v61 = vsel %vm1733_vm0, %v3246_v18, 0.0  ;;  %v2310_v62 = vsel %vm1734_vm1, %v3249_v20, 0.0  ;;  %vm1736_vm3 = vcmp.ge.s32.totalorder %v1592_v55, 1677722  ;;  %v2311_v4 = vsel %vm1735_vm2, %v3253_v23, 0.0  ;;  %v1885_v18 = vld [vmem:[%s3199_s8 + $0x40] sm:$0xff] }
  0x58   : > { %v2453_v63 = vadd.f32 %v2309_v61, %v2021_v47  ;;  %v2454_v0 = vadd.f32 %v2310_v62, %v2022_v52  ;;  %v2312_v9 = vsel %vm1736_vm3, %v3258_v29, 0.0  ;;  %v2455_v14 = vadd.f32 %v2311_v4, %v2023_v54  ;;  %v2028_v52 = vld [vmem:[%s3207_s26 + $0x38] sm:$0xff] }
  0x59   : > { %v2456_v15 = vadd.f32 %v2312_v9, %v2024_v56  ;;  %vm1737_vm4 = vcmp.ge.s32.totalorder %v1593_v57, 1677722  ;;  %vm1738_vm5 = vcmp.ge.s32.totalorder %v1594_v59, 1677722  ;;  %v1163_v29 = vmul.u32 2221647499, %v1019_v51 }
  0x5a   : > { %2597 = vst [vmem:[%s3292_s19] sm:$0xff] %v2453_v63  ;;  %v2313_v20 = vsel %vm1737_vm4, %v3262_v35, 0.0  ;;  %v2314_v23 = vsel %vm1738_vm5, %v3265_v40, 0.0  ;;  %v1308_v30 = vshrl.u32 %v1164_v19, 16  ;;  %v3300_v31 = vmul.f32 1.1111112, %v1885_v18  ;;  %v1888_v40 = vld [vmem:[%s3199_s8 + $0x58] sm:$0xff] }
  0x5b   : > { %2598 = vst [vmem:[%s3292_s19 + $0x8] sm:$0xff] %v2454_v0  ;;  %v2457_v21 = vadd.f32 %v2313_v20, %v2025_v10  ;;  %v2458_v22 = vadd.f32 %v2314_v23, %v2026_v11  ;;  %v1307_v28 = vshrl.u32 %v1163_v29, 16  ;;  %v302_v35 = vadd.s32 %v3268_v45, %v3229_v7  ;;  %v2027_v51 = vld [vmem:[%s3207_s26 + $0x30] sm:$0xff]  ;;  %v1890_v57 = vld [vmem:[%s3199_s8 + $0x68] sm:$0xff] }
  0x5c   : > { %2599 = vst [vmem:[%s3292_s19 + $0x10] sm:$0xff] %v2455_v14  ;;  %v733_v32 = vmul.u32 2146121005, %v589_v26  ;;  %v3306_v33 = vmul.f32 1.1111112, %v1886_v17  ;;  %v304_v25 = vadd.s32 %v3268_v45, %v3237_v12  ;;  %v1452_v37 = vxor.u32 %v1308_v30, %v1164_v19 }
  0x5d   : > { %2600 = vst [vmem:[%s3292_s19 + $0x18] sm:$0xff] %v2456_v15  ;;  %v1451_v36 = vxor.u32 %v1307_v28, %v1163_v29  ;;  %v446_v38 = vshrl.u32 %v302_v35, 16  ;;  %v3313_v39 = vmul.f32 1.1111112, %v1887_v27  ;;  %v447_v43 = vshrl.u32 %v303_v34, 16  ;;  %v1891_v15 = vld [vmem:[%s3199_s8 + $0x70] sm:$0xff] }
  0x5e   : > { %2601 = vst [vmem:[%s3292_s19 + $0x20] sm:$0xff] %v2457_v21  ;;  %v877_v42 = vshrl.u32 %v733_v32, 15  ;;  %v448_v44 = vshrl.u32 %v304_v25, 16  ;;  %v3317_v46 = vmul.f32 1.1111112, %v1888_v40  ;;  %v1596_v48 = vshrl.u32 %v1452_v37, 8 }
  0x5f   : > { %2602 = vst [vmem:[%s3292_s19 + $0x28] sm:$0xff] %v2458_v22  ;;  %v1595_v47 = vshrl.u32 %v1451_v36, 8  ;;  %v590_v50 = vxor.u32 %v446_v38, %v302_v35  ;;  %v3320_v45 = vmul.u32 768, %v3243_v16  ;;  %v591_v54 = vxor.u32 %v447_v43, %v303_v34 }
  0x60   : > { %v1021_v53 = vxor.u32 %v877_v42, %v733_v32  ;;  %v592_v55 = vxor.u32 %v448_v44, %v304_v25  ;;  %v3324_v56 = vmul.f32 1.1111112, %v1889_v41  ;;  %vm1740_vm7 = vcmp.ge.s32.totalorder %v1596_v48, 1677722  ;;  %v2029_v32 = vld [vmem:[%s3207_s26 + $0x40] sm:$0xff] }
  0x61   : > { %vm1739_vm6 = vcmp.ge.s32.totalorder %v1595_v47, 1677722  ;;  %v734_v58 = vmul.u32 2146121005, %v590_v50  ;;  %v305_v59 = vadd.s32 %v3320_v45, %v3218_v3  ;;  %v2316_v16 = vsel %vm1740_vm7, %v2172_v24, 0.0  ;;  %v1892_v50 = vld [vmem:[%s3199_s8 + $0x78] sm:$0xff] }
  0x62   : > { %v2315_v60 = vsel %vm1739_vm6, %v3270_v49, 0.0  ;;  %v1165_v61 = vmul.u32 2221647499, %v1021_v53  ;;  %v735_v62 = vmul.u32 2146121005, %v591_v54  ;;  %v2460_v0 = vadd.f32 %v2316_v16, %v2028_v52 }
  0x63   : > { %v2459_v63 = vadd.f32 %v2315_v60, %v2027_v51  ;;  %v878_v4 = vshrl.u32 %v734_v58, 15  ;;  %v736_v9 = vmul.u32 2146121005, %v592_v55  ;;  %v449_v13 = vshrl.u32 %v305_v59, 16 }
  0x64   : > { %v1309_v10 = vshrl.u32 %v1165_v61, 16  ;;  %v879_v11 = vshrl.u32 %v735_v62, 15  ;;  %v306_v14 = vadd.s32 %v3320_v45, %v3223_v5  ;;  %v3334_v49 = vmul.f32 1.1111112, %v1890_v57  ;;  %2604 = vst [vmem:[%s3292_s19 + $0x38] sm:$0xff] %v2460_v0  ;;  %v2030_v57 = vld [vmem:[%s3207_s26 + $0x48] sm:$0xff] }
  0x65   : > { %2603 = vst [vmem:[%s3292_s19 + $0x30] sm:$0xff] %v2459_v63  ;;  %v1022_v18 = vxor.u32 %v878_v4, %v734_v58  ;;  %v880_v17 = vshrl.u32 %v736_v9, 15  ;;  %v307_v20 = vadd.s32 %v3320_v45, %v3226_v6  ;;  %v593_v19 = vxor.u32 %v449_v13, %v305_v59  ;;  %v2031_v63 = vld [vmem:[%s3207_s26 + $0x50] sm:$0xff]  ;;  %v2032_v4 = vld [vmem:[%s3207_s26 + $0x58] sm:$0xff] }
  0x66   : > { %v1453_v23 = vxor.u32 %v1309_v10, %v1165_v61  ;;  %v1023_v29 = vxor.u32 %v879_v11, %v735_v62  ;;  %v450_v21 = vshrl.u32 %v306_v14, 16  ;;  %v3339_v27 = vmul.f32 1.1111112, %v1891_v15 }
  0x67   : > { %v1166_v22 = vmul.u32 2221647499, %v1022_v18  ;;  %v1024_v24 = vxor.u32 %v880_v17, %v736_v9  ;;  %v451_v26 = vshrl.u32 %v307_v20, 16  ;;  %v737_v35 = vmul.u32 2146121005, %v593_v19 }
  0x68   : > { %v1597_v28 = vshrl.u32 %v1453_v23, 8  ;;  %v1167_v30 = vmul.u32 2221647499, %v1023_v29  ;;  %v594_v40 = vxor.u32 %v450_v21, %v306_v14  ;;  %v308_v37 = vadd.s32 %v3320_v45, %v3229_v7 }
  0x69   : > { %v1310_v34 = vshrl.u32 %v1166_v22, 16  ;;  %v1168_v25 = vmul.u32 2221647499, %v1024_v24  ;;  %v595_v36 = vxor.u32 %v451_v26, %v307_v20  ;;  %v881_v41 = vshrl.u32 %v737_v35, 15  ;;  %v1893_v20 = vld [vmem:[%s3199_s8 + $0x80] sm:$0xff] }
  0x6a   : > { %vm1741_vm8 = vcmp.ge.s32.totalorder %v1597_v28, 1677722  ;;  %v1311_v38 = vshrl.u32 %v1167_v30, 16  ;;  %v738_v42 = vmul.u32 2146121005, %v594_v40  ;;  %v452_v60 = vshrl.u32 %v308_v37, 16 }
  0x6b   : > { %v2317_v43 = vsel %vm1741_vm8, %v3300_v31, 0.0  ;;  %v1454_v44 = vxor.u32 %v1310_v34, %v1166_v22  ;;  %v1312_v47 = vshrl.u32 %v1168_v25, 16  ;;  %v739_v48 = vmul.u32 2146121005, %v595_v36  ;;  %v1894_v22 = vld [vmem:[%s3199_s8 + $0x88] sm:$0xff] }
  0x6c   : > { %v2461_v51 = vadd.f32 %v2317_v43, %v2029_v32  ;;  %v1455_v52 = vxor.u32 %v1311_v38, %v1167_v30  ;;  %v1025_v53 = vxor.u32 %v881_v41, %v737_v35  ;;  %v882_v54 = vshrl.u32 %v738_v42, 15  ;;  %v2034_v43 = vld [vmem:[%s3207_s26 + $0x68] sm:$0xff] }
  0x6d   : > { %v1598_v55 = vshrl.u32 %v1454_v44, 8  ;;  %v1456_v58 = vxor.u32 %v1312_v47, %v1168_v25  ;;  %v883_v59 = vshrl.u32 %v739_v48, 15  ;;  %v3348_v31 = vmul.f32 1.1111112, %v1892_v50  ;;  %v2035_v50 = vld [vmem:[%s3207_s26 + $0x70] sm:$0xff] }
  0x6e   : > { %2605 = vst [vmem:[%s3292_s19 + $0x40] sm:$0xff] %v2461_v51  ;;  %v1599_v16 = vshrl.u32 %v1455_v52, 8  ;;  %v1169_v61 = vmul.u32 2221647499, %v1025_v53  ;;  %v1026_v62 = vxor.u32 %v882_v54, %v738_v42  ;;  %v596_v10 = vxor.u32 %v452_v60, %v308_v37  ;;  %v1895_v53 = vld [vmem:[%s3199_s8 + $0x90] sm:$0xff]  ;;  %v1896_v54 = vld [vmem:[%s3199_s8 + $0x98] sm:$0xff] }
  0x6f   : > { %vm1742_vm9 = vcmp.ge.s32.totalorder %v1598_v55, 1677722  ;;  %v1600_v0 = vshrl.u32 %v1456_v58, 8  ;;  %v1027_v9 = vxor.u32 %v883_v59, %v739_v48  ;;  %v309_v28 = vadd.s32 %v3320_v45, %v3232_v8 }
  0x70   : > { %v2318_v11 = vsel %vm1742_vm9, %v3306_v33, 0.0  ;;  %vm1743_vm10 = vcmp.ge.s32.totalorder %v1599_v16, 1677722  ;;  %v1313_v13 = vshrl.u32 %v1169_v61, 16  ;;  %v1170_v14 = vmul.u32 2221647499, %v1026_v62 }
  0x71   : > { %v2462_v15 = vadd.f32 %v2318_v11, %v2030_v57  ;;  %v2319_v18 = vsel %vm1743_vm10, %v3313_v39, 0.0  ;;  %vm1744_vm11 = vcmp.ge.s32.totalorder %v1600_v0, 1677722  ;;  %v1171_v17 = vmul.u32 2221647499, %v1027_v9 }
  0x72   : > { %v2463_v23 = vadd.f32 %v2319_v18, %v2031_v63  ;;  %v2320_v29 = vsel %vm1744_vm11, %v3317_v46, 0.0  ;;  %v1457_v19 = vxor.u32 %v1313_v13, %v1169_v61  ;;  %v1314_v21 = vshrl.u32 %v1170_v14, 16  ;;  %v2033_v46 = vld [vmem:[%s3207_s26 + $0x60] sm:$0xff] }
  0x73   : > { %2606 = vst [vmem:[%s3292_s19 + $0x48] sm:$0xff] %v2462_v15  ;;  %v2464_v33 = vadd.f32 %v2320_v29, %v2032_v4  ;;  %v1315_v24 = vshrl.u32 %v1171_v17, 16  ;;  %v740_v26 = vmul.u32 2146121005, %v596_v10  ;;  %v3361_v35 = vmul.f32 1.1111112, %v1893_v20 }
  0x74   : > { %2607 = vst [vmem:[%s3292_s19 + $0x50] sm:$0xff] %v2463_v23  ;;  %v1601_v39 = vshrl.u32 %v1457_v19, 8  ;;  %v1458_v30 = vxor.u32 %v1314_v21, %v1170_v14  ;;  %v310_v40 = vadd.s32 %v3320_v45, %v3237_v12  ;;  %v453_v25 = vshrl.u32 %v309_v28, 16  ;;  %v1897_v4 = vld [vmem:[%s3199_s8 + $0xa0] sm:$0xff] }
  0x75   : > { %2608 = vst [vmem:[%s3292_s19 + $0x58] sm:$0xff] %v2464_v33  ;;  %v1459_v32 = vxor.u32 %v1315_v24, %v1171_v17  ;;  %v884_v34 = vshrl.u32 %v740_v26, 15  ;;  %v3367_v36 = vmul.f32 1.1111112, %v1894_v22  ;;  %v216_v41 = vadd.s32 24, %v3214_v1  ;;  %v2036_v33 = vld [vmem:[%s3207_s26 + $0x78] sm:$0xff] }
  0x76   : > { %vm1745_vm12 = vcmp.ge.s32.totalorder %v1601_v39, 1677722  ;;  %v1602_v37 = vshrl.u32 %v1458_v30, 8  ;;  %v454_v38 = vshrl.u32 %v310_v40, 16  ;;  %v597_v47 = vxor.u32 %v453_v25, %v309_v28 }
  0x77   : > { %v2321_v42 = vsel %vm1745_vm12, %v3324_v56, 0.0  ;;  %v1603_v45 = vshrl.u32 %v1459_v32, 8  ;;  %v1028_v44 = vxor.u32 %v884_v34, %v740_v26  ;;  %v241_v52 = vadd.s32 %v3216_v2, %v216_v41  ;;  %v1898_v32 = vld [vmem:[%s3199_s8 + $0xa8] sm:$0xff]  ;;  %v1899_v41 = vld [vmem:[%s3199_s8 + $0xb0] sm:$0xff] }
  0x78   : > { %v2465_v48 = vadd.f32 %v2321_v42, %v2033_v46  ;;  %vm1746_vm13 = vcmp.ge.s32.totalorder %v1602_v37, 1677722  ;;  %v598_v51 = vxor.u32 %v454_v38, %v310_v40  ;;  %v217_v56 = vadd.s32 32, %v3214_v1 }
  0x79   : > { %v2322_v55 = vsel %vm1746_vm13, %v3334_v49, 0.0  ;;  %vm1747_vm14 = vcmp.ge.s32.totalorder %v1603_v45, 1677722  ;;  %v1172_v57 = vmul.u32 2221647499, %v1028_v44  ;;  %v272_v63 = vmul.u32 768, %v241_v52 }
  0x7a   : > { %2609 = vst [vmem:[%s3292_s19 + $0x60] sm:$0xff] %v2465_v48  ;;  %v2466_v58 = vadd.f32 %v2322_v55, %v2034_v43  ;;  %v2323_v59 = vsel %vm1747_vm14, %v3339_v27, 0.0  ;;  %v741_v60 = vmul.u32 2146121005, %v597_v47  ;;  %v742_v16 = vmul.u32 2146121005, %v598_v51 }
  0x7b   : > { %v2467_v61 = vadd.f32 %v2323_v59, %v2035_v50  ;;  %v1316_v62 = vshrl.u32 %v1172_v57, 16  ;;  %v3380_v0 = vmul.f32 1.1111112, %v1895_v53  ;;  %v3384_v10 = vmul.f32 1.1111112, %v1896_v54  ;;  %v2037_v59 = vld [vmem:[%s3207_s26 + $0x80] sm:$0xff] }
  0x7c   : > { %2610 = vst [vmem:[%s3292_s19 + $0x68] sm:$0xff] %v2466_v58  ;;  %v885_v9 = vshrl.u32 %v741_v60, 15  ;;  %v886_v49 = vshrl.u32 %v742_v16, 15  ;;  %v3387_v11 = vadd.s32 %v3216_v2, %v217_v56  ;;  %v311_v27 = vadd.s32 %v272_v63, %v3218_v3 }
  0x7d   : > { %2611 = vst [vmem:[%s3292_s19 + $0x70] sm:$0xff] %v2467_v61  ;;  %v1460_v13 = vxor.u32 %v1316_v62, %v1172_v57  ;;  %v312_v14 = vadd.s32 %v272_v63, %v3223_v5  ;;  %v313_v15 = vadd.s32 %v272_v63, %v3226_v6  ;;  %v3393_v20 = vmul.f32 1.1111112, %v1897_v4 }
  0x7e   : > { %v1029_v18 = vxor.u32 %v885_v9, %v741_v60  ;;  %v1030_v17 = vxor.u32 %v886_v49, %v742_v16  ;;  %v314_v23 = vadd.s32 %v272_v63, %v3229_v7  ;;  %v455_v19 = vshrl.u32 %v311_v27, 16  ;;  %v2038_v60 = vld [vmem:[%s3207_s26 + $0x88] sm:$0xff] }
  0x7f   : > { %v1604_v29 = vshrl.u32 %v1460_v13, 8  ;;  %v456_v21 = vshrl.u32 %v312_v14, 16  ;;  %v457_v22 = vshrl.u32 %v313_v15, 16  ;;  %v315_v39 = vadd.s32 %v272_v63, %v3232_v8  ;;  %v1900_v13 = vld [vmem:[%s3199_s8 + $0xb8] sm:$0xff] }
  0x80   : > { %v1173_v24 = vmul.u32 2221647499, %v1029_v18  ;;  %v1174_v26 = vmul.u32 2221647499, %v1030_v17  ;;  %v458_v28 = vshrl.u32 %v314_v23, 16  ;;  %v599_v30 = vxor.u32 %v455_v19, %v311_v27 }
  0x81   : > { %vm1748_vm15 = vcmp.ge.s32.totalorder %v1604_v29, 1677722  ;;  %v600_v40 = vxor.u32 %v456_v21, %v312_v14  ;;  %v601_v46 = vxor.u32 %v457_v22, %v313_v15  ;;  %v3401_v51 = vmul.f32 1.1111112, %v1898_v32 }
  0x82   : > { %v2324_v34 = vsel %vm1748_vm15, %v3348_v31, 0.0  ;;  %v1317_v25 = vshrl.u32 %v1173_v24, 16  ;;  %v1318_v37 = vshrl.u32 %v1174_v26, 16  ;;  %v602_v38 = vxor.u32 %v458_v28, %v314_v23 }
  0x83   : > { %v2468_v42 = vadd.f32 %v2324_v34, %v2036_v33  ;;  %v743_v43 = vmul.u32 2146121005, %v599_v30  ;;  %v744_v45 = vmul.u32 2146121005, %v600_v40  ;;  %v745_v44 = vmul.u32 2146121005, %v601_v46 }
  0x84   : > { %v1461_v47 = vxor.u32 %v1317_v25, %v1173_v24  ;;  %v1462_v48 = vxor.u32 %v1318_v37, %v1174_v26  ;;  %v746_v50 = vmul.u32 2146121005, %v602_v38  ;;  %v459_v31 = vshrl.u32 %v315_v39, 16  ;;  %v1901_v26 = vld [vmem:[%s3199_s8 + $0xc0] sm:$0xff] }
  0x85   : > { %2612 = vst [vmem:[%s3292_s19 + $0x78] sm:$0xff] %v2468_v42  ;;  %v887_v52 = vshrl.u32 %v743_v43, 15  ;;  %v888_v53 = vshrl.u32 %v744_v45, 15  ;;  %v889_v54 = vshrl.u32 %v745_v44, 15  ;;  %v3404_v58 = vmul.f32 1.1111112, %v1899_v41 }
  0x86   : > { %v1605_v55 = vshrl.u32 %v1461_v47, 8  ;;  %v1606_v57 = vshrl.u32 %v1462_v48, 8  ;;  %v890_v56 = vshrl.u32 %v746_v50, 15  ;;  %v603_v4 = vxor.u32 %v459_v31, %v315_v39  ;;  %v2039_v41 = vld [vmem:[%s3207_s26 + $0x90] sm:$0xff]  ;;  %v2041_v47 = vld [vmem:[%s3207_s26 + $0xa0] sm:$0xff] }
  0x87   : > { %v1031_v16 = vxor.u32 %v887_v52, %v743_v43  ;;  %v1032_v61 = vxor.u32 %v888_v53, %v744_v45  ;;  %v1033_v62 = vxor.u32 %v889_v54, %v745_v44  ;;  %v316_v49 = vadd.s32 %v272_v63, %v3237_v12  ;;  %v1902_v54 = vld [vmem:[%s3199_s8 + $0xc8] sm:$0xff] }
  0x88   : > { %vm1749_vm0 = vcmp.ge.s32.totalorder %v1605_v55, 1677722  ;;  %vm1750_vm1 = vcmp.ge.s32.totalorder %v1606_v57, 1677722  ;;  %v1034_v9 = vxor.u32 %v890_v56, %v746_v50  ;;  %v747_v33 = vmul.u32 2146121005, %v603_v4 }
  0x89   : > { %v2325_v27 = vsel %vm1749_vm0, %v3361_v35, 0.0  ;;  %v2326_v14 = vsel %vm1750_vm1, %v3367_v36, 0.0  ;;  %v1175_v15 = vmul.u32 2221647499, %v1031_v16  ;;  %v1176_v18 = vmul.u32 2221647499, %v1032_v61 }
  0x8a   : > { %v2469_v17 = vadd.f32 %v2325_v27, %v2037_v59  ;;  %v2470_v23 = vadd.f32 %v2326_v14, %v2038_v60  ;;  %v1177_v29 = vmul.u32 2221647499, %v1033_v62  ;;  %v1178_v19 = vmul.u32 2221647499, %v1034_v9  ;;  %v2042_v50 = vld [vmem:[%s3207_s26 + $0xa8] sm:$0xff]  ;;  %v1903_v62 = vld [vmem:[%s3199_s8 + $0xd0] sm:$0xff] }
  0x8b   : > { %v1319_v21 = vshrl.u32 %v1175_v15, 16  ;;  %v1320_v22 = vshrl.u32 %v1176_v18, 16  ;;  %v460_v24 = vshrl.u32 %v316_v49, 16  ;;  %v3414_v35 = vmul.f32 1.1111112, %v1900_v13  ;;  %v1904_v27 = vld [vmem:[%s3199_s8 + $0xd8] sm:$0xff] }
  0x8c   : > { %2613 = vst [vmem:[%s3292_s19 + $0x80] sm:$0xff] %v2469_v17  ;;  %v1321_v63 = vshrl.u32 %v1177_v29, 16  ;;  %v1322_v28 = vshrl.u32 %v1178_v19, 16  ;;  %v3417_v36 = vmul.u32 768, %v3387_v11  ;;  %v891_v40 = vshrl.u32 %v747_v33, 15  ;;  %v2040_v11 = vld [vmem:[%s3207_s26 + $0x98] sm:$0xff] }
  0x8d   : > { %2614 = vst [vmem:[%s3292_s19 + $0x88] sm:$0xff] %v2470_v23  ;;  %v1463_v39 = vxor.u32 %v1319_v21, %v1175_v15  ;;  %v1464_v30 = vxor.u32 %v1320_v22, %v1176_v18  ;;  %v604_v46 = vxor.u32 %v460_v24, %v316_v49  ;;  %v3422_v37 = vmul.f32 1.1111112, %v1901_v26 }
  0x8e   : > { %v1465_v32 = vxor.u32 %v1321_v63, %v1177_v29  ;;  %v1466_v34 = vxor.u32 %v1322_v28, %v1178_v19  ;;  %v317_v25 = vadd.s32 %v3417_v36, %v3218_v3  ;;  %v1035_v43 = vxor.u32 %v891_v40, %v747_v33  ;;  %v2043_v63 = vld [vmem:[%s3207_s26 + $0xb0] sm:$0xff] }
  0x8f   : > { %v1607_v38 = vshrl.u32 %v1463_v39, 8  ;;  %v1608_v42 = vshrl.u32 %v1464_v30, 8  ;;  %v748_v45 = vmul.u32 2146121005, %v604_v46  ;;  %v318_v53 = vadd.s32 %v3417_v36, %v3223_v5 }
  0x90   : > { %v1609_v44 = vshrl.u32 %v1465_v32, 8  ;;  %v1610_v48 = vshrl.u32 %v1466_v34, 8  ;;  %v461_v52 = vshrl.u32 %v317_v25, 16  ;;  %v1179_v31 = vmul.u32 2221647499, %v1035_v43 }
  0x91   : > { %vm1751_vm2 = vcmp.ge.s32.totalorder %v1607_v38, 1677722  ;;  %vm1752_vm3 = vcmp.ge.s32.totalorder %v1608_v42, 1677722  ;;  %v319_v55 = vadd.s32 %v3417_v36, %v3226_v6  ;;  %v892_v13 = vshrl.u32 %v748_v45, 15 }
  0x92   : > { %v2327_v57 = vsel %vm1751_vm2, %v3380_v0, 0.0  ;;  %v2328_v56 = vsel %vm1752_vm3, %v3384_v10, 0.0  ;;  %vm1753_vm4 = vcmp.ge.s32.totalorder %v1609_v44, 1677722  ;;  %vm1754_vm5 = vcmp.ge.s32.totalorder %v1610_v48, 1677722 }
  0x93   : > { %v2471_v59 = vadd.f32 %v2327_v57, %v2039_v41  ;;  %v2472_v60 = vadd.f32 %v2328_v56, %v2040_v11  ;;  %v2329_v16 = vsel %vm1753_vm4, %v3393_v20, 0.0  ;;  %v2330_v61 = vsel %vm1754_vm5, %v3401_v51, 0.0  ;;  %v2044_v48 = vld [vmem:[%s3207_s26 + $0xb8] sm:$0xff] }
  0x94   : > { %v2473_v4 = vadd.f32 %v2329_v16, %v2041_v47  ;;  %v2474_v9 = vadd.f32 %v2330_v61, %v2042_v50  ;;  %v1323_v49 = vshrl.u32 %v1179_v31, 16  ;;  %v605_v0 = vxor.u32 %v461_v52, %v317_v25  ;;  %v1905_v25 = vld [vmem:[%s3199_s8 + $0xe0] sm:$0xff] }
  0x95   : > { %2615 = vst [vmem:[%s3292_s19 + $0x90] sm:$0xff] %v2471_v59  ;;  %v462_v10 = vshrl.u32 %v318_v53, 16  ;;  %v3440_v14 = vmul.f32 1.1111112, %v1902_v54  ;;  %v463_v15 = vshrl.u32 %v319_v55, 16  ;;  %v1036_v20 = vxor.u32 %v892_v13, %v748_v45 }
  0x96   : > { %2616 = vst [vmem:[%s3292_s19 + $0x98] sm:$0xff] %v2472_v60  ;;  %v1467_v18 = vxor.u32 %v1323_v49, %v1179_v31  ;;  %v3443_v17 = vmul.f32 1.1111112, %v1903_v62  ;;  %v320_v51 = vadd.s32 %v3417_v36, %v3229_v7  ;;  %v749_v23 = vmul.u32 2146121005, %v605_v0 }
  0x97   : > { %2617 = vst [vmem:[%s3292_s19 + $0xa0] sm:$0xff] %v2473_v4  ;;  %v606_v29 = vxor.u32 %v462_v10, %v318_v53  ;;  %v607_v19 = vxor.u32 %v463_v15, %v319_v55  ;;  %v3448_v21 = vmul.f32 1.1111112, %v1904_v27  ;;  %v1180_v33 = vmul.u32 2221647499, %v1036_v20  ;;  %v1906_v4 = vld [vmem:[%s3199_s8 + $0xe8] sm:$0xff] }
  0x98   : > { %2618 = vst [vmem:[%s3292_s19 + $0xa8] sm:$0xff] %v2474_v9  ;;  %v1611_v22 = vshrl.u32 %v1467_v18, 8  ;;  %v464_v24 = vshrl.u32 %v320_v51, 16  ;;  %v321_v26 = vadd.s32 %v3417_v36, %v3232_v8  ;;  %v893_v28 = vshrl.u32 %v749_v23, 15  ;;  %v1907_v20 = vld [vmem:[%s3199_s8 + $0xf0] sm:$0xff] }
  0x99   : > { %v750_v39 = vmul.u32 2146121005, %v606_v29  ;;  %v751_v30 = vmul.u32 2146121005, %v607_v19  ;;  %v322_v40 = vadd.s32 %v3417_v36, %v3237_v12  ;;  %v1324_v46 = vshrl.u32 %v1180_v33, 16 }
  0x9a   : > { %vm1755_vm6 = vcmp.ge.s32.totalorder %v1611_v22, 1677722  ;;  %v608_v32 = vxor.u32 %v464_v24, %v320_v51  ;;  %v465_v34 = vshrl.u32 %v321_v26, 16  ;;  %v1037_v41 = vxor.u32 %v893_v28, %v749_v23  ;;  %v2045_v22 = vld [vmem:[%s3207_s26 + $0xc0] sm:$0xff] }
  0x9b   : > { %v2331_v38 = vsel %vm1755_vm6, %v3404_v58, 0.0  ;;  %v894_v42 = vshrl.u32 %v750_v39, 15  ;;  %v895_v11 = vshrl.u32 %v751_v30, 15  ;;  %v1468_v45 = vxor.u32 %v1324_v46, %v1180_v33  ;;  %v2047_v46 = vld [vmem:[%s3207_s26 + $0xd0] sm:$0xff] }
  0x9c   : > { %v2475_v43 = vadd.f32 %v2331_v38, %v2043_v63  ;;  %v752_v44 = vmul.u32 2146121005, %v608_v32  ;;  %v609_v47 = vxor.u32 %v465_v34, %v321_v26  ;;  %v1181_v50 = vmul.u32 2221647499, %v1037_v41 }
  0x9d   : > { %v1038_v52 = vxor.u32 %v894_v42, %v750_v39  ;;  %v1039_v36 = vxor.u32 %v895_v11, %v751_v30  ;;  %v3459_v53 = vmul.f32 1.1111112, %v1905_v25  ;;  %v1612_v54 = vshrl.u32 %v1468_v45, 8  ;;  %v1908_v42 = vld [vmem:[%s3199_s8 + $0xf8] sm:$0xff] }
  0x9e   : > { %2619 = vst [vmem:[%s3292_s19 + $0xb0] sm:$0xff] %v2475_v43  ;;  %v896_v31 = vshrl.u32 %v752_v44, 15  ;;  %v753_v55 = vmul.u32 2146121005, %v609_v47  ;;  %v466_v57 = vshrl.u32 %v322_v40, 16  ;;  %v1325_v58 = vshrl.u32 %v1181_v50, 16 }
  0x9f   : > { %v1182_v56 = vmul.u32 2221647499, %v1038_v52  ;;  %v1183_v59 = vmul.u32 2221647499, %v1039_v36  ;;  %v218_v60 = vadd.s32 40, %v3214_v1  ;;  %v1909_v36 = vld [vmem:[%s3199_s8 + $0x100] sm:$0xff] }
  0xa0   : > { %vm1756_vm7 = vcmp.ge.s32.totalorder %v1612_v54, 1677722  ;;  %v1040_v16 = vxor.u32 %v896_v31, %v752_v44  ;;  %v897_v61 = vshrl.u32 %v753_v55, 15  ;;  %v610_v62 = vxor.u32 %v466_v57, %v322_v40  ;;  %v2046_v40 = vld [vmem:[%s3207_s26 + $0xc8] sm:$0xff] }
  0xa1   : > { %v2332_v9 = vsel %vm1756_vm7, %v3414_v35, 0.0  ;;  %v1469_v49 = vxor.u32 %v1325_v58, %v1181_v50  ;;  %v1326_v13 = vshrl.u32 %v1182_v56, 16  ;;  %v1327_v27 = vshrl.u32 %v1183_v59, 16 }
  0xa2   : > { %v2476_v0 = vadd.f32 %v2332_v9, %v2044_v48  ;;  %v1184_v10 = vmul.u32 2221647499, %v1040_v16  ;;  %v1041_v15 = vxor.u32 %v897_v61, %v753_v55  ;;  %v754_v18 = vmul.u32 2146121005, %v610_v62  ;;  %v2048_v48 = vld [vmem:[%s3207_s26 + $0xd8] sm:$0xff]  ;;  %v2049_v55 = vld [vmem:[%s3207_s26 + $0xe0] sm:$0xff] }
  0xa3   : > { %v1613_v51 = vshrl.u32 %v1469_v49, 8  ;;  %v1470_v23 = vxor.u32 %v1326_v13, %v1182_v56  ;;  %v1471_v29 = vxor.u32 %v1327_v27, %v1183_v59  ;;  %v3466_v19 = vmul.f32 1.1111112, %v1906_v4  ;;  %v1910_v59 = vld [vmem:[%s3199_s8 + $0x108] sm:$0xff]  ;;  %v1911_v49 = vld [vmem:[%s3199_s8 + $0x110] sm:$0xff] }
  0xa4   : > { %2620 = vst [vmem:[%s3292_s19 + $0xb8] sm:$0xff] %v2476_v0  ;;  %v1328_v33 = vshrl.u32 %v1184_v10, 16  ;;  %v1185_v24 = vmul.u32 2221647499, %v1041_v15  ;;  %v898_v35 = vshrl.u32 %v754_v18, 15  ;;  %v243_v26 = vadd.s32 %v3216_v2, %v218_v60 }
  0xa5   : > { %vm1757_vm8 = vcmp.ge.s32.totalorder %v1613_v51, 1677722  ;;  %v1614_v63 = vshrl.u32 %v1470_v23, 8  ;;  %v1615_v28 = vshrl.u32 %v1471_v29, 8  ;;  %v3471_v39 = vmul.f32 1.1111112, %v1907_v20 }
  0xa6   : > { %v2333_v30 = vsel %vm1757_vm8, %v3422_v37, 0.0  ;;  %v1472_v32 = vxor.u32 %v1328_v33, %v1184_v10  ;;  %v1329_v34 = vshrl.u32 %v1185_v24, 16  ;;  %v1042_v25 = vxor.u32 %v898_v35, %v754_v18  ;;  %v2050_v18 = vld [vmem:[%s3207_s26 + $0xe8] sm:$0xff]  ;;  %v1912_v29 = vld [vmem:[%s3199_s8 + $0x118] sm:$0xff] }
  0xa7   : > { %v2477_v38 = vadd.f32 %v2333_v30, %v2045_v22  ;;  %vm1758_vm9 = vcmp.ge.s32.totalorder %v1614_v63, 1677722  ;;  %vm1759_vm10 = vcmp.ge.s32.totalorder %v1615_v28, 1677722  ;;  %v274_v41 = vmul.u32 768, %v243_v26 }
  0xa8   : > { %v2334_v11 = vsel %vm1758_vm9, %v3440_v14, 0.0  ;;  %v2335_v43 = vsel %vm1759_vm10, %v3443_v17, 0.0  ;;  %v1616_v45 = vshrl.u32 %v1472_v32, 8  ;;  %v1473_v37 = vxor.u32 %v1329_v34, %v1185_v24 }
  0xa9   : > { %2621 = vst [vmem:[%s3292_s19 + $0xc0] sm:$0xff] %v2477_v38  ;;  %v2478_v44 = vadd.f32 %v2334_v11, %v2046_v40  ;;  %v2479_v47 = vadd.f32 %v2335_v43, %v2047_v46  ;;  %v1186_v50 = vmul.u32 2221647499, %v1042_v25  ;;  %v323_v52 = vadd.s32 %v274_v41, %v3218_v3 }
  0xaa   : > { %vm1760_vm11 = vcmp.ge.s32.totalorder %v1616_v45, 1677722  ;;  %v1617_v54 = vshrl.u32 %v1473_v37, 8  ;;  %v324_v31 = vadd.s32 %v274_v41, %v3223_v5  ;;  %v3484_v14 = vmul.f32 1.1111112, %v1908_v42  ;;  %v1913_v45 = vld [vmem:[%s3199_s8 + $0x120] sm:$0xff] }
  0xab   : > { %2622 = vst [vmem:[%s3292_s19 + $0xc8] sm:$0xff] %v2478_v44  ;;  %v2336_v17 = vsel %vm1760_vm11, %v3448_v21, 0.0  ;;  %v1330_v57 = vshrl.u32 %v1186_v50, 16  ;;  %v467_v58 = vshrl.u32 %v323_v52, 16  ;;  %v325_v56 = vadd.s32 %v274_v41, %v3226_v6 }
  0xac   : > { %2623 = vst [vmem:[%s3292_s19 + $0xd0] sm:$0xff] %v2479_v47  ;;  %v2480_v60 = vadd.f32 %v2336_v17, %v2048_v48  ;;  %vm1761_vm12 = vcmp.ge.s32.totalorder %v1617_v54, 1677722  ;;  %v468_v16 = vshrl.u32 %v324_v31, 16  ;;  %v3492_v61 = vmul.f32 1.1111112, %v1909_v36 }
  0xad   : > { %v2337_v62 = vsel %vm1761_vm12, %v3459_v53, 0.0  ;;  %v1474_v4 = vxor.u32 %v1330_v57, %v1186_v50  ;;  %v611_v21 = vxor.u32 %v467_v58, %v323_v52  ;;  %v469_v9 = vshrl.u32 %v325_v56, 16  ;;  %v1914_v57 = vld [vmem:[%s3199_s8 + $0x128] sm:$0xff] }
  0xae   : > { %2624 = vst [vmem:[%s3292_s19 + $0xd8] sm:$0xff] %v2480_v60  ;;  %v2481_v13 = vadd.f32 %v2337_v62, %v2049_v55  ;;  %v612_v27 = vxor.u32 %v468_v16, %v324_v31  ;;  %v326_v0 = vadd.s32 %v274_v41, %v3229_v7  ;;  %v3498_v10 = vmul.f32 1.1111112, %v1910_v59 }
  0xaf   : > { %v1618_v15 = vshrl.u32 %v1474_v4, 8  ;;  %v755_v20 = vmul.u32 2146121005, %v611_v21  ;;  %v613_v51 = vxor.u32 %v469_v9, %v325_v56  ;;  %v327_v23 = vadd.s32 %v274_v41, %v3232_v8 }
  0xb0   : > { %2625 = vst [vmem:[%s3292_s19 + $0xe0] sm:$0xff] %v2481_v13  ;;  %v756_v53 = vmul.u32 2146121005, %v612_v27  ;;  %v470_v22 = vshrl.u32 %v326_v0, 16  ;;  %v3504_v33 = vmul.f32 1.1111112, %v1911_v49  ;;  %v328_v24 = vadd.s32 %v274_v41, %v3237_v12 }
  0xb1   : > { %vm1762_vm13 = vcmp.ge.s32.totalorder %v1618_v15, 1677722  ;;  %v899_v35 = vshrl.u32 %v755_v20, 15  ;;  %v757_v26 = vmul.u32 2146121005, %v613_v51  ;;  %v471_v63 = vshrl.u32 %v327_v23, 16 }
  0xb2   : > { %v2338_v28 = vsel %vm1762_vm13, %v3466_v19, 0.0  ;;  %v900_v30 = vshrl.u32 %v756_v53, 15  ;;  %v614_v40 = vxor.u32 %v470_v22, %v326_v0  ;;  %v472_v46 = vshrl.u32 %v328_v24, 16  ;;  %v2051_v51 = vld [vmem:[%s3207_s26 + $0xf0] sm:$0xff] }
  0xb3   : > { %v2482_v32 = vadd.f32 %v2338_v28, %v2050_v18  ;;  %v1043_v34 = vxor.u32 %v899_v35, %v755_v20  ;;  %v901_v25 = vshrl.u32 %v757_v26, 15  ;;  %v615_v38 = vxor.u32 %v471_v63, %v327_v23 }
  0xb4   : > { %v1044_v42 = vxor.u32 %v900_v30, %v756_v53  ;;  %v758_v11 = vmul.u32 2146121005, %v614_v40  ;;  %v616_v43 = vxor.u32 %v472_v46, %v328_v24  ;;  %v3508_v41 = vmul.f32 1.1111112, %v1912_v29  ;;  %v2052_v24 = vld [vmem:[%s3207_s26 + $0xf8] sm:$0xff]  ;;  %v2053_v30 = vld [vmem:[%s3207_s26 + $0x100] sm:$0xff] }
  0xb5   : > { %2626 = vst [vmem:[%s3292_s19 + $0xe8] sm:$0xff] %v2482_v32  ;;  %v1187_v37 = vmul.u32 2221647499, %v1043_v34  ;;  %v1045_v44 = vxor.u32 %v901_v25, %v757_v26  ;;  %v759_v47 = vmul.u32 2146121005, %v615_v38  ;;  %v219_v19 = vadd.s32 48, %v3214_v1 }
  0xb6   : > { %v1188_v48 = vmul.u32 2221647499, %v1044_v42  ;;  %v902_v50 = vshrl.u32 %v758_v11, 15  ;;  %v760_v52 = vmul.u32 2146121005, %v616_v43  ;;  %v3514_v36 = vadd.s32 56, %v3214_v1 }
  0xb7   : > { %v1331_v54 = vshrl.u32 %v1187_v37, 16  ;;  %v1189_v31 = vmul.u32 2221647499, %v1045_v44  ;;  %v903_v17 = vshrl.u32 %v759_v47, 15  ;;  %v244_v55 = vadd.s32 %v3216_v2, %v219_v19  ;;  %v1915_v38 = vld [vmem:[%s3199_s8 + $0x130] sm:$0xff]  ;;  %v2056_v19 = vld [vmem:[%s3207_s26 + $0x118] sm:$0xff] }
  0xb8   : > { %v1332_v58 = vshrl.u32 %v1188_v48, 16  ;;  %v1046_v56 = vxor.u32 %v902_v50, %v758_v11  ;;  %v904_v59 = vshrl.u32 %v760_v52, 15  ;;  %v3518_v60 = vmul.f32 1.1111112, %v1913_v45 }
  0xb9   : > { %v1475_v16 = vxor.u32 %v1331_v54, %v1187_v37  ;;  %v1333_v62 = vshrl.u32 %v1189_v31, 16  ;;  %v1047_v4 = vxor.u32 %v903_v17, %v759_v47  ;;  %v3520_v21 = vmul.u32 768, %v244_v55  ;;  %v2055_v47 = vld [vmem:[%s3207_s26 + $0x110] sm:$0xff] }
  0xba   : > { %v1476_v9 = vxor.u32 %v1332_v58, %v1188_v48  ;;  %v1190_v49 = vmul.u32 2221647499, %v1046_v56  ;;  %v1048_v13 = vxor.u32 %v904_v59, %v760_v52  ;;  %v3522_v27 = vmul.f32 1.1111112, %v1914_v57  ;;  %v1917_v59 = vld [vmem:[%s3199_s8 + $0x140] sm:$0xff] }
  0xbb   : > { %v1619_v0 = vshrl.u32 %v1475_v16, 8  ;;  %v1477_v15 = vxor.u32 %v1333_v62, %v1189_v31  ;;  %v1191_v18 = vmul.u32 2221647499, %v1047_v4  ;;  %v329_v20 = vadd.s32 %v3520_v21, %v3218_v3 }
  0xbc   : > { %v1620_v23 = vshrl.u32 %v1476_v9, 8  ;;  %v1334_v29 = vshrl.u32 %v1190_v49, 16  ;;  %v1192_v53 = vmul.u32 2221647499, %v1048_v13  ;;  %v330_v22 = vadd.s32 %v3520_v21, %v3223_v5 }
  0xbd   : > { %vm1763_vm14 = vcmp.ge.s32.totalorder %v1619_v0, 1677722  ;;  %v1621_v35 = vshrl.u32 %v1477_v15, 8  ;;  %v1335_v26 = vshrl.u32 %v1191_v18, 16  ;;  %v473_v63 = vshrl.u32 %v329_v20, 16 }
  0xbe   : > { %v2339_v28 = vsel %vm1763_vm14, %v3471_v39, 0.0  ;;  %vm1764_vm15 = vcmp.ge.s32.totalorder %v1620_v23, 1677722  ;;  %v1478_v40 = vxor.u32 %v1334_v29, %v1190_v49  ;;  %v1336_v46 = vshrl.u32 %v1192_v53, 16  ;;  %v2054_v39 = vld [vmem:[%s3207_s26 + $0x108] sm:$0xff] }
  0xbf   : > { %v2483_v32 = vadd.f32 %v2339_v28, %v2051_v51  ;;  %v2340_v34 = vsel %vm1764_vm15, %v3484_v14, 0.0  ;;  %vm1765_vm0 = vcmp.ge.s32.totalorder %v1621_v35, 1677722  ;;  %v1479_v25 = vxor.u32 %v1335_v26, %v1191_v18  ;;  %v1916_v14 = vld [vmem:[%s3199_s8 + $0x138] sm:$0xff]  ;;  %v1918_v49 = vld [vmem:[%s3199_s8 + $0x148] sm:$0xff] }
  0xc0   : > { %v2484_v42 = vadd.f32 %v2340_v34, %v2052_v24  ;;  %v2341_v11 = vsel %vm1765_vm0, %v3492_v61, 0.0  ;;  %v1622_v43 = vshrl.u32 %v1478_v40, 8  ;;  %v1480_v45 = vxor.u32 %v1336_v46, %v1192_v53  ;;  %v1920_v28 = vld [vmem:[%s3199_s8 + $0x158] sm:$0xff] }
  0xc1   : > { %2627 = vst [vmem:[%s3292_s19 + $0xf0] sm:$0xff] %v2483_v32  ;;  %v2485_v37 = vadd.f32 %v2341_v11, %v2053_v30  ;;  %v1623_v44 = vshrl.u32 %v1479_v25, 8  ;;  %v617_v48 = vxor.u32 %v473_v63, %v329_v20  ;;  %v474_v50 = vshrl.u32 %v330_v22, 16 }
  0xc2   : > { %2628 = vst [vmem:[%s3292_s19 + $0xf8] sm:$0xff] %v2484_v42  ;;  %vm1766_vm1 = vcmp.ge.s32.totalorder %v1622_v43, 1677722  ;;  %v1624_v52 = vshrl.u32 %v1480_v45, 8  ;;  %v331_v54 = vadd.s32 %v3520_v21, %v3226_v6  ;;  %v3543_v61 = vmul.f32 1.1111112, %v1915_v38 }
  0xc3   : > { %2629 = vst [vmem:[%s3292_s19 + $0x100] sm:$0xff] %v2485_v37  ;;  %v2342_v31 = vsel %vm1766_vm1, %v3498_v10, 0.0  ;;  %vm1767_vm2 = vcmp.ge.s32.totalorder %v1623_v44, 1677722  ;;  %v761_v17 = vmul.u32 2146121005, %v617_v48  ;;  %v618_v55 = vxor.u32 %v474_v50, %v330_v22 }
  0xc4   : > { %v2486_v57 = vadd.f32 %v2342_v31, %v2054_v39  ;;  %v2343_v58 = vsel %vm1767_vm2, %v3504_v33, 0.0  ;;  %vm1768_vm3 = vcmp.ge.s32.totalorder %v1624_v52, 1677722  ;;  %v475_v56 = vshrl.u32 %v331_v54, 16 }
  0xc5   : > { %v2487_v16 = vadd.f32 %v2343_v58, %v2055_v47  ;;  %v2344_v62 = vsel %vm1768_vm3, %v3508_v41, 0.0  ;;  %v905_v4 = vshrl.u32 %v761_v17, 15  ;;  %v762_v9 = vmul.u32 2146121005, %v618_v55  ;;  %v1919_v41 = vld [vmem:[%s3199_s8 + $0x150] sm:$0xff] }
  0xc6   : > { %2630 = vst [vmem:[%s3292_s19 + $0x108] sm:$0xff] %v2486_v57  ;;  %v2488_v10 = vadd.f32 %v2344_v62, %v2056_v19  ;;  %v619_v13 = vxor.u32 %v475_v56, %v331_v54  ;;  %v332_v0 = vadd.s32 %v3520_v21, %v3229_v7  ;;  %v3554_v15 = vmul.f32 1.1111112, %v1916_v14 }
  0xc7   : > { %2631 = vst [vmem:[%s3292_s19 + $0x110] sm:$0xff] %v2487_v16  ;;  %v1049_v33 = vxor.u32 %v905_v4, %v761_v17  ;;  %v906_v18 = vshrl.u32 %v762_v9, 15  ;;  %v333_v20 = vadd.s32 %v3520_v21, %v3232_v8  ;;  %v3559_v51 = vmul.f32 1.1111112, %v1917_v59  ;;  %v2057_v17 = vld [vmem:[%s3207_s26 + $0x120] sm:$0xff] }
  0xc8   : > { %2632 = vst [vmem:[%s3292_s19 + $0x118] sm:$0xff] %v2488_v10  ;;  %v763_v23 = vmul.u32 2146121005, %v619_v13  ;;  %v476_v29 = vshrl.u32 %v332_v0, 16  ;;  %v334_v53 = vadd.s32 %v3520_v21, %v3237_v12  ;;  %v3565_v22 = vmul.f32 1.1111112, %v1918_v49 }
  0xc9   : > { %v1193_v24 = vmul.u32 2221647499, %v1049_v33  ;;  %v1050_v35 = vxor.u32 %v906_v18, %v762_v9  ;;  %v477_v26 = vshrl.u32 %v333_v20, 16  ;;  %v245_v63 = vadd.s32 %v3216_v2, %v3514_v36  ;;  %v2058_v9 = vld [vmem:[%s3207_s26 + $0x128] sm:$0xff] }
  0xca   : > { %v907_v30 = vshrl.u32 %v763_v23, 15  ;;  %v620_v40 = vxor.u32 %v476_v29, %v332_v0  ;;  %v478_v46 = vshrl.u32 %v334_v53, 16  ;;  %v3570_v32 = vmul.f32 1.1111112, %v1919_v41 }
  0xcb   : > { %v1337_v34 = vshrl.u32 %v1193_v24, 16  ;;  %v1194_v25 = vmul.u32 2221647499, %v1050_v35  ;;  %v621_v38 = vxor.u32 %v477_v26, %v333_v20  ;;  %v3572_v42 = vmul.u32 768, %v245_v63 }
  0xcc   : > { %v1051_v21 = vxor.u32 %v907_v30, %v763_v23  ;;  %v764_v11 = vmul.u32 2146121005, %v620_v40  ;;  %v622_v43 = vxor.u32 %v478_v46, %v334_v53  ;;  %v3574_v39 = vmul.f32 1.1111112, %v1920_v28  ;;  %v1921_v40 = vld [vmem:[%s3199_s8 + $0x160] sm:$0xff] }
  0xcd   : > { %v1481_v45 = vxor.u32 %v1337_v34, %v1193_v24  ;;  %v1338_v37 = vshrl.u32 %v1194_v25, 16  ;;  %v765_v36 = vmul.u32 2146121005, %v621_v38  ;;  %v335_v44 = vadd.s32 %v3572_v42, %v3218_v3  ;;  %v2059_v24 = vld [vmem:[%s3207_s26 + $0x130] sm:$0xff] }
  0xce   : > { %v1195_v47 = vmul.u32 2221647499, %v1051_v21  ;;  %v908_v19 = vshrl.u32 %v764_v11, 15  ;;  %v766_v48 = vmul.u32 2146121005, %v622_v43  ;;  %v336_v50 = vadd.s32 %v3572_v42, %v3223_v5 }
  0xcf   : > { %v1625_v14 = vshrl.u32 %v1481_v45, 8  ;;  %v1482_v52 = vxor.u32 %v1338_v37, %v1194_v25  ;;  %v909_v54 = vshrl.u32 %v765_v36, 15  ;;  %v479_v31 = vshrl.u32 %v335_v44, 16 }
  0xd0   : > { %v1339_v55 = vshrl.u32 %v1195_v47, 16  ;;  %v1052_v57 = vxor.u32 %v908_v19, %v764_v11  ;;  %v910_v58 = vshrl.u32 %v766_v48, 15  ;;  %v480_v56 = vshrl.u32 %v336_v50, 16  ;;  %v2060_v11 = vld [vmem:[%s3207_s26 + $0x138] sm:$0xff]  ;;  %v2061_v19 = vld [vmem:[%s3207_s26 + $0x140] sm:$0xff] }
  0xd1   : > { %vm1769_vm4 = vcmp.ge.s32.totalorder %v1625_v14, 1677722  ;;  %v1626_v59 = vshrl.u32 %v1482_v52, 8  ;;  %v1053_v16 = vxor.u32 %v909_v54, %v765_v36  ;;  %v623_v62 = vxor.u32 %v479_v31, %v335_v44  ;;  %v2062_v52 = vld [vmem:[%s3207_s26 + $0x148] sm:$0xff] }
  0xd2   : > { %v2345_v4 = vsel %vm1769_vm4, %v3518_v60, 0.0  ;;  %v1483_v49 = vxor.u32 %v1339_v55, %v1195_v47  ;;  %v1196_v10 = vmul.u32 2221647499, %v1052_v57  ;;  %v1054_v13 = vxor.u32 %v910_v58, %v766_v48 }
  0xd3   : > { %v2489_v0 = vadd.f32 %v2345_v4, %v2057_v17  ;;  %vm1770_vm5 = vcmp.ge.s32.totalorder %v1626_v59, 1677722  ;;  %v1197_v33 = vmul.u32 2221647499, %v1053_v16  ;;  %v767_v18 = vmul.u32 2146121005, %v623_v62 }
  0xd4   : > { %v2346_v20 = vsel %vm1770_vm5, %v3522_v27, 0.0  ;;  %v1627_v41 = vshrl.u32 %v1483_v49, 8  ;;  %v1340_v23 = vshrl.u32 %v1196_v10, 16  ;;  %v1198_v29 = vmul.u32 2221647499, %v1054_v13  ;;  %v1922_v17 = vld [vmem:[%s3199_s8 + $0x168] sm:$0xff] }
  0xd5   : > { %2633 = vst [vmem:[%s3292_s19 + $0x120] sm:$0xff] %v2489_v0  ;;  %v2490_v53 = vadd.f32 %v2346_v20, %v2058_v9  ;;  %v1341_v60 = vshrl.u32 %v1197_v33, 16  ;;  %v911_v35 = vshrl.u32 %v767_v18, 15  ;;  %v624_v26 = vxor.u32 %v480_v56, %v336_v50  ;;  %v1923_v56 = vld [vmem:[%s3199_s8 + $0x170] sm:$0xff]  ;;  %v1924_v4 = vld [vmem:[%s3199_s8 + $0x178] sm:$0xff] }
  0xd6   : > { %vm1771_vm6 = vcmp.ge.s32.totalorder %v1627_v41, 1677722  ;;  %v1484_v63 = vxor.u32 %v1340_v23, %v1196_v10  ;;  %v1342_v28 = vshrl.u32 %v1198_v29, 16  ;;  %v337_v30 = vadd.s32 %v3572_v42, %v3226_v6 }
  0xd7   : > { %2634 = vst [vmem:[%s3292_s19 + $0x128] sm:$0xff] %v2490_v53  ;;  %v2347_v27 = vsel %vm1771_vm6, %v3543_v61, 0.0  ;;  %v1485_v46 = vxor.u32 %v1341_v60, %v1197_v33  ;;  %v1055_v34 = vxor.u32 %v911_v35, %v767_v18  ;;  %v768_v25 = vmul.u32 2146121005, %v624_v26  ;;  %v1925_v35 = vld [vmem:[%s3199_s8 + $0x180] sm:$0xff] }
  0xd8   : > { %v2491_v38 = vadd.f32 %v2347_v27, %v2059_v24  ;;  %v1628_v21 = vshrl.u32 %v1484_v63, 8  ;;  %v1486_v43 = vxor.u32 %v1342_v28, %v1198_v29  ;;  %v481_v45 = vshrl.u32 %v337_v30, 16 }
  0xd9   : > { %v1629_v37 = vshrl.u32 %v1485_v46, 8  ;;  %v1199_v36 = vmul.u32 2221647499, %v1055_v34  ;;  %v912_v44 = vshrl.u32 %v768_v25, 15  ;;  %v3592_v47 = vmul.f32 1.1111112, %v1921_v40 }
  0xda   : > { %2635 = vst [vmem:[%s3292_s19 + $0x130] sm:$0xff] %v2491_v38  ;;  %vm1772_vm7 = vcmp.ge.s32.totalorder %v1628_v21, 1677722  ;;  %v1630_v61 = vshrl.u32 %v1486_v43, 8  ;;  %v625_v48 = vxor.u32 %v481_v45, %v337_v30  ;;  %v338_v50 = vadd.s32 %v3572_v42, %v3229_v7  ;;  %v2064_v34 = vld [vmem:[%s3207_s26 + $0x158] sm:$0xff]  ;;  %v1926_v43 = vld [vmem:[%s3199_s8 + $0x188] sm:$0xff] }
  0xdb   : > { %v2348_v14 = vsel %vm1772_vm7, %v3554_v15, 0.0  ;;  %vm1773_vm8 = vcmp.ge.s32.totalorder %v1629_v37, 1677722  ;;  %v1343_v54 = vshrl.u32 %v1199_v36, 16  ;;  %v1056_v31 = vxor.u32 %v912_v44, %v768_v25 }
  0xdc   : > { %v2492_v55 = vadd.f32 %v2348_v14, %v2060_v11  ;;  %v2349_v57 = vsel %vm1773_vm8, %v3559_v51, 0.0  ;;  %vm1774_vm9 = vcmp.ge.s32.totalorder %v1630_v61, 1677722  ;;  %v769_v58 = vmul.u32 2146121005, %v625_v48 }
  0xdd   : > { %v2493_v59 = vadd.f32 %v2349_v57, %v2061_v19  ;;  %v2350_v16 = vsel %vm1774_vm9, %v3565_v22, 0.0  ;;  %v1487_v62 = vxor.u32 %v1343_v54, %v1199_v36  ;;  %v1200_v15 = vmul.u32 2221647499, %v1056_v31  ;;  %v2063_v22 = vld [vmem:[%s3207_s26 + $0x150] sm:$0xff] }
  0xde   : > { %2636 = vst [vmem:[%s3292_s19 + $0x138] sm:$0xff] %v2492_v55  ;;  %v2494_v9 = vadd.f32 %v2350_v16, %v2062_v52  ;;  %v913_v49 = vshrl.u32 %v769_v58, 15  ;;  %v482_v10 = vshrl.u32 %v338_v50, 16  ;;  %v3606_v13 = vmul.f32 1.1111112, %v1922_v17  ;;  %v1927_v52 = vld [vmem:[%s3199_s8 + $0x190] sm:$0xff] }
  0xdf   : > { %2637 = vst [vmem:[%s3292_s19 + $0x140] sm:$0xff] %v2493_v59  ;;  %v1631_v51 = vshrl.u32 %v1487_v62, 8  ;;  %v1344_v0 = vshrl.u32 %v1200_v15, 16  ;;  %v339_v33 = vadd.s32 %v3572_v42, %v3232_v8  ;;  %v3611_v18 = vmul.f32 1.1111112, %v1923_v56 }
  0xe0   : > { %2638 = vst [vmem:[%s3292_s19 + $0x148] sm:$0xff] %v2494_v9  ;;  %v1057_v20 = vxor.u32 %v913_v49, %v769_v58  ;;  %v626_v41 = vxor.u32 %v482_v10, %v338_v50  ;;  %v340_v23 = vadd.s32 %v3572_v42, %v3237_v12  ;;  %v3617_v29 = vmul.f32 1.1111112, %v1924_v4 }
  0xe1   : > { %vm1775_vm10 = vcmp.ge.s32.totalorder %v1631_v51, 1677722  ;;  %v1488_v53 = vxor.u32 %v1344_v0, %v1200_v15  ;;  %v483_v24 = vshrl.u32 %v339_v33, 16  ;;  %v221_v60 = vadd.s32 64, %v3214_v1  ;;  %v1928_v51 = vld [vmem:[%s3199_s8 + $0x198] sm:$0xff] }
  0xe2   : > { %v2351_v26 = vsel %vm1775_vm10, %v3570_v32, 0.0  ;;  %v1201_v63 = vmul.u32 2221647499, %v1057_v20  ;;  %v770_v28 = vmul.u32 2146121005, %v626_v41  ;;  %v484_v30 = vshrl.u32 %v340_v23, 16 }
  0xe3   : > { %v2495_v40 = vadd.f32 %v2351_v26, %v2063_v22  ;;  %v1632_v27 = vshrl.u32 %v1488_v53, 8  ;;  %v627_v46 = vxor.u32 %v483_v24, %v339_v33  ;;  %v246_v42 = vadd.s32 %v3216_v2, %v221_v60 }
  0xe4   : > { %v1345_v25 = vshrl.u32 %v1201_v63, 16  ;;  %v914_v38 = vshrl.u32 %v770_v28, 15  ;;  %v628_v21 = vxor.u32 %v484_v30, %v340_v23  ;;  %v3624_v11 = vmul.f32 1.1111112, %v1925_v35 }
  0xe5   : > { %2639 = vst [vmem:[%s3292_s19 + $0x150] sm:$0xff] %v2495_v40  ;;  %vm1776_vm11 = vcmp.ge.s32.totalorder %v1632_v27, 1677722  ;;  %v771_v32 = vmul.u32 2146121005, %v627_v46  ;;  %v3628_v45 = vmul.u32 768, %v246_v42 }
  0xe6   : > { %v2352_v37 = vsel %vm1776_vm11, %v3574_v39, 0.0  ;;  %v1489_v36 = vxor.u32 %v1345_v25, %v1201_v63  ;;  %v1058_v44 = vxor.u32 %v914_v38, %v770_v28  ;;  %v772_v19 = vmul.u32 2146121005, %v628_v21  ;;  %v2065_v39 = vld [vmem:[%s3207_s26 + $0x160] sm:$0xff]  ;;  %v2066_v63 = vld [vmem:[%s3207_s26 + $0x168] sm:$0xff] }
  0xe7   : > { %v2496_v61 = vadd.f32 %v2352_v37, %v2064_v34  ;;  %v915_v48 = vshrl.u32 %v771_v32, 15  ;;  %v341_v50 = vadd.s32 %v3628_v45, %v3218_v3  ;;  %v342_v14 = vadd.s32 %v3628_v45, %v3223_v5  ;;  %v2067_v37 = vld [vmem:[%s3207_s26 + $0x170] sm:$0xff] }
  0xe8   : > { %v1633_v54 = vshrl.u32 %v1489_v36, 8  ;;  %v1202_v31 = vmul.u32 2221647499, %v1058_v44  ;;  %v916_v17 = vshrl.u32 %v772_v19, 15  ;;  %v3636_v55 = vmul.f32 1.1111112, %v1926_v43 }
  0xe9   : > { %2640 = vst [vmem:[%s3292_s19 + $0x158] sm:$0xff] %v2496_v61  ;;  %v1059_v57 = vxor.u32 %v915_v48, %v771_v32  ;;  %v485_v58 = vshrl.u32 %v341_v50, 16  ;;  %v486_v56 = vshrl.u32 %v342_v14, 16  ;;  %v343_v59 = vadd.s32 %v3628_v45, %v3226_v6  ;;  %v2068_v44 = vld [vmem:[%s3207_s26 + $0x178] sm:$0xff]  ;;  %v1929_v48 = vld [vmem:[%s3199_s8 + $0x1a0] sm:$0xff] }
  0xea   : > { %vm1777_vm12 = vcmp.ge.s32.totalorder %v1633_v54, 1677722  ;;  %v1346_v16 = vshrl.u32 %v1202_v31, 16  ;;  %v1060_v62 = vxor.u32 %v916_v17, %v772_v19  ;;  %v3642_v15 = vmul.f32 1.1111112, %v1927_v52 }
  0xeb   : > { %v2353_v4 = vsel %vm1777_vm12, %v3592_v47, 0.0  ;;  %v1203_v9 = vmul.u32 2221647499, %v1059_v57  ;;  %v629_v49 = vxor.u32 %v485_v58, %v341_v50  ;;  %v630_v10 = vxor.u32 %v486_v56, %v342_v14  ;;  %v1930_v56 = vld [vmem:[%s3199_s8 + $0x1a8] sm:$0xff] }
  0xec   : > { %v2497_v0 = vadd.f32 %v2353_v4, %v2065_v39  ;;  %v1490_v33 = vxor.u32 %v1346_v16, %v1202_v31  ;;  %v1204_v22 = vmul.u32 2221647499, %v1060_v62  ;;  %v487_v20 = vshrl.u32 %v343_v59, 16 }
  0xed   : > { %v1347_v41 = vshrl.u32 %v1203_v9, 16  ;;  %v773_v23 = vmul.u32 2146121005, %v629_v49  ;;  %v774_v53 = vmul.u32 2146121005, %v630_v10  ;;  %v344_v24 = vadd.s32 %v3628_v45, %v3229_v7  ;;  %v1931_v10 = vld [vmem:[%s3199_s8 + $0x1b0] sm:$0xff] }
  0xee   : > { %2641 = vst [vmem:[%s3292_s19 + $0x160] sm:$0xff] %v2497_v0  ;;  %v1634_v60 = vshrl.u32 %v1490_v33, 8  ;;  %v1348_v35 = vshrl.u32 %v1204_v22, 16  ;;  %v631_v26 = vxor.u32 %v487_v20, %v343_v59  ;;  %v3649_v47 = vmul.f32 1.1111112, %v1928_v51  ;;  %v2069_v20 = vld [vmem:[%s3207_s26 + $0x180] sm:$0xff] }
  0xef   : > { %v1491_v28 = vxor.u32 %v1347_v41, %v1203_v9  ;;  %v917_v30 = vshrl.u32 %v773_v23, 15  ;;  %v918_v40 = vshrl.u32 %v774_v53, 15  ;;  %v488_v27 = vshrl.u32 %v344_v24, 16 }
  0xf0   : > { %vm1778_vm13 = vcmp.ge.s32.totalorder %v1634_v60, 1677722  ;;  %v1492_v46 = vxor.u32 %v1348_v35, %v1204_v22  ;;  %v775_v42 = vmul.u32 2146121005, %v631_v26  ;;  %v345_v34 = vadd.s32 %v3628_v45, %v3232_v8  ;;  %v1932_v60 = vld [vmem:[%s3199_s8 + $0x1b8] sm:$0xff] }
  0xf1   : > { %v2354_v25 = vsel %vm1778_vm13, %v3606_v13, 0.0  ;;  %v1635_v38 = vshrl.u32 %v1491_v28, 8  ;;  %v1061_v21 = vxor.u32 %v917_v30, %v773_v23  ;;  %v1062_v43 = vxor.u32 %v918_v40, %v774_v53  ;;  %v2070_v23 = vld [vmem:[%s3207_s26 + $0x188] sm:$0xff] }
  0xf2   : > { %v2498_v32 = vadd.f32 %v2354_v25, %v2066_v63  ;;  %v1636_v36 = vshrl.u32 %v1492_v46, 8  ;;  %v919_v19 = vshrl.u32 %v775_v42, 15  ;;  %v632_v61 = vxor.u32 %v488_v27, %v344_v24  ;;  %v1933_v25 = vld [vmem:[%s3199_s8 + $0x1c0] sm:$0xff] }
  0xf3   : > { %vm1779_vm14 = vcmp.ge.s32.totalorder %v1635_v38, 1677722  ;;  %v1205_v50 = vmul.u32 2221647499, %v1061_v21  ;;  %v1206_v14 = vmul.u32 2221647499, %v1062_v43  ;;  %v346_v52 = vadd.s32 %v3628_v45, %v3237_v12 }
  0xf4   : > { %2642 = vst [vmem:[%s3292_s19 + $0x168] sm:$0xff] %v2498_v32  ;;  %v2355_v13 = vsel %vm1779_vm14, %v3611_v18, 0.0  ;;  %vm1780_vm15 = vcmp.ge.s32.totalorder %v1636_v36, 1677722  ;;  %v1063_v54 = vxor.u32 %v919_v19, %v775_v42  ;;  %v776_v31 = vmul.u32 2146121005, %v632_v61 }
  0xf5   : > { %v2499_v17 = vadd.f32 %v2355_v13, %v2067_v37  ;;  %v2356_v39 = vsel %vm1780_vm15, %v3617_v29, 0.0  ;;  %v1349_v57 = vshrl.u32 %v1205_v50, 16  ;;  %v1350_v58 = vshrl.u32 %v1206_v14, 16  ;;  %v2071_v43 = vld [vmem:[%s3207_s26 + $0x190] sm:$0xff] }
  0xf6   : > { %v2500_v59 = vadd.f32 %v2356_v39, %v2068_v44  ;;  %v1207_v16 = vmul.u32 2221647499, %v1063_v54  ;;  %v920_v62 = vshrl.u32 %v776_v31, 15  ;;  %v489_v45 = vshrl.u32 %v345_v34, 16  ;;  %v2072_v54 = vld [vmem:[%s3207_s26 + $0x198] sm:$0xff] }
  0xf7   : > { %2643 = vst [vmem:[%s3292_s19 + $0x170] sm:$0xff] %v2499_v17  ;;  %v1493_v4 = vxor.u32 %v1349_v57, %v1205_v50  ;;  %v1494_v18 = vxor.u32 %v1350_v58, %v1206_v14  ;;  %v3665_v9 = vmul.f32 1.1111112, %v1929_v48  ;;  %v490_v49 = vshrl.u32 %v346_v52, 16 }
  0xf8   : > { %2644 = vst [vmem:[%s3292_s19 + $0x178] sm:$0xff] %v2500_v59  ;;  %v1351_v51 = vshrl.u32 %v1207_v16, 16  ;;  %v1064_v29 = vxor.u32 %v920_v62, %v776_v31  ;;  %v633_v0 = vxor.u32 %v489_v45, %v345_v34  ;;  %v3669_v33 = vmul.f32 1.1111112, %v1930_v56  ;;  %v1934_v56 = vld [vmem:[%s3199_s8 + $0x1c8] sm:$0xff] }
  0xf9   : > { %v1637_v22 = vshrl.u32 %v1493_v4, 8  ;;  %v1638_v41 = vshrl.u32 %v1494_v18, 8  ;;  %v634_v53 = vxor.u32 %v490_v49, %v346_v52  ;;  %v222_v24 = vadd.s32 72, %v3214_v1 }
  0xfa   : > { %v1495_v35 = vxor.u32 %v1351_v51, %v1207_v16  ;;  %v1208_v26 = vmul.u32 2221647499, %v1064_v29  ;;  %v777_v63 = vmul.u32 2146121005, %v633_v0  ;;  %v3675_v28 = vmul.f32 1.1111112, %v1931_v10 }
  0xfb   : > { %vm1781_vm0 = vcmp.ge.s32.totalorder %v1637_v22, 1677722  ;;  %vm1782_vm1 = vcmp.ge.s32.totalorder %v1638_v41, 1677722  ;;  %v778_v30 = vmul.u32 2146121005, %v634_v53  ;;  %v247_v40 = vadd.s32 %v3216_v2, %v222_v24 }
  0xfc   : > { %v2357_v27 = vsel %vm1781_vm0, %v3624_v11, 0.0  ;;  %v2358_v46 = vsel %vm1782_vm1, %v3636_v55, 0.0  ;;  %v1639_v42 = vshrl.u32 %v1495_v35, 8  ;;  %v1352_v34 = vshrl.u32 %v1208_v26, 16  ;;  %v1935_v29 = vld [vmem:[%s3199_s8 + $0x1d0] sm:$0xff] }
  0xfd   : > { %v2501_v38 = vadd.f32 %v2357_v27, %v2069_v20  ;;  %v2502_v21 = vadd.f32 %v2358_v46, %v2070_v23  ;;  %v921_v32 = vshrl.u32 %v777_v63, 15  ;;  %v922_v37 = vshrl.u32 %v778_v30, 15 }
  0xfe   : > { %vm1783_vm2 = vcmp.ge.s32.totalorder %v1639_v42, 1677722  ;;  %v1496_v36 = vxor.u32 %v1352_v34, %v1208_v26  ;;  %v278_v44 = vmul.u32 768, %v247_v40  ;;  %v3682_v19 = vmul.f32 1.1111112, %v1932_v60  ;;  %v2074_v40 = vld [vmem:[%s3207_s26 + $0x1a8] sm:$0xff] }
  0xff   : > { %2645 = vst [vmem:[%s3292_s19 + $0x180] sm:$0xff] %v2501_v38  ;;  %v2359_v11 = vsel %vm1783_vm2, %v3642_v15, 0.0  ;;  %v1065_v55 = vxor.u32 %v921_v32, %v777_v63  ;;  %v1066_v61 = vxor.u32 %v922_v37, %v778_v30  ;;  %v3686_v48 = vmul.f32 1.1111112, %v1933_v25  ;;  %v2073_v30 = vld [vmem:[%s3207_s26 + $0x1a0] sm:$0xff] }
 0x100   : > { %2646 = vst [vmem:[%s3292_s19 + $0x188] sm:$0xff] %v2502_v21  ;;  %v2503_v50 = vadd.f32 %v2359_v11, %v2071_v43  ;;  %v1640_v14 = vshrl.u32 %v1496_v36, 8  ;;  %v347_v52 = vadd.s32 %v278_v44, %v3218_v3  ;;  %v348_v13 = vadd.s32 %v278_v44, %v3223_v5  ;;  %v1936_v36 = vld [vmem:[%s3199_s8 + $0x1d8] sm:$0xff] }
 0x101   : > { %v1209_v31 = vmul.u32 2221647499, %v1065_v55  ;;  %v1210_v17 = vmul.u32 2221647499, %v1066_v61  ;;  %v349_v39 = vadd.s32 %v278_v44, %v3226_v6  ;;  %v350_v15 = vadd.s32 %v278_v44, %v3229_v7 }
 0x102   : > { %2647 = vst [vmem:[%s3292_s19 + $0x190] sm:$0xff] %v2503_v50  ;;  %vm1784_vm3 = vcmp.ge.s32.totalorder %v1640_v14, 1677722  ;;  %v491_v57 = vshrl.u32 %v347_v52, 16  ;;  %v492_v58 = vshrl.u32 %v348_v13, 16  ;;  %v351_v59 = vadd.s32 %v278_v44, %v3232_v8  ;;  %v1937_v14 = vld [vmem:[%s3199_s8 + $0x1e0] sm:$0xff] }
 0x103   : > { %v2360_v16 = vsel %vm1784_vm3, %v3649_v47, 0.0  ;;  %v1353_v62 = vshrl.u32 %v1209_v31, 16  ;;  %v1354_v45 = vshrl.u32 %v1210_v17, 16  ;;  %v493_v4 = vshrl.u32 %v349_v39, 16 }
 0x104   : > { %v2504_v18 = vadd.f32 %v2360_v16, %v2072_v54  ;;  %v635_v49 = vxor.u32 %v491_v57, %v347_v52  ;;  %v636_v10 = vxor.u32 %v492_v58, %v348_v13  ;;  %v494_v51 = vshrl.u32 %v350_v15, 16  ;;  %v1938_v58 = vld [vmem:[%s3199_s8 + $0x1e8] sm:$0xff] }
 0x105   : > { %v1497_v0 = vxor.u32 %v1353_v62, %v1209_v31  ;;  %v1498_v22 = vxor.u32 %v1354_v45, %v1210_v17  ;;  %v637_v20 = vxor.u32 %v493_v4, %v349_v39  ;;  %v3699_v41 = vmul.f32 1.1111112, %v1934_v56 }
 0x106   : > { %2648 = vst [vmem:[%s3292_s19 + $0x198] sm:$0xff] %v2504_v18  ;;  %v779_v23 = vmul.u32 2146121005, %v635_v49  ;;  %v780_v53 = vmul.u32 2146121005, %v636_v10  ;;  %v638_v24 = vxor.u32 %v494_v51, %v350_v15  ;;  %v495_v47 = vshrl.u32 %v351_v59, 16 }
 0x107   : > { %v1641_v60 = vshrl.u32 %v1497_v0, 8  ;;  %v1642_v35 = vshrl.u32 %v1498_v22, 8  ;;  %v781_v26 = vmul.u32 2146121005, %v637_v20  ;;  %v3702_v63 = vmul.f32 1.1111112, %v1935_v29 }
 0x108   : > { %v923_v27 = vshrl.u32 %v779_v23, 15  ;;  %v924_v46 = vshrl.u32 %v780_v53, 15  ;;  %v782_v42 = vmul.u32 2146121005, %v638_v24  ;;  %v639_v34 = vxor.u32 %v495_v47, %v351_v59  ;;  %v1939_v10 = vld [vmem:[%s3199_s8 + $0x1f0] sm:$0xff] }
 0x109   : > { %vm1785_vm4 = vcmp.ge.s32.totalorder %v1641_v60, 1677722  ;;  %vm1786_vm5 = vcmp.ge.s32.totalorder %v1642_v35, 1677722  ;;  %v925_v25 = vshrl.u32 %v781_v26, 15  ;;  %v352_v38 = vadd.s32 %v278_v44, %v3237_v12  ;;  %v2075_v47 = vld [vmem:[%s3207_s26 + $0x1b0] sm:$0xff] }
 0x10a   : > { %v2361_v21 = vsel %vm1785_vm4, %v3665_v9, 0.0  ;;  %v2362_v43 = vsel %vm1786_vm5, %v3669_v33, 0.0  ;;  %v1067_v32 = vxor.u32 %v923_v27, %v779_v23  ;;  %v1068_v37 = vxor.u32 %v924_v46, %v780_v53  ;;  %v2076_v60 = vld [vmem:[%s3207_s26 + $0x1b8] sm:$0xff]  ;;  %v2077_v27 = vld [vmem:[%s3207_s26 + $0x1c0] sm:$0xff] }
 0x10b   : > { %v2505_v11 = vadd.f32 %v2361_v21, %v2073_v30  ;;  %v2506_v55 = vadd.f32 %v2362_v43, %v2074_v40  ;;  %v1069_v61 = vxor.u32 %v925_v25, %v781_v26  ;;  %v926_v50 = vshrl.u32 %v782_v42, 15 }
 0x10c   : > { %v1211_v52 = vmul.u32 2221647499, %v1067_v32  ;;  %v1212_v13 = vmul.u32 2221647499, %v1068_v37  ;;  %v783_v54 = vmul.u32 2146121005, %v639_v34 }
 0x10d   : > { %2649 = vst [vmem:[%s3292_s19 + $0x1a0] sm:$0xff] %v2505_v11  ;;  %v1213_v31 = vmul.u32 2221647499, %v1069_v61  ;;  %v1070_v44 = vxor.u32 %v926_v50, %v782_v42  ;;  %v496_v17 = vshrl.u32 %v352_v38, 16  ;;  %v3712_v9 = vmul.f32 1.1111112, %v1936_v36 }
 0x10e   : > { %2650 = vst [vmem:[%s3292_s19 + $0x1a8] sm:$0xff] %v2506_v55  ;;  %v1355_v33 = vshrl.u32 %v1211_v52, 16  ;;  %v1356_v39 = vshrl.u32 %v1212_v13, 16  ;;  %v927_v15 = vshrl.u32 %v783_v54, 15  ;;  %v223_v57 = vadd.s32 80, %v3214_v1  ;;  %v2078_v37 = vld [vmem:[%s3207_s26 + $0x1c8] sm:$0xff] }
 0x10f   : > { %v1357_v56 = vshrl.u32 %v1213_v31, 16  ;;  %v1214_v59 = vmul.u32 2221647499, %v1070_v44  ;;  %v640_v16 = vxor.u32 %v496_v17, %v352_v38  ;;  %v3717_v62 = vmul.f32 1.1111112, %v1937_v14  ;;  %v1940_v44 = vld [vmem:[%s3199_s8 + $0x1f8] sm:$0xff] }
 0x110   : > { %v1499_v45 = vxor.u32 %v1355_v33, %v1211_v52  ;;  %v1500_v4 = vxor.u32 %v1356_v39, %v1212_v13  ;;  %v1071_v18 = vxor.u32 %v927_v15, %v783_v54  ;;  %v248_v49 = vadd.s32 %v3216_v2, %v223_v57 }
 0x111   : > { %v1501_v51 = vxor.u32 %v1357_v56, %v1213_v31  ;;  %v1358_v29 = vshrl.u32 %v1214_v59, 16  ;;  %v784_v0 = vmul.u32 2146121005, %v640_v16  ;;  %v3721_v22 = vmul.f32 1.1111112, %v1938_v58 }
 0x112   : > { %v1643_v20 = vshrl.u32 %v1499_v45, 8  ;;  %v1644_v23 = vshrl.u32 %v1500_v4, 8  ;;  %v1215_v53 = vmul.u32 2221647499, %v1071_v18  ;;  %v279_v24 = vmul.u32 768, %v248_v49 }
 0x113   : > { %v1645_v35 = vshrl.u32 %v1501_v51, 8  ;;  %v1502_v26 = vxor.u32 %v1358_v29, %v1214_v59  ;;  %v928_v30 = vshrl.u32 %v784_v0, 15  ;;  %v3725_v40 = vmul.f32 1.1111112, %v1939_v10  ;;  %v1941_v51 = vld [vmem:[%s3199_s8 + $0x200] sm:$0xff] }
 0x114   : > { %vm1787_vm6 = vcmp.ge.s32.totalorder %v1643_v20, 1677722  ;;  %vm1788_vm7 = vcmp.ge.s32.totalorder %v1644_v23, 1677722  ;;  %v1359_v46 = vshrl.u32 %v1215_v53, 16  ;;  %v353_v42 = vadd.s32 %v279_v24, %v3218_v3 }
 0x115   : > { %v2363_v34 = vsel %vm1787_vm6, %v3675_v28, 0.0  ;;  %v2364_v25 = vsel %vm1788_vm7, %v3682_v19, 0.0  ;;  %vm1789_vm8 = vcmp.ge.s32.totalorder %v1645_v35, 1677722  ;;  %v1646_v38 = vshrl.u32 %v1502_v26, 8  ;;  %v2080_v35 = vld [vmem:[%s3207_s26 + $0x1d8] sm:$0xff] }
 0x116   : > { %v2507_v21 = vadd.f32 %v2363_v34, %v2075_v47  ;;  %v2508_v43 = vadd.f32 %v2364_v25, %v2076_v60  ;;  %v2365_v32 = vsel %vm1789_vm8, %v3686_v48, 0.0  ;;  %v1503_v36 = vxor.u32 %v1359_v46, %v1215_v53  ;;  %v2079_v48 = vld [vmem:[%s3207_s26 + $0x1d0] sm:$0xff] }
 0x117   : > { %v2509_v11 = vadd.f32 %v2365_v32, %v2077_v27  ;;  %vm1790_vm9 = vcmp.ge.s32.totalorder %v1646_v38, 1677722  ;;  %v1072_v55 = vxor.u32 %v928_v30, %v784_v0  ;;  %v497_v61 = vshrl.u32 %v353_v42, 16 }
 0x118   : > { %2651 = vst [vmem:[%s3292_s19 + $0x1b0] sm:$0xff] %v2507_v21  ;;  %v2366_v28 = vsel %vm1790_vm9, %v3699_v41, 0.0  ;;  %v1647_v19 = vshrl.u32 %v1503_v36, 8  ;;  %v354_v50 = vadd.s32 %v279_v24, %v3223_v5  ;;  %v355_v14 = vadd.s32 %v279_v24, %v3226_v6 }
 0x119   : > { %2652 = vst [vmem:[%s3292_s19 + $0x1b8] sm:$0xff] %v2508_v43  ;;  %v2510_v52 = vadd.f32 %v2366_v28, %v2078_v37  ;;  %v1216_v13 = vmul.u32 2221647499, %v1072_v55  ;;  %v641_v54 = vxor.u32 %v497_v61, %v353_v42  ;;  %v356_v31 = vadd.s32 %v279_v24, %v3229_v7  ;;  %v1942_v55 = vld [vmem:[%s3199_s8 + $0x208] sm:$0xff] }
 0x11a   : > { %2653 = vst [vmem:[%s3292_s19 + $0x1c0] sm:$0xff] %v2509_v11  ;;  %vm1791_vm10 = vcmp.ge.s32.totalorder %v1647_v19, 1677722  ;;  %v498_v17 = vshrl.u32 %v354_v50, 16  ;;  %v499_v33 = vshrl.u32 %v355_v14, 16  ;;  %v357_v41 = vadd.s32 %v279_v24, %v3232_v8 }
 0x11b   : > { %2654 = vst [vmem:[%s3292_s19 + $0x1c8] sm:$0xff] %v2510_v52  ;;  %v2367_v39 = vsel %vm1791_vm10, %v3702_v63, 0.0  ;;  %v1360_v15 = vshrl.u32 %v1216_v13, 16  ;;  %v785_v57 = vmul.u32 2146121005, %v641_v54  ;;  %v500_v58 = vshrl.u32 %v356_v31, 16 }
 0x11c   : > { %v2511_v56 = vadd.f32 %v2367_v39, %v2079_v48  ;;  %v642_v59 = vxor.u32 %v498_v17, %v354_v50  ;;  %v643_v16 = vxor.u32 %v499_v33, %v355_v14  ;;  %v3745_v45 = vmul.f32 1.1111112, %v1940_v44 }
 0x11d   : > { %v1504_v4 = vxor.u32 %v1360_v15, %v1216_v13  ;;  %v929_v18 = vshrl.u32 %v785_v57, 15  ;;  %v644_v49 = vxor.u32 %v500_v58, %v356_v31  ;;  %v501_v10 = vshrl.u32 %v357_v41, 16  ;;  %v2081_v15 = vld [vmem:[%s3207_s26 + $0x1e0] sm:$0xff] }
 0x11e   : > { %2655 = vst [vmem:[%s3292_s19 + $0x1d0] sm:$0xff] %v2511_v56  ;;  %v786_v29 = vmul.u32 2146121005, %v642_v59  ;;  %v787_v0 = vmul.u32 2146121005, %v643_v16  ;;  %v358_v20 = vadd.s32 %v279_v24, %v3237_v12  ;;  %v224_v63 = vadd.s32 88, %v3214_v1 }
 0x11f   : > { %v1648_v23 = vshrl.u32 %v1504_v4, 8  ;;  %v1073_v53 = vxor.u32 %v929_v18, %v785_v57  ;;  %v788_v47 = vmul.u32 2146121005, %v644_v49  ;;  %v645_v60 = vxor.u32 %v501_v10, %v357_v41 }
 0x120   : > { %v930_v26 = vshrl.u32 %v786_v29, 15  ;;  %v931_v30 = vshrl.u32 %v787_v0, 15  ;;  %v3752_v27 = vmul.f32 1.1111112, %v1941_v51  ;;  %v502_v46 = vshrl.u32 %v358_v20, 16 }
 0x121   : > { %vm1792_vm11 = vcmp.ge.s32.totalorder %v1648_v23, 1677722  ;;  %v1217_v42 = vmul.u32 2221647499, %v1073_v53  ;;  %v932_v34 = vshrl.u32 %v788_v47, 15  ;;  %v249_v25 = vadd.s32 %v3216_v2, %v224_v63  ;;  %v2083_v63 = vld [vmem:[%s3207_s26 + $0x1f0] sm:$0xff] }
 0x122   : > { %v2368_v24 = vsel %vm1792_vm11, %v3712_v9, 0.0  ;;  %v1074_v38 = vxor.u32 %v930_v26, %v786_v29  ;;  %v1075_v21 = vxor.u32 %v931_v30, %v787_v0  ;;  %v789_v43 = vmul.u32 2146121005, %v645_v60  ;;  %v1943_v9 = vld [vmem:[%s3199_s8 + $0x210] sm:$0xff]  ;;  %v2084_v60 = vld [vmem:[%s3207_s26 + $0x1f8] sm:$0xff] }
 0x123   : > { %v2512_v32 = vadd.f32 %v2368_v24, %v2080_v35  ;;  %v1361_v37 = vshrl.u32 %v1217_v42, 16  ;;  %v1076_v36 = vxor.u32 %v932_v34, %v788_v47  ;;  %v646_v11 = vxor.u32 %v502_v46, %v358_v20  ;;  %v2082_v20 = vld [vmem:[%s3207_s26 + $0x1e8] sm:$0xff] }
 0x124   : > { %v1218_v61 = vmul.u32 2221647499, %v1074_v38  ;;  %v1219_v28 = vmul.u32 2221647499, %v1075_v21  ;;  %v933_v19 = vshrl.u32 %v789_v43, 15  ;;  %v3757_v50 = vmul.u32 768, %v249_v25 }
 0x125   : > { %2656 = vst [vmem:[%s3292_s19 + $0x1d8] sm:$0xff] %v2512_v32  ;;  %v1505_v14 = vxor.u32 %v1361_v37, %v1217_v42  ;;  %v1220_v52 = vmul.u32 2221647499, %v1076_v36  ;;  %v790_v48 = vmul.u32 2146121005, %v646_v11  ;;  %v1945_v11 = vld [vmem:[%s3199_s8 + $0x220] sm:$0xff] }
 0x126   : > { %v1362_v13 = vshrl.u32 %v1218_v61, 16  ;;  %v1363_v54 = vshrl.u32 %v1219_v28, 16  ;;  %v1077_v31 = vxor.u32 %v933_v19, %v789_v43  ;;  %v3761_v44 = vmul.f32 1.1111112, %v1942_v55  ;;  %v2085_v43 = vld [vmem:[%s3207_s26 + $0x200] sm:$0xff]  ;;  %v1946_v55 = vld [vmem:[%s3199_s8 + $0x228] sm:$0xff] }
 0x127   : > { %v1649_v17 = vshrl.u32 %v1505_v14, 8  ;;  %v1364_v33 = vshrl.u32 %v1220_v52, 16  ;;  %v934_v41 = vshrl.u32 %v790_v48, 15  ;;  %v359_v39 = vadd.s32 %v3757_v50, %v3218_v3  ;;  %v2086_v19 = vld [vmem:[%s3207_s26 + $0x208] sm:$0xff] }
 0x128   : > { %v1506_v57 = vxor.u32 %v1362_v13, %v1218_v61  ;;  %v1507_v58 = vxor.u32 %v1363_v54, %v1219_v28  ;;  %v1221_v56 = vmul.u32 2221647499, %v1077_v31  ;;  %v3766_v59 = vmul.f32 1.1111112, %v1943_v9  ;;  %v1947_v31 = vld [vmem:[%s3199_s8 + $0x230] sm:$0xff] }
 0x129   : > { %vm1793_vm12 = vcmp.ge.s32.totalorder %v1649_v17, 1677722  ;;  %v1508_v16 = vxor.u32 %v1364_v33, %v1220_v52  ;;  %v1078_v4 = vxor.u32 %v934_v41, %v790_v48  ;;  %v503_v18 = vshrl.u32 %v359_v39, 16 }
 0x12a   : > { %v2369_v49 = vsel %vm1793_vm12, %v3717_v62, 0.0  ;;  %v1650_v10 = vshrl.u32 %v1506_v57, 8  ;;  %v1651_v51 = vshrl.u32 %v1507_v58, 8  ;;  %v1365_v29 = vshrl.u32 %v1221_v56, 16  ;;  %v1944_v62 = vld [vmem:[%s3199_s8 + $0x218] sm:$0xff] }
 0x12b   : > { %v2513_v0 = vadd.f32 %v2369_v49, %v2081_v15  ;;  %v1652_v23 = vshrl.u32 %v1508_v16, 8  ;;  %v1222_v53 = vmul.u32 2221647499, %v1078_v4  ;;  %v647_v47 = vxor.u32 %v503_v18, %v359_v39  ;;  %v1948_v58 = vld [vmem:[%s3199_s8 + $0x238] sm:$0xff] }
 0x12c   : > { %vm1794_vm13 = vcmp.ge.s32.totalorder %v1650_v10, 1677722  ;;  %vm1795_vm14 = vcmp.ge.s32.totalorder %v1651_v51, 1677722  ;;  %v1509_v35 = vxor.u32 %v1365_v29, %v1221_v56  ;;  %v360_v26 = vadd.s32 %v3757_v50, %v3223_v5 }
 0x12d   : > { %2657 = vst [vmem:[%s3292_s19 + $0x1e0] sm:$0xff] %v2513_v0  ;;  %v2370_v30 = vsel %vm1794_vm13, %v3721_v22, 0.0  ;;  %v2371_v46 = vsel %vm1795_vm14, %v3725_v40, 0.0  ;;  %vm1796_vm15 = vcmp.ge.s32.totalorder %v1652_v23, 1677722  ;;  %v1366_v42 = vshrl.u32 %v1222_v53, 16 }
 0x12e   : > { %v2514_v34 = vadd.f32 %v2370_v30, %v2082_v20  ;;  %v2515_v25 = vadd.f32 %v2371_v46, %v2083_v63  ;;  %v2372_v24 = vsel %vm1796_vm15, %v3745_v45, 0.0  ;;  %v1653_v38 = vshrl.u32 %v1509_v35, 8  ;;  %v1949_v0 = vld [vmem:[%s3199_s8 + $0x240] sm:$0xff] }
 0x12f   : > { %v2516_v21 = vadd.f32 %v2372_v24, %v2084_v60  ;;  %v1510_v32 = vxor.u32 %v1366_v42, %v1222_v53  ;;  %v791_v37 = vmul.u32 2146121005, %v647_v47  ;;  %v504_v36 = vshrl.u32 %v360_v26, 16 }
 0x130   : > { %2658 = vst [vmem:[%s3292_s19 + $0x1e8] sm:$0xff] %v2514_v34  ;;  %vm1797_vm0 = vcmp.ge.s32.totalorder %v1653_v38, 1677722  ;;  %v3782_v22 = vmul.f32 1.1111112, %v1944_v62  ;;  %v361_v40 = vadd.s32 %v3757_v50, %v3226_v6  ;;  %v362_v45 = vadd.s32 %v3757_v50, %v3229_v7 }
 0x131   : > { %2659 = vst [vmem:[%s3292_s19 + $0x1f0] sm:$0xff] %v2515_v25  ;;  %v2373_v61 = vsel %vm1797_vm0, %v3752_v27, 0.0  ;;  %v1654_v28 = vshrl.u32 %v1510_v32, 8  ;;  %v935_v14 = vshrl.u32 %v791_v37, 15  ;;  %v648_v52 = vxor.u32 %v504_v36, %v360_v26  ;;  %v1950_v26 = vld [vmem:[%s3199_s8 + $0x248] sm:$0xff] }
 0x132   : > { %2660 = vst [vmem:[%s3292_s19 + $0x1f8] sm:$0xff] %v2516_v21  ;;  %v2517_v48 = vadd.f32 %v2373_v61, %v2085_v43  ;;  %v505_v9 = vshrl.u32 %v361_v40, 16  ;;  %v3793_v13 = vmul.f32 1.1111112, %v1945_v11  ;;  %v506_v54 = vshrl.u32 %v362_v45, 16 }
 0x133   : > { %vm1798_vm1 = vcmp.ge.s32.totalorder %v1654_v28, 1677722  ;;  %v1079_v17 = vxor.u32 %v935_v14, %v791_v37  ;;  %v792_v33 = vmul.u32 2146121005, %v648_v52  ;;  %v3796_v41 = vmul.f32 1.1111112, %v1946_v55 }
 0x134   : > { %2661 = vst [vmem:[%s3292_s19 + $0x200] sm:$0xff] %v2517_v48  ;;  %v2374_v27 = vsel %vm1798_vm1, %v3761_v44, 0.0  ;;  %v649_v39 = vxor.u32 %v505_v9, %v361_v40  ;;  %v650_v15 = vxor.u32 %v506_v54, %v362_v45  ;;  %v363_v57 = vadd.s32 %v3757_v50, %v3232_v8  ;;  %v2087_v37 = vld [vmem:[%s3207_s26 + $0x210] sm:$0xff] }
 0x135   : > { %v2518_v56 = vadd.f32 %v2374_v27, %v2086_v19  ;;  %v1223_v16 = vmul.u32 2221647499, %v1079_v17  ;;  %v936_v4 = vshrl.u32 %v792_v33, 15  ;;  %v3803_v18 = vmul.f32 1.1111112, %v1947_v31  ;;  %v2088_v17 = vld [vmem:[%s3207_s26 + $0x218] sm:$0xff] }
 0x136   : > { %v793_v49 = vmul.u32 2146121005, %v649_v39  ;;  %v794_v10 = vmul.u32 2146121005, %v650_v15  ;;  %v507_v51 = vshrl.u32 %v363_v57, 16  ;;  %v364_v29 = vadd.s32 %v3757_v50, %v3237_v12 }
 0x137   : > { %2662 = vst [vmem:[%s3292_s19 + $0x208] sm:$0xff] %v2518_v56  ;;  %v1367_v44 = vshrl.u32 %v1223_v16, 16  ;;  %v1080_v20 = vxor.u32 %v936_v4, %v792_v33  ;;  %v3809_v63 = vmul.f32 1.1111112, %v1948_v58  ;;  %v225_v23 = vadd.s32 96, %v3214_v1  ;;  %v2089_v4 = vld [vmem:[%s3207_s26 + $0x220] sm:$0xff] }
 0x138   : > { %v937_v53 = vshrl.u32 %v793_v49, 15  ;;  %v938_v47 = vshrl.u32 %v794_v10, 15  ;;  %v651_v60 = vxor.u32 %v507_v51, %v363_v57  ;;  %v508_v35 = vshrl.u32 %v364_v29, 16 }
 0x139   : > { %v1511_v62 = vxor.u32 %v1367_v44, %v1223_v16  ;;  %v1224_v30 = vmul.u32 2221647499, %v1080_v20  ;;  %v250_v46 = vadd.s32 %v3216_v2, %v225_v23  ;;  %v3814_v42 = vmul.f32 1.1111112, %v1949_v0 }
 0x13a   : > { %v1081_v50 = vxor.u32 %v937_v53, %v793_v49  ;;  %v1082_v34 = vxor.u32 %v938_v47, %v794_v10  ;;  %v795_v25 = vmul.u32 2146121005, %v651_v60  ;;  %v652_v24 = vxor.u32 %v508_v35, %v364_v29  ;;  %v2090_v29 = vld [vmem:[%s3207_s26 + $0x228] sm:$0xff]  ;;  %v1951_v47 = vld [vmem:[%s3199_s8 + $0x250] sm:$0xff] }
 0x13b   : > { %v1655_v38 = vshrl.u32 %v1511_v62, 8  ;;  %v1368_v21 = vshrl.u32 %v1224_v30, 16  ;;  %v3816_v43 = vmul.u32 768, %v250_v46  ;;  %v3818_v32 = vmul.f32 1.1111112, %v1950_v26 }
 0x13c   : > { %v1225_v36 = vmul.u32 2221647499, %v1081_v50  ;;  %v1226_v11 = vmul.u32 2221647499, %v1082_v34  ;;  %v939_v40 = vshrl.u32 %v795_v25, 15  ;;  %v2091_v34 = vld [vmem:[%s3207_s26 + $0x230] sm:$0xff] }
 0x13d   : > { %vm1799_vm2 = vcmp.ge.s32.totalorder %v1655_v38, 1677722  ;;  %v1512_v45 = vxor.u32 %v1368_v21, %v1224_v30  ;;  %v796_v55 = vmul.u32 2146121005, %v652_v24  ;;  %v365_v61 = vadd.s32 %v3816_v43, %v3218_v3 }
 0x13e   : > { %v2375_v28 = vsel %vm1799_vm2, %v3766_v59, 0.0  ;;  %v1369_v19 = vshrl.u32 %v1225_v36, 16  ;;  %v1370_v14 = vshrl.u32 %v1226_v11, 16  ;;  %v1083_v52 = vxor.u32 %v939_v40, %v795_v25 }
 0x13f   : > { %v2519_v48 = vadd.f32 %v2375_v28, %v2087_v37  ;;  %v1656_v9 = vshrl.u32 %v1512_v45, 8  ;;  %v940_v54 = vshrl.u32 %v796_v55, 15  ;;  %v509_v31 = vshrl.u32 %v365_v61, 16  ;;  %v1952_v37 = vld [vmem:[%s3199_s8 + $0x258] sm:$0xff] }
 0x140   : > { %v1513_v33 = vxor.u32 %v1369_v19, %v1225_v36  ;;  %v1514_v27 = vxor.u32 %v1370_v14, %v1226_v11  ;;  %v1227_v39 = vmul.u32 2221647499, %v1083_v52  ;;  %v366_v15 = vadd.s32 %v3816_v43, %v3223_v5  ;;  %v2092_v28 = vld [vmem:[%s3207_s26 + $0x238] sm:$0xff] }
 0x141   : > { %2663 = vst [vmem:[%s3292_s19 + $0x210] sm:$0xff] %v2519_v48  ;;  %vm1800_vm3 = vcmp.ge.s32.totalorder %v1656_v9, 1677722  ;;  %v1084_v57 = vxor.u32 %v940_v54, %v796_v55  ;;  %v653_v59 = vxor.u32 %v509_v31, %v365_v61  ;;  %v367_v58 = vadd.s32 %v3816_v43, %v3226_v6  ;;  %v1953_v48 = vld [vmem:[%s3199_s8 + $0x260] sm:$0xff] }
 0x142   : > { %v2376_v56 = vsel %vm1800_vm3, %v3782_v22, 0.0  ;;  %v1657_v16 = vshrl.u32 %v1513_v33, 8  ;;  %v1658_v49 = vshrl.u32 %v1514_v27, 8  ;;  %v1371_v10 = vshrl.u32 %v1227_v39, 16  ;;  %v1954_v27 = vld [vmem:[%s3199_s8 + $0x268] sm:$0xff] }
 0x143   : > { %v2520_v51 = vadd.f32 %v2376_v56, %v2088_v17  ;;  %v1228_v0 = vmul.u32 2221647499, %v1084_v57  ;;  %v797_v44 = vmul.u32 2146121005, %v653_v59  ;;  %v510_v20 = vshrl.u32 %v366_v15, 16 }
 0x144   : > { %vm1801_vm4 = vcmp.ge.s32.totalorder %v1657_v16, 1677722  ;;  %vm1802_vm5 = vcmp.ge.s32.totalorder %v1658_v49, 1677722  ;;  %v1515_v23 = vxor.u32 %v1371_v10, %v1227_v39  ;;  %v511_v53 = vshrl.u32 %v367_v58, 16  ;;  %v1955_v49 = vld [vmem:[%s3199_s8 + $0x270] sm:$0xff] }
 0x145   : > { %2664 = vst [vmem:[%s3292_s19 + $0x218] sm:$0xff] %v2520_v51  ;;  %v2377_v60 = vsel %vm1801_vm4, %v3793_v13, 0.0  ;;  %v2378_v22 = vsel %vm1802_vm5, %v3796_v41, 0.0  ;;  %v1372_v35 = vshrl.u32 %v1228_v0, 16  ;;  %v941_v26 = vshrl.u32 %v797_v44, 15 }
 0x146   : > { %v2521_v62 = vadd.f32 %v2377_v60, %v2089_v4  ;;  %v2522_v30 = vadd.f32 %v2378_v22, %v2090_v29  ;;  %v1659_v46 = vshrl.u32 %v1515_v23, 8  ;;  %v654_v50 = vxor.u32 %v510_v20, %v366_v15  ;;  %v2093_v29 = vld [vmem:[%s3207_s26 + $0x240] sm:$0xff] }
 0x147   : > { %v1516_v25 = vxor.u32 %v1372_v35, %v1228_v0  ;;  %v1085_v24 = vxor.u32 %v941_v26, %v797_v44  ;;  %v655_v38 = vxor.u32 %v511_v53, %v367_v58  ;;  %v3838_v21 = vmul.f32 1.1111112, %v1951_v47  ;;  %v1956_v53 = vld [vmem:[%s3199_s8 + $0x278] sm:$0xff] }
 0x148   : > { %2665 = vst [vmem:[%s3292_s19 + $0x220] sm:$0xff] %v2521_v62  ;;  %vm1803_vm6 = vcmp.ge.s32.totalorder %v1659_v46, 1677722  ;;  %v798_v13 = vmul.u32 2146121005, %v654_v50  ;;  %v368_v41 = vadd.s32 %v3816_v43, %v3229_v7  ;;  %v369_v36 = vadd.s32 %v3816_v43, %v3232_v8 }
 0x149   : > { %2666 = vst [vmem:[%s3292_s19 + $0x228] sm:$0xff] %v2522_v30  ;;  %v2379_v11 = vsel %vm1803_vm6, %v3803_v18, 0.0  ;;  %v1660_v40 = vshrl.u32 %v1516_v25, 8  ;;  %v1229_v45 = vmul.u32 2221647499, %v1085_v24  ;;  %v370_v55 = vadd.s32 %v3816_v43, %v3237_v12  ;;  %v1957_v24 = vld [vmem:[%s3199_s8 + $0x280] sm:$0xff] }
 0x14a   : > { %v2523_v61 = vadd.f32 %v2379_v11, %v2091_v34  ;;  %v942_v19 = vshrl.u32 %v798_v13, 15  ;;  %v799_v14 = vmul.u32 2146121005, %v655_v38  ;;  %v512_v52 = vshrl.u32 %v368_v41, 16 }
 0x14b   : > { %vm1804_vm7 = vcmp.ge.s32.totalorder %v1660_v40, 1677722  ;;  %v1373_v9 = vshrl.u32 %v1229_v45, 16  ;;  %v3852_v54 = vmul.f32 1.1111112, %v1952_v37  ;;  %v513_v31 = vshrl.u32 %v369_v36, 16 }
 0x14c   : > { %2667 = vst [vmem:[%s3292_s19 + $0x230] sm:$0xff] %v2523_v61  ;;  %v2380_v18 = vsel %vm1804_vm7, %v3809_v63, 0.0  ;;  %v1086_v17 = vxor.u32 %v942_v19, %v798_v13  ;;  %v943_v33 = vshrl.u32 %v799_v14, 15  ;;  %v656_v43 = vxor.u32 %v512_v52, %v368_v41  ;;  %v2095_v19 = vld [vmem:[%s3207_s26 + $0x250] sm:$0xff] }
 0x14d   : > { %v2524_v39 = vadd.f32 %v2380_v18, %v2092_v28  ;;  %v1517_v15 = vxor.u32 %v1373_v9, %v1229_v45  ;;  %v657_v57 = vxor.u32 %v513_v31, %v369_v36  ;;  %v3857_v59 = vmul.f32 1.1111112, %v1953_v48  ;;  %v2094_v36 = vld [vmem:[%s3207_s26 + $0x248] sm:$0xff] }
 0x14e   : > { %v1230_v58 = vmul.u32 2221647499, %v1086_v17  ;;  %v1087_v56 = vxor.u32 %v943_v33, %v799_v14  ;;  %v800_v16 = vmul.u32 2146121005, %v656_v43  ;;  %v514_v4 = vshrl.u32 %v370_v55, 16 }
 0x14f   : > { %2668 = vst [vmem:[%s3292_s19 + $0x238] sm:$0xff] %v2524_v39  ;;  %v1661_v10 = vshrl.u32 %v1517_v15, 8  ;;  %v801_v51 = vmul.u32 2146121005, %v657_v57  ;;  %v3861_v63 = vmul.f32 1.1111112, %v1954_v27 }
 0x150   : > { %v1374_v0 = vshrl.u32 %v1230_v58, 16  ;;  %v1231_v44 = vmul.u32 2221647499, %v1087_v56  ;;  %v944_v20 = vshrl.u32 %v800_v16, 15  ;;  %v658_v23 = vxor.u32 %v514_v4, %v370_v55  ;;  %v1958_v39 = vld [vmem:[%s3199_s8 + $0x288] sm:$0xff]  ;;  %v2096_v56 = vld [vmem:[%s3207_s26 + $0x258] sm:$0xff] }
 0x151   : > { %vm1805_vm8 = vcmp.ge.s32.totalorder %v1661_v10, 1677722  ;;  %v945_v47 = vshrl.u32 %v801_v51, 15  ;;  %v226_v60 = vadd.s32 104, %v3214_v1  ;;  %v3866_v22 = vmul.f32 1.1111112, %v1955_v49 }
 0x152   : > { %v2381_v35 = vsel %vm1805_vm8, %v3814_v42, 0.0  ;;  %v1518_v26 = vxor.u32 %v1374_v0, %v1230_v58  ;;  %v1375_v62 = vshrl.u32 %v1231_v44, 16  ;;  %v1088_v30 = vxor.u32 %v944_v20, %v800_v16  ;;  %v2097_v4 = vld [vmem:[%s3207_s26 + $0x260] sm:$0xff] }
 0x153   : > { %v2525_v46 = vadd.f32 %v2381_v35, %v2093_v29  ;;  %v1089_v50 = vxor.u32 %v945_v47, %v801_v51  ;;  %v802_v34 = vmul.u32 2146121005, %v658_v23  ;;  %v251_v25 = vadd.s32 %v3216_v2, %v226_v60 }
 0x154   : > { %v1662_v38 = vshrl.u32 %v1518_v26, 8  ;;  %v1519_v13 = vxor.u32 %v1375_v62, %v1231_v44  ;;  %v1232_v41 = vmul.u32 2221647499, %v1088_v30  ;;  %v3871_v37 = vmul.f32 1.1111112, %v1956_v53  ;;  %v1959_v53 = vld [vmem:[%s3199_s8 + $0x290] sm:$0xff] }
 0x155   : > { %2669 = vst [vmem:[%s3292_s19 + $0x240] sm:$0xff] %v2525_v46  ;;  %v1233_v11 = vmul.u32 2221647499, %v1089_v50  ;;  %v946_v40 = vshrl.u32 %v802_v34, 15  ;;  %v282_v42 = vmul.u32 768, %v251_v25  ;;  %v2098_v46 = vld [vmem:[%s3207_s26 + $0x268] sm:$0xff] }
 0x156   : > { %vm1806_vm9 = vcmp.ge.s32.totalorder %v1662_v38, 1677722  ;;  %v1663_v45 = vshrl.u32 %v1519_v13, 8  ;;  %v1376_v55 = vshrl.u32 %v1232_v41, 16  ;;  %v3875_v61 = vmul.f32 1.1111112, %v1957_v24 }
 0x157   : > { %v2382_v28 = vsel %vm1806_vm9, %v3818_v32, 0.0  ;;  %v1377_v14 = vshrl.u32 %v1233_v11, 16  ;;  %v1090_v52 = vxor.u32 %v946_v40, %v802_v34  ;;  %v371_v48 = vadd.s32 %v282_v42, %v3218_v3 }
 0x158   : > { %v2526_v9 = vadd.f32 %v2382_v28, %v2094_v36  ;;  %vm1807_vm10 = vcmp.ge.s32.totalorder %v1663_v45, 1677722  ;;  %v1520_v31 = vxor.u32 %v1376_v55, %v1232_v41  ;;  %v372_v18 = vadd.s32 %v282_v42, %v3223_v5  ;;  %v1960_v36 = vld [vmem:[%s3199_s8 + $0x298] sm:$0xff] }
 0x159   : > { %v2383_v17 = vsel %vm1807_vm10, %v3838_v21, 0.0  ;;  %v1521_v33 = vxor.u32 %v1377_v14, %v1233_v11  ;;  %v1234_v43 = vmul.u32 2221647499, %v1090_v52  ;;  %v515_v27 = vshrl.u32 %v371_v48, 16 }
 0x15a   : > { %2670 = vst [vmem:[%s3292_s19 + $0x248] sm:$0xff] %v2526_v9  ;;  %v2527_v32 = vadd.f32 %v2383_v17, %v2095_v19  ;;  %v1664_v15 = vshrl.u32 %v1520_v31, 8  ;;  %v516_v57 = vshrl.u32 %v372_v18, 16  ;;  %v373_v58 = vadd.s32 %v282_v42, %v3226_v6 }
 0x15b   : > { %v1665_v16 = vshrl.u32 %v1521_v33, 8  ;;  %v1378_v49 = vshrl.u32 %v1234_v43, 16  ;;  %v659_v10 = vxor.u32 %v515_v27, %v371_v48  ;;  %v374_v51 = vadd.s32 %v282_v42, %v3229_v7 }
 0x15c   : > { %2671 = vst [vmem:[%s3292_s19 + $0x250] sm:$0xff] %v2527_v32  ;;  %vm1808_vm11 = vcmp.ge.s32.totalorder %v1664_v15, 1677722  ;;  %v660_v21 = vxor.u32 %v516_v57, %v372_v18  ;;  %v517_v29 = vshrl.u32 %v373_v58, 16  ;;  %v3889_v0 = vmul.f32 1.1111112, %v1958_v39 }
 0x15d   : > { %v2384_v44 = vsel %vm1808_vm11, %v3852_v54, 0.0  ;;  %vm1809_vm12 = vcmp.ge.s32.totalorder %v1665_v16, 1677722  ;;  %v1522_v20 = vxor.u32 %v1378_v49, %v1234_v43  ;;  %v803_v23 = vmul.u32 2146121005, %v659_v10 }
 0x15e   : > { %v2528_v47 = vadd.f32 %v2384_v44, %v2096_v56  ;;  %v2385_v60 = vsel %vm1809_vm12, %v3857_v59, 0.0  ;;  %v804_v35 = vmul.u32 2146121005, %v660_v21  ;;  %v661_v26 = vxor.u32 %v517_v29, %v373_v58  ;;  %v1961_v56 = vld [vmem:[%s3199_s8 + $0x2a0] sm:$0xff] }
 0x15f   : > { %v2529_v62 = vadd.f32 %v2385_v60, %v2097_v4  ;;  %v1666_v30 = vshrl.u32 %v1522_v20, 8  ;;  %v947_v50 = vshrl.u32 %v803_v23, 15  ;;  %v518_v34 = vshrl.u32 %v374_v51, 16  ;;  %v2099_v20 = vld [vmem:[%s3207_s26 + $0x270] sm:$0xff] }
 0x160   : > { %2672 = vst [vmem:[%s3292_s19 + $0x258] sm:$0xff] %v2528_v47  ;;  %v948_v25 = vshrl.u32 %v804_v35, 15  ;;  %v805_v24 = vmul.u32 2146121005, %v661_v26  ;;  %v375_v54 = vadd.s32 %v282_v42, %v3232_v8  ;;  %v3897_v38 = vmul.f32 1.1111112, %v1959_v53 }
 0x161   : > { %2673 = vst [vmem:[%s3292_s19 + $0x260] sm:$0xff] %v2529_v62  ;;  %vm1810_vm13 = vcmp.ge.s32.totalorder %v1666_v30, 1677722  ;;  %v1091_v13 = vxor.u32 %v947_v50, %v803_v23  ;;  %v662_v59 = vxor.u32 %v518_v34, %v374_v51  ;;  %v376_v41 = vadd.s32 %v282_v42, %v3237_v12 }
 0x162   : > { %v2386_v11 = vsel %vm1810_vm13, %v3861_v63, 0.0  ;;  %v1092_v40 = vxor.u32 %v948_v25, %v804_v35  ;;  %v949_v45 = vshrl.u32 %v805_v24, 15  ;;  %v519_v55 = vshrl.u32 %v375_v54, 16  ;;  %v2100_v35 = vld [vmem:[%s3207_s26 + $0x278] sm:$0xff] }
 0x163   : > { %v2530_v28 = vadd.f32 %v2386_v11, %v2098_v46  ;;  %v1235_v19 = vmul.u32 2221647499, %v1091_v13  ;;  %v806_v14 = vmul.u32 2146121005, %v662_v59  ;;  %v520_v52 = vshrl.u32 %v376_v41, 16 }
 0x164   : > { %v1236_v48 = vmul.u32 2221647499, %v1092_v40  ;;  %v1093_v9 = vxor.u32 %v949_v45, %v805_v24  ;;  %v663_v31 = vxor.u32 %v519_v55, %v375_v54  ;;  %v3903_v18 = vmul.f32 1.1111112, %v1960_v36  ;;  %v2101_v54 = vld [vmem:[%s3207_s26 + $0x280] sm:$0xff]  ;;  %v1962_v40 = vld [vmem:[%s3199_s8 + $0x2a8] sm:$0xff] }
 0x165   : > { %2674 = vst [vmem:[%s3292_s19 + $0x268] sm:$0xff] %v2530_v28  ;;  %v1379_v17 = vshrl.u32 %v1235_v19, 16  ;;  %v950_v33 = vshrl.u32 %v806_v14, 15  ;;  %v664_v42 = vxor.u32 %v520_v52, %v376_v41  ;;  %v227_v43 = vadd.s32 112, %v3214_v1 }
 0x166   : > { %v1380_v63 = vshrl.u32 %v1236_v48, 16  ;;  %v1237_v27 = vmul.u32 2221647499, %v1093_v9  ;;  %v807_v39 = vmul.u32 2146121005, %v663_v31  ;;  %v3910_v10 = vadd.s32 120, %v3214_v1 }
 0x167   : > { %v1523_v32 = vxor.u32 %v1379_v17, %v1235_v19  ;;  %v1094_v15 = vxor.u32 %v950_v33, %v806_v14  ;;  %v808_v57 = vmul.u32 2146121005, %v664_v42  ;;  %v252_v58 = vadd.s32 %v3216_v2, %v227_v43  ;;  %v2102_v19 = vld [vmem:[%s3207_s26 + $0x288] sm:$0xff] }
 0x168   : > { %v1524_v16 = vxor.u32 %v1380_v63, %v1236_v48  ;;  %v1381_v4 = vshrl.u32 %v1237_v27, 16  ;;  %v951_v49 = vshrl.u32 %v807_v39, 15  ;;  %v3915_v60 = vmul.f32 1.1111112, %v1961_v56 }
 0x169   : > { %v1667_v51 = vshrl.u32 %v1523_v32, 8  ;;  %v1238_v21 = vmul.u32 2221647499, %v1094_v15  ;;  %v952_v29 = vshrl.u32 %v808_v57, 15  ;;  %v3912_v44 = vmul.u32 768, %v252_v58  ;;  %v2104_v15 = vld [vmem:[%s3207_s26 + $0x298] sm:$0xff] }
 0x16a   : > { %v1668_v23 = vshrl.u32 %v1524_v16, 8  ;;  %v1525_v53 = vxor.u32 %v1381_v4, %v1237_v27  ;;  %v1095_v47 = vxor.u32 %v951_v49, %v807_v39  ;;  %v3932_v17 = vmul.f32 1.1111112, %v1962_v40  ;;  %v2103_v39 = vld [vmem:[%s3207_s26 + $0x290] sm:$0xff]  ;;  %v1964_v49 = vld [vmem:[%s3199_s8 + $0x2b8] sm:$0xff] }
 0x16b   : > { %vm1811_vm14 = vcmp.ge.s32.totalorder %v1667_v51, 1677722  ;;  %v1382_v26 = vshrl.u32 %v1238_v21, 16  ;;  %v1096_v62 = vxor.u32 %v952_v29, %v808_v57  ;;  %v377_v30 = vadd.s32 %v3912_v44, %v3218_v3 }
 0x16c   : > { %v2387_v46 = vsel %vm1811_vm14, %v3866_v22, 0.0  ;;  %vm1812_vm15 = vcmp.ge.s32.totalorder %v1668_v23, 1677722  ;;  %v1669_v50 = vshrl.u32 %v1525_v53, 8  ;;  %v1239_v34 = vmul.u32 2221647499, %v1095_v47 }
 0x16d   : > { %v2531_v25 = vadd.f32 %v2387_v46, %v2099_v20  ;;  %v2388_v24 = vsel %vm1812_vm15, %v3871_v37, 0.0  ;;  %v1526_v13 = vxor.u32 %v1382_v26, %v1238_v21  ;;  %v1240_v59 = vmul.u32 2221647499, %v1096_v62  ;;  %v1965_v47 = vld [vmem:[%s3199_s8 + $0x2c0] sm:$0xff] }
 0x16e   : > { %v2532_v41 = vadd.f32 %v2388_v24, %v2100_v35  ;;  %vm1813_vm0 = vcmp.ge.s32.totalorder %v1669_v50, 1677722  ;;  %v1383_v36 = vshrl.u32 %v1239_v34, 16  ;;  %v521_v11 = vshrl.u32 %v377_v30, 16 }
 0x16f   : > { %2675 = vst [vmem:[%s3292_s19 + $0x270] sm:$0xff] %v2531_v25  ;;  %v2389_v22 = vsel %vm1813_vm0, %v3875_v61, 0.0  ;;  %v1670_v45 = vshrl.u32 %v1526_v13, 8  ;;  %v1384_v55 = vshrl.u32 %v1240_v59, 16  ;;  %v378_v28 = vadd.s32 %v3912_v44, %v3223_v5  ;;  %v1963_v61 = vld [vmem:[%s3199_s8 + $0x2b0] sm:$0xff] }
 0x170   : > { %2676 = vst [vmem:[%s3292_s19 + $0x278] sm:$0xff] %v2532_v41  ;;  %v2533_v37 = vadd.f32 %v2389_v22, %v2101_v54  ;;  %v1527_v14 = vxor.u32 %v1383_v36, %v1239_v34  ;;  %v665_v52 = vxor.u32 %v521_v11, %v377_v30  ;;  %v379_v48 = vadd.s32 %v3912_v44, %v3226_v6  ;;  %v1966_v36 = vld [vmem:[%s3199_s8 + $0x2c8] sm:$0xff] }
 0x171   : > { %vm1814_vm1 = vcmp.ge.s32.totalorder %v1670_v45, 1677722  ;;  %v1528_v9 = vxor.u32 %v1384_v55, %v1240_v59  ;;  %v522_v31 = vshrl.u32 %v378_v28, 16  ;;  %v380_v58 = vadd.s32 %v3912_v44, %v3229_v7 }
 0x172   : > { %2677 = vst [vmem:[%s3292_s19 + $0x280] sm:$0xff] %v2533_v37  ;;  %v2390_v33 = vsel %vm1814_vm1, %v3889_v0, 0.0  ;;  %v1671_v42 = vshrl.u32 %v1527_v14, 8  ;;  %v809_v43 = vmul.u32 2146121005, %v665_v52  ;;  %v523_v63 = vshrl.u32 %v379_v48, 16 }
 0x173   : > { %v2534_v27 = vadd.f32 %v2390_v33, %v2102_v19  ;;  %v1672_v32 = vshrl.u32 %v1528_v9, 8  ;;  %v666_v57 = vxor.u32 %v522_v31, %v378_v28  ;;  %v3941_v4 = vmul.f32 1.1111112, %v1963_v61  ;;  %v2105_v33 = vld [vmem:[%s3207_s26 + $0x2a0] sm:$0xff] }
 0x174   : > { %vm1815_vm2 = vcmp.ge.s32.totalorder %v1671_v42, 1677722  ;;  %v953_v56 = vshrl.u32 %v809_v43, 15  ;;  %v667_v16 = vxor.u32 %v523_v63, %v379_v48  ;;  %v381_v21 = vadd.s32 %v3912_v44, %v3232_v8 }
 0x175   : > { %2678 = vst [vmem:[%s3292_s19 + $0x288] sm:$0xff] %v2534_v27  ;;  %v2391_v0 = vsel %vm1815_vm2, %v3897_v38, 0.0  ;;  %vm1816_vm3 = vcmp.ge.s32.totalorder %v1672_v32, 1677722  ;;  %v810_v51 = vmul.u32 2146121005, %v666_v57  ;;  %v382_v34 = vadd.s32 %v3912_v44, %v3237_v12 }
 0x176   : > { %v2535_v29 = vadd.f32 %v2391_v0, %v2103_v39  ;;  %v2392_v20 = vsel %vm1816_vm3, %v3903_v18, 0.0  ;;  %v1097_v23 = vxor.u32 %v953_v56, %v809_v43  ;;  %v811_v53 = vmul.u32 2146121005, %v667_v16  ;;  %v2106_v0 = vld [vmem:[%s3207_s26 + $0x2a8] sm:$0xff] }
 0x177   : > { %v2536_v35 = vadd.f32 %v2392_v20, %v2104_v15  ;;  %v954_v26 = vshrl.u32 %v810_v51, 15  ;;  %v524_v62 = vshrl.u32 %v380_v58, 16  ;;  %v525_v30 = vshrl.u32 %v381_v21, 16 }
 0x178   : > { %2679 = vst [vmem:[%s3292_s19 + $0x290] sm:$0xff] %v2535_v29  ;;  %v1241_v46 = vmul.u32 2221647499, %v1097_v23  ;;  %v955_v38 = vshrl.u32 %v811_v53, 15  ;;  %v3951_v50 = vmul.f32 1.1111112, %v1964_v49  ;;  %v253_v11 = vadd.s32 %v3216_v2, %v3910_v10 }
 0x179   : > { %2680 = vst [vmem:[%s3292_s19 + $0x298] sm:$0xff] %v2536_v35  ;;  %v1098_v25 = vxor.u32 %v954_v26, %v810_v51  ;;  %v668_v24 = vxor.u32 %v524_v62, %v380_v58  ;;  %v669_v18 = vxor.u32 %v525_v30, %v381_v21  ;;  %v3956_v54 = vmul.f32 1.1111112, %v1965_v47  ;;  %v2107_v21 = vld [vmem:[%s3207_s26 + $0x2b0] sm:$0xff] }
 0x17a   : > { %v1385_v13 = vshrl.u32 %v1241_v46, 16  ;;  %v1099_v59 = vxor.u32 %v955_v38, %v811_v53  ;;  %v526_v41 = vshrl.u32 %v382_v34, 16  ;;  %v3961_v37 = vmul.u32 768, %v253_v11  ;;  %v1967_v47 = vld [vmem:[%s3199_s8 + $0x2d0] sm:$0xff] }
 0x17b   : > { %v1242_v40 = vmul.u32 2221647499, %v1098_v25  ;;  %v812_v22 = vmul.u32 2146121005, %v668_v24  ;;  %v813_v45 = vmul.u32 2146121005, %v669_v18 }
 0x17c   : > { %v1529_v55 = vxor.u32 %v1385_v13, %v1241_v46  ;;  %v1243_v28 = vmul.u32 2221647499, %v1099_v59  ;;  %v670_v44 = vxor.u32 %v526_v41, %v382_v34  ;;  %v3963_v48 = vmul.f32 1.1111112, %v1966_v36  ;;  %v1968_v25 = vld [vmem:[%s3199_s8 + $0x2d8] sm:$0xff]  ;;  %v2109_v13 = vld [vmem:[%s3207_s26 + $0x2c0] sm:$0xff] }
 0x17d   : > { %v1386_v19 = vshrl.u32 %v1242_v40, 16  ;;  %v956_v14 = vshrl.u32 %v812_v22, 15  ;;  %v957_v52 = vshrl.u32 %v813_v45, 15  ;;  %v383_v10 = vadd.s32 %v3961_v37, %v3218_v3  ;;  %v2108_v18 = vld [vmem:[%s3207_s26 + $0x2b8] sm:$0xff] }
 0x17e   : > { %v1673_v9 = vshrl.u32 %v1529_v55, 8  ;;  %v1387_v31 = vshrl.u32 %v1243_v28, 16  ;;  %v814_v61 = vmul.u32 2146121005, %v670_v44  ;;  %v384_v27 = vadd.s32 %v3961_v37, %v3223_v5 }
 0x17f   : > { %v1530_v42 = vxor.u32 %v1386_v19, %v1242_v40  ;;  %v1100_v43 = vxor.u32 %v956_v14, %v812_v22  ;;  %v1101_v63 = vxor.u32 %v957_v52, %v813_v45  ;;  %v527_v15 = vshrl.u32 %v383_v10, 16 }
 0x180   : > { %vm1817_vm4 = vcmp.ge.s32.totalorder %v1673_v9, 1677722  ;;  %v1531_v39 = vxor.u32 %v1387_v31, %v1243_v28  ;;  %v958_v32 = vshrl.u32 %v814_v61, 15  ;;  %v528_v35 = vshrl.u32 %v384_v27, 16 }
 0x181   : > { %v2393_v57 = vsel %vm1817_vm4, %v3915_v60, 0.0  ;;  %v1674_v58 = vshrl.u32 %v1530_v42, 8  ;;  %v1244_v56 = vmul.u32 2221647499, %v1100_v43  ;;  %v1245_v16 = vmul.u32 2221647499, %v1101_v63 }
 0x182   : > { %v2537_v49 = vadd.f32 %v2393_v57, %v2105_v33  ;;  %v1675_v51 = vshrl.u32 %v1531_v39, 8  ;;  %v1102_v29 = vxor.u32 %v958_v32, %v814_v61  ;;  %v671_v20 = vxor.u32 %v527_v15, %v383_v10  ;;  %v1969_v61 = vld [vmem:[%s3199_s8 + $0x2e0] sm:$0xff]  ;;  %v2110_v42 = vld [vmem:[%s3207_s26 + $0x2c8] sm:$0xff] }
 0x183   : > { %vm1818_vm5 = vcmp.ge.s32.totalorder %v1674_v58, 1677722  ;;  %v1388_v23 = vshrl.u32 %v1244_v56, 16  ;;  %v1389_v53 = vshrl.u32 %v1245_v16, 16  ;;  %v385_v62 = vadd.s32 %v3961_v37, %v3226_v6  ;;  %v1970_v32 = vld [vmem:[%s3199_s8 + $0x2e8] sm:$0xff] }
 0x184   : > { %2681 = vst [vmem:[%s3292_s19 + $0x2a0] sm:$0xff] %v2537_v49  ;;  %v2394_v60 = vsel %vm1818_vm5, %v3932_v17, 0.0  ;;  %vm1819_vm6 = vcmp.ge.s32.totalorder %v1675_v51, 1677722  ;;  %v1246_v26 = vmul.u32 2221647499, %v1102_v29  ;;  %v672_v36 = vxor.u32 %v528_v35, %v384_v27 }
 0x185   : > { %v2538_v30 = vadd.f32 %v2394_v60, %v2106_v0  ;;  %v2395_v46 = vsel %vm1819_vm6, %v3941_v4, 0.0  ;;  %v1532_v38 = vxor.u32 %v1388_v23, %v1244_v56  ;;  %v1533_v34 = vxor.u32 %v1389_v53, %v1245_v16  ;;  %v1971_v56 = vld [vmem:[%s3199_s8 + $0x2f0] sm:$0xff] }
 0x186   : > { %v2539_v24 = vadd.f32 %v2395_v46, %v2107_v21  ;;  %v1390_v59 = vshrl.u32 %v1246_v26, 16  ;;  %v815_v41 = vmul.u32 2146121005, %v671_v20  ;;  %v3983_v40 = vmul.f32 1.1111112, %v1967_v47 }
 0x187   : > { %2682 = vst [vmem:[%s3292_s19 + $0x2a8] sm:$0xff] %v2538_v30  ;;  %v1676_v17 = vshrl.u32 %v1532_v38, 8  ;;  %v1677_v11 = vshrl.u32 %v1533_v34, 8  ;;  %v529_v22 = vshrl.u32 %v385_v62, 16  ;;  %v816_v55 = vmul.u32 2146121005, %v672_v36 }
 0x188   : > { %2683 = vst [vmem:[%s3292_s19 + $0x2b0] sm:$0xff] %v2539_v24  ;;  %v1534_v45 = vxor.u32 %v1390_v59, %v1246_v26  ;;  %v959_v4 = vshrl.u32 %v815_v41, 15  ;;  %v3986_v28 = vmul.f32 1.1111112, %v1968_v25  ;;  %v386_v19 = vadd.s32 %v3961_v37, %v3229_v7  ;;  %v1973_v38 = vld [vmem:[%s3199_s8 + $0x300] sm:$0xff] }
 0x189   : > { %vm1820_vm7 = vcmp.ge.s32.totalorder %v1676_v17, 1677722  ;;  %vm1821_vm8 = vcmp.ge.s32.totalorder %v1677_v11, 1677722  ;;  %v673_v44 = vxor.u32 %v529_v22, %v385_v62  ;;  %v960_v43 = vshrl.u32 %v816_v55, 15 }
 0x18a   : > { %v2396_v14 = vsel %vm1820_vm7, %v3951_v50, 0.0  ;;  %v2397_v52 = vsel %vm1821_vm8, %v3956_v54, 0.0  ;;  %v1678_v9 = vshrl.u32 %v1534_v45, 8  ;;  %v1103_v31 = vxor.u32 %v959_v4, %v815_v41  ;;  %v1974_v45 = vld [vmem:[%s3199_s8 + $0x308] sm:$0xff] }
 0x18b   : > { %v2540_v10 = vadd.f32 %v2396_v14, %v2108_v18  ;;  %v2541_v33 = vadd.f32 %v2397_v52, %v2109_v13  ;;  %v817_v63 = vmul.u32 2146121005, %v673_v44  ;;  %v530_v39 = vshrl.u32 %v386_v19, 16  ;;  %v2112_v52 = vld [vmem:[%s3207_s26 + $0x2d8] sm:$0xff] }
 0x18c   : > { %vm1822_vm9 = vcmp.ge.s32.totalorder %v1678_v9, 1677722  ;;  %v1247_v27 = vmul.u32 2221647499, %v1103_v31  ;;  %v387_v15 = vadd.s32 %v3961_v37, %v3232_v8  ;;  %v1104_v54 = vxor.u32 %v960_v43, %v816_v55 }
 0x18d   : > { %2684 = vst [vmem:[%s3292_s19 + $0x2b8] sm:$0xff] %v2540_v10  ;;  %v2398_v50 = vsel %vm1822_vm9, %v3963_v48, 0.0  ;;  %v961_v57 = vshrl.u32 %v817_v63, 15  ;;  %v3999_v58 = vmul.f32 1.1111112, %v1969_v61  ;;  %v674_v0 = vxor.u32 %v530_v39, %v386_v19  ;;  %v1972_v48 = vld [vmem:[%s3199_s8 + $0x2f8] sm:$0xff] }
 0x18e   : > { %2685 = vst [vmem:[%s3292_s19 + $0x2c0] sm:$0xff] %v2541_v33  ;;  %v2542_v16 = vadd.f32 %v2398_v50, %v2110_v42  ;;  %v1391_v49 = vshrl.u32 %v1247_v27, 16  ;;  %v531_v51 = vshrl.u32 %v387_v15, 16  ;;  %v1248_v21 = vmul.u32 2221647499, %v1104_v54 }
 0x18f   : > { %v1105_v29 = vxor.u32 %v961_v57, %v817_v63  ;;  %v4003_v20 = vmul.f32 1.1111112, %v1970_v32  ;;  %v388_v23 = vadd.s32 %v3961_v37, %v3237_v12  ;;  %v818_v47 = vmul.u32 2146121005, %v674_v0  ;;  %v2111_v37 = vld [vmem:[%s3207_s26 + $0x2d0] sm:$0xff] }
 0x190   : > { %2686 = vst [vmem:[%s3292_s19 + $0x2c8] sm:$0xff] %v2542_v16  ;;  %v1535_v53 = vxor.u32 %v1391_v49, %v1247_v27  ;;  %v675_v35 = vxor.u32 %v531_v51, %v387_v15  ;;  %v4009_v60 = vmul.f32 1.1111112, %v1971_v56  ;;  %v1392_v26 = vshrl.u32 %v1248_v21, 16 }
 0x191   : > { %v1249_v62 = vmul.u32 2221647499, %v1105_v29  ;;  %v532_v30 = vshrl.u32 %v388_v23, 16  ;;  %v229_v46 = vadd.s32 128, %v3214_v1  ;;  %v962_v25 = vshrl.u32 %v818_v47, 15 }
 0x192   : > { %v1679_v34 = vshrl.u32 %v1535_v53, 8  ;;  %v819_v24 = vmul.u32 2146121005, %v675_v35  ;;  %v4013_v18 = vmul.f32 1.1111112, %v1972_v48  ;;  %v1536_v13 = vxor.u32 %v1392_v26, %v1248_v21 }
 0x193   : > { %v1393_v59 = vshrl.u32 %v1249_v62, 16  ;;  %v676_v41 = vxor.u32 %v532_v30, %v388_v23  ;;  %v254_v36 = vadd.s32 %v3216_v2, %v229_v46  ;;  %v1106_v17 = vxor.u32 %v962_v25, %v818_v47  ;;  %v2115_v25 = vld [vmem:[%s3207_s26 + $0x2f0] sm:$0xff] }
 0x194   : > { %vm1823_vm10 = vcmp.ge.s32.totalorder %v1679_v34, 1677722  ;;  %v963_v11 = vshrl.u32 %v819_v24, 15  ;;  %v4017_v22 = vmul.f32 1.1111112, %v1973_v38  ;;  %v1680_v55 = vshrl.u32 %v1536_v13, 8 }
 0x195   : > { %v2399_v4 = vsel %vm1823_vm10, %v3983_v40, 0.0  ;;  %v1537_v44 = vxor.u32 %v1393_v59, %v1249_v62  ;;  %v820_v19 = vmul.u32 2146121005, %v676_v41  ;;  %v1250_v9 = vmul.u32 2221647499, %v1106_v17  ;;  %v2113_v40 = vld [vmem:[%s3207_s26 + $0x2e0] sm:$0xff] }
 0x196   : > { %v2543_v14 = vadd.f32 %v2399_v4, %v2111_v37  ;;  %v1107_v31 = vxor.u32 %v963_v11, %v819_v24  ;;  %v4022_v61 = vmul.u32 768, %v254_v36  ;;  %vm1824_vm11 = vcmp.ge.s32.totalorder %v1680_v55, 1677722  ;;  %v1976_v17 = vld [vmem:[%s3199_s8 + $0x318] sm:$0xff] }
 0x197   : > { %v1681_v10 = vshrl.u32 %v1537_v44, 8  ;;  %v964_v33 = vshrl.u32 %v820_v19, 15  ;;  %v4024_v42 = vmul.f32 1.1111112, %v1974_v45  ;;  %v2400_v43 = vsel %vm1824_vm11, %v3986_v28, 0.0  ;;  %v1975_v28 = vld [vmem:[%s3199_s8 + $0x310] sm:$0xff] }
 0x198   : > { %2687 = vst [vmem:[%s3292_s19 + $0x2d0] sm:$0xff] %v2543_v14  ;;  %v1394_v63 = vshrl.u32 %v1250_v9, 16  ;;  %v1251_v27 = vmul.u32 2221647499, %v1107_v31  ;;  %v389_v39 = vadd.s32 %v4022_v61, %v3218_v3  ;;  %v2544_v32 = vadd.f32 %v2400_v43, %v2112_v52 }
 0x199   : > { %vm1825_vm12 = vcmp.ge.s32.totalorder %v1681_v10, 1677722  ;;  %v1108_v15 = vxor.u32 %v964_v33, %v820_v19  ;;  %v390_v50 = vadd.s32 %v4022_v61, %v3223_v5  ;;  %v391_v21 = vadd.s32 %v4022_v61, %v3226_v6  ;;  %v1977_v33 = vld [vmem:[%s3199_s8 + $0x320] sm:$0xff] }
 0x19a   : > { %v2401_v54 = vsel %vm1825_vm12, %v3999_v58, 0.0  ;;  %v1538_v57 = vxor.u32 %v1394_v63, %v1250_v9  ;;  %v1395_v56 = vshrl.u32 %v1251_v27, 16  ;;  %v533_v16 = vshrl.u32 %v389_v39, 16  ;;  %2688 = vst [vmem:[%s3292_s19 + $0x2d8] sm:$0xff] %v2544_v32  ;;  %v2114_v58 = vld [vmem:[%s3207_s26 + $0x2e8] sm:$0xff] }
 0x19b   : > { %v2545_v49 = vadd.f32 %v2401_v54, %v2113_v40  ;;  %v1252_v0 = vmul.u32 2221647499, %v1108_v15  ;;  %v534_v51 = vshrl.u32 %v390_v50, 16  ;;  %v392_v53 = vadd.s32 %v4022_v61, %v3229_v7 }
 0x19c   : > { %v1682_v29 = vshrl.u32 %v1538_v57, 8  ;;  %v1539_v23 = vxor.u32 %v1395_v56, %v1251_v27  ;;  %v677_v48 = vxor.u32 %v533_v16, %v389_v39  ;;  %v535_v26 = vshrl.u32 %v391_v21, 16 }
 0x19d   : > { %2689 = vst [vmem:[%s3292_s19 + $0x2e0] sm:$0xff] %v2545_v49  ;;  %v1396_v47 = vshrl.u32 %v1252_v0, 16  ;;  %v678_v35 = vxor.u32 %v534_v51, %v390_v50  ;;  %v4042_v62 = vmul.f32 1.1111112, %v1975_v28  ;;  %v536_v38 = vshrl.u32 %v392_v53, 16  ;;  %v1978_v50 = vld [vmem:[%s3199_s8 + $0x328] sm:$0xff] }
 0x19e   : > { %vm1826_vm13 = vcmp.ge.s32.totalorder %v1682_v29, 1677722  ;;  %v1683_v30 = vshrl.u32 %v1539_v23, 8  ;;  %v821_v46 = vmul.u32 2146121005, %v677_v48  ;;  %v679_v13 = vxor.u32 %v535_v26, %v391_v21  ;;  %v1979_v28 = vld [vmem:[%s3199_s8 + $0x330] sm:$0xff] }
 0x19f   : > { %v2402_v34 = vsel %vm1826_vm13, %v4003_v20, 0.0  ;;  %v1540_v24 = vxor.u32 %v1396_v47, %v1252_v0  ;;  %v822_v37 = vmul.u32 2146121005, %v678_v35  ;;  %v680_v36 = vxor.u32 %v536_v38, %v392_v53  ;;  %v2116_v20 = vld [vmem:[%s3207_s26 + $0x2f8] sm:$0xff] }
 0x1a0   : > { %v2546_v59 = vadd.f32 %v2402_v34, %v2114_v58  ;;  %vm1827_vm14 = vcmp.ge.s32.totalorder %v1683_v30, 1677722  ;;  %v965_v41 = vshrl.u32 %v821_v46, 15  ;;  %v823_v55 = vmul.u32 2146121005, %v679_v13  ;;  %v1980_v35 = vld [vmem:[%s3199_s8 + $0x338] sm:$0xff] }
 0x1a1   : > { %v2403_v11 = vsel %vm1827_vm14, %v4009_v60, 0.0  ;;  %v1684_v45 = vshrl.u32 %v1540_v24, 8  ;;  %v966_v4 = vshrl.u32 %v822_v37, 15  ;;  %v824_v14 = vmul.u32 2146121005, %v680_v36  ;;  %v2117_v34 = vld [vmem:[%s3207_s26 + $0x300] sm:$0xff] }
 0x1a2   : > { %2690 = vst [vmem:[%s3292_s19 + $0x2e8] sm:$0xff] %v2546_v59  ;;  %v2547_v44 = vadd.f32 %v2403_v11, %v2115_v25  ;;  %v1109_v19 = vxor.u32 %v965_v41, %v821_v46  ;;  %v393_v52 = vadd.s32 %v4022_v61, %v3232_v8  ;;  %v967_v31 = vshrl.u32 %v823_v55, 15  ;;  %v2118_v59 = vld [vmem:[%s3207_s26 + $0x308] sm:$0xff] }
 0x1a3   : > { %vm1828_vm15 = vcmp.ge.s32.totalorder %v1684_v45, 1677722  ;;  %v1110_v9 = vxor.u32 %v966_v4, %v822_v37  ;;  %v4052_v10 = vmul.f32 1.1111112, %v1976_v17  ;;  %v968_v40 = vshrl.u32 %v824_v14, 15 }
 0x1a4   : > { %2691 = vst [vmem:[%s3292_s19 + $0x2f0] sm:$0xff] %v2547_v44  ;;  %v2404_v60 = vsel %vm1828_vm15, %v4013_v18, 0.0  ;;  %v1253_v43 = vmul.u32 2221647499, %v1109_v19  ;;  %v537_v63 = vshrl.u32 %v393_v52, 16  ;;  %v1111_v32 = vxor.u32 %v967_v31, %v823_v55 }
 0x1a5   : > { %v2548_v27 = vadd.f32 %v2404_v60, %v2116_v20  ;;  %v1254_v39 = vmul.u32 2221647499, %v1110_v9  ;;  %v394_v15 = vadd.s32 %v4022_v61, %v3237_v12  ;;  %v1112_v57 = vxor.u32 %v968_v40, %v824_v14  ;;  %v2119_v20 = vld [vmem:[%s3207_s26 + $0x310] sm:$0xff]  ;;  %v2120_v9 = vld [vmem:[%s3207_s26 + $0x318] sm:$0xff] }
 0x1a6   : > { %v1397_v54 = vshrl.u32 %v1253_v43, 16  ;;  %v681_v56 = vxor.u32 %v537_v63, %v393_v52  ;;  %v4060_v16 = vmul.f32 1.1111112, %v1977_v33  ;;  %v1255_v18 = vmul.u32 2221647499, %v1111_v32 }
 0x1a7   : > { %2692 = vst [vmem:[%s3292_s19 + $0x2f8] sm:$0xff] %v2548_v27  ;;  %v1398_v49 = vshrl.u32 %v1254_v39, 16  ;;  %v538_v0 = vshrl.u32 %v394_v15, 16  ;;  %v230_v51 = vadd.s32 136, %v3214_v1  ;;  %v1256_v29 = vmul.u32 2221647499, %v1112_v57 }
 0x1a8   : > { %v1541_v21 = vxor.u32 %v1397_v54, %v1253_v43  ;;  %v825_v23 = vmul.u32 2146121005, %v681_v56  ;;  %v4065_v48 = vmul.f32 1.1111112, %v1978_v50  ;;  %v1399_v53 = vshrl.u32 %v1255_v18, 16  ;;  %v1981_v43 = vld [vmem:[%s3199_s8 + $0x340] sm:$0xff] }
 0x1a9   : > { %v1542_v61 = vxor.u32 %v1398_v49, %v1254_v39  ;;  %v682_v58 = vxor.u32 %v538_v0, %v394_v15  ;;  %v255_v47 = vadd.s32 %v3216_v2, %v230_v51  ;;  %v1400_v30 = vshrl.u32 %v1256_v29, 16  ;;  %v1982_v54 = vld [vmem:[%s3199_s8 + $0x348] sm:$0xff] }
 0x1aa   : > { %v1685_v26 = vshrl.u32 %v1541_v21, 8  ;;  %v969_v46 = vshrl.u32 %v825_v23, 15  ;;  %v4069_v38 = vmul.f32 1.1111112, %v1979_v28  ;;  %v1543_v24 = vxor.u32 %v1399_v53, %v1255_v18  ;;  %v2121_v21 = vld [vmem:[%s3207_s26 + $0x320] sm:$0xff] }
 0x1ab   : > { %v1686_v25 = vshrl.u32 %v1542_v61, 8  ;;  %v826_v37 = vmul.u32 2146121005, %v682_v58  ;;  %v4072_v13 = vmul.u32 768, %v255_v47  ;;  %v1544_v41 = vxor.u32 %v1400_v30, %v1256_v29 }
 0x1ac   : > { %vm1829_vm0 = vcmp.ge.s32.totalorder %v1685_v26, 1677722  ;;  %v1113_v36 = vxor.u32 %v969_v46, %v825_v23  ;;  %v4075_v17 = vmul.f32 1.1111112, %v1980_v35  ;;  %v1687_v45 = vshrl.u32 %v1543_v24, 8  ;;  %v2122_v24 = vld [vmem:[%s3207_s26 + $0x328] sm:$0xff] }
 0x1ad   : > { %v2405_v11 = vsel %vm1829_vm0, %v4017_v22, 0.0  ;;  %vm1830_vm1 = vcmp.ge.s32.totalorder %v1686_v25, 1677722  ;;  %v970_v4 = vshrl.u32 %v826_v37, 15  ;;  %v1688_v19 = vshrl.u32 %v1544_v41, 8 }
 0x1ae   : > { %v2549_v55 = vadd.f32 %v2405_v11, %v2117_v34  ;;  %v2406_v44 = vsel %vm1830_vm1, %v4024_v42, 0.0  ;;  %v1257_v14 = vmul.u32 2221647499, %v1113_v36  ;;  %vm1831_vm2 = vcmp.ge.s32.totalorder %v1687_v45, 1677722  ;;  %v1983_v45 = vld [vmem:[%s3199_s8 + $0x350] sm:$0xff] }
 0x1af   : > { %v2550_v52 = vadd.f32 %v2406_v44, %v2118_v59  ;;  %v1114_v31 = vxor.u32 %v970_v4, %v826_v37  ;;  %v395_v33 = vadd.s32 %v4072_v13, %v3218_v3  ;;  %v2407_v22 = vsel %vm1831_vm2, %v4042_v62, 0.0 }
 0x1b0   : > { %2693 = vst [vmem:[%s3292_s19 + $0x300] sm:$0xff] %v2549_v55  ;;  %vm1832_vm3 = vcmp.ge.s32.totalorder %v1688_v19, 1677722  ;;  %v1401_v60 = vshrl.u32 %v1257_v14, 16  ;;  %v396_v42 = vadd.s32 %v4072_v13, %v3223_v5  ;;  %v2551_v40 = vadd.f32 %v2407_v22, %v2119_v20 }
 0x1b1   : > { %2694 = vst [vmem:[%s3292_s19 + $0x308] sm:$0xff] %v2550_v52  ;;  %v2408_v63 = vsel %vm1832_vm3, %v4052_v10, 0.0  ;;  %v1258_v27 = vmul.u32 2221647499, %v1114_v31  ;;  %v539_v39 = vshrl.u32 %v395_v33, 16  ;;  %v397_v62 = vadd.s32 %v4072_v13, %v3226_v6  ;;  %v1984_v31 = vld [vmem:[%s3199_s8 + $0x358] sm:$0xff] }
 0x1b2   : > { %v2552_v32 = vadd.f32 %v2408_v63, %v2120_v9  ;;  %v1545_v15 = vxor.u32 %v1401_v60, %v1257_v14  ;;  %v540_v50 = vshrl.u32 %v396_v42, 16  ;;  %2695 = vst [vmem:[%s3292_s19 + $0x310] sm:$0xff] %v2551_v40  ;;  %v4094_v28 = vmul.f32 1.1111112, %v1981_v43  ;;  %v1985_v63 = vld [vmem:[%s3199_s8 + $0x360] sm:$0xff] }
 0x1b3   : > { %v1402_v57 = vshrl.u32 %v1258_v27, 16  ;;  %v683_v56 = vxor.u32 %v539_v39, %v395_v33  ;;  %v398_v49 = vadd.s32 %v4072_v13, %v3229_v7  ;;  %v541_v0 = vshrl.u32 %v397_v62, 16 }
 0x1b4   : > { %2696 = vst [vmem:[%s3292_s19 + $0x318] sm:$0xff] %v2552_v32  ;;  %v1689_v10 = vshrl.u32 %v1545_v15, 8  ;;  %v684_v18 = vxor.u32 %v540_v50, %v396_v42  ;;  %v399_v51 = vadd.s32 %v4072_v13, %v3232_v8  ;;  %v4102_v53 = vmul.f32 1.1111112, %v1982_v54 }
 0x1b5   : > { %v1546_v29 = vxor.u32 %v1402_v57, %v1258_v27  ;;  %v827_v23 = vmul.u32 2146121005, %v683_v56  ;;  %v542_v61 = vshrl.u32 %v398_v49, 16  ;;  %v685_v47 = vxor.u32 %v541_v0, %v397_v62  ;;  %v1986_v56 = vld [vmem:[%s3199_s8 + $0x368] sm:$0xff] }
 0x1b6   : > { %vm1833_vm4 = vcmp.ge.s32.totalorder %v1689_v10, 1677722  ;;  %v828_v58 = vmul.u32 2146121005, %v684_v18  ;;  %v543_v35 = vshrl.u32 %v399_v51, 16  ;;  %v400_v4 = vadd.s32 %v4072_v13, %v3237_v12 }
 0x1b7   : > { %v2409_v26 = vsel %vm1833_vm4, %v4060_v16, 0.0  ;;  %v1690_v30 = vshrl.u32 %v1546_v29, 8  ;;  %v971_v46 = vshrl.u32 %v827_v23, 15  ;;  %v686_v34 = vxor.u32 %v542_v61, %v398_v49  ;;  %v2123_v61 = vld [vmem:[%s3207_s26 + $0x330] sm:$0xff] }
 0x1b8   : > { %v2553_v25 = vadd.f32 %v2409_v26, %v2121_v21  ;;  %v972_v37 = vshrl.u32 %v828_v58, 15  ;;  %v829_v59 = vmul.u32 2146121005, %v685_v47  ;;  %v687_v41 = vxor.u32 %v543_v35, %v399_v51 }
 0x1b9   : > { %vm1834_vm5 = vcmp.ge.s32.totalorder %v1690_v30, 1677722  ;;  %v1115_v36 = vxor.u32 %v971_v46, %v827_v23  ;;  %v830_v11 = vmul.u32 2146121005, %v686_v34  ;;  %v544_v9 = vshrl.u32 %v400_v4, 16  ;;  %v2124_v30 = vld [vmem:[%s3207_s26 + $0x338] sm:$0xff] }
 0x1ba   : > { %2697 = vst [vmem:[%s3292_s19 + $0x320] sm:$0xff] %v2553_v25  ;;  %v2410_v16 = vsel %vm1834_vm5, %v4065_v48, 0.0  ;;  %v1116_v55 = vxor.u32 %v972_v37, %v828_v58  ;;  %v973_v44 = vshrl.u32 %v829_v59, 15  ;;  %v831_v20 = vmul.u32 2146121005, %v687_v41 }
 0x1bb   : > { %v2554_v19 = vadd.f32 %v2410_v16, %v2122_v24  ;;  %v1259_v14 = vmul.u32 2221647499, %v1115_v36  ;;  %v974_v52 = vshrl.u32 %v830_v11, 15  ;;  %v4112_v42 = vmul.f32 1.1111112, %v1983_v45 }
 0x1bc   : > { %v1260_v33 = vmul.u32 2221647499, %v1116_v55  ;;  %v1117_v22 = vxor.u32 %v973_v44, %v829_v59  ;;  %v975_v60 = vshrl.u32 %v831_v20, 15  ;;  %v688_v40 = vxor.u32 %v544_v9, %v400_v4  ;;  %v2126_v55 = vld [vmem:[%s3207_s26 + $0x348] sm:$0xff] }
 0x1bd   : > { %2698 = vst [vmem:[%s3292_s19 + $0x328] sm:$0xff] %v2554_v19  ;;  %v1403_v13 = vshrl.u32 %v1259_v14, 16  ;;  %v1118_v43 = vxor.u32 %v974_v52, %v830_v11  ;;  %v231_v48 = vadd.s32 144, %v3214_v1  ;;  %v4117_v15 = vmul.f32 1.1111112, %v1984_v31  ;;  %v2125_v11 = vld [vmem:[%s3207_s26 + $0x340] sm:$0xff] }
 0x1be   : > { %v1404_v27 = vshrl.u32 %v1260_v33, 16  ;;  %v1261_v39 = vmul.u32 2221647499, %v1117_v22  ;;  %v1119_v32 = vxor.u32 %v975_v60, %v831_v20  ;;  %v832_v54 = vmul.u32 2146121005, %v688_v40  ;;  %v2127_v19 = vld [vmem:[%s3207_s26 + $0x350] sm:$0xff] }
 0x1bf   : > { %v1547_v50 = vxor.u32 %v1403_v13, %v1259_v14  ;;  %v1262_v62 = vmul.u32 2221647499, %v1118_v43  ;;  %v256_v57 = vadd.s32 %v3216_v2, %v231_v48  ;;  %v4121_v0 = vmul.f32 1.1111112, %v1985_v63  ;;  %v1988_v43 = vld [vmem:[%s3199_s8 + $0x378] sm:$0xff] }
 0x1c0   : > { %v1548_v49 = vxor.u32 %v1404_v27, %v1260_v33  ;;  %v1405_v10 = vshrl.u32 %v1261_v39, 16  ;;  %v1263_v18 = vmul.u32 2221647499, %v1119_v32  ;;  %v976_v29 = vshrl.u32 %v832_v54, 15  ;;  %v1987_v33 = vld [vmem:[%s3199_s8 + $0x370] sm:$0xff] }
 0x1c1   : > { %v1691_v51 = vshrl.u32 %v1547_v50, 8  ;;  %v1406_v21 = vshrl.u32 %v1262_v62, 16  ;;  %v287_v23 = vmul.u32 768, %v256_v57  ;;  %v4124_v26 = vmul.f32 1.1111112, %v1986_v56 }
 0x1c2   : > { %v1692_v58 = vshrl.u32 %v1548_v49, 8  ;;  %v1549_v47 = vxor.u32 %v1405_v10, %v1261_v39  ;;  %v1407_v35 = vshrl.u32 %v1263_v18, 16  ;;  %v1120_v34 = vxor.u32 %v976_v29, %v832_v54  ;;  %v2128_v39 = vld [vmem:[%s3207_s26 + $0x358] sm:$0xff] }
 0x1c3   : > { %vm1835_vm6 = vcmp.ge.s32.totalorder %v1691_v51, 1677722  ;;  %v1550_v46 = vxor.u32 %v1406_v21, %v1262_v62  ;;  %v401_v25 = vadd.s32 %v287_v23, %v3218_v3  ;;  %v402_v52 = vadd.s32 %v287_v23, %v3223_v5 }
 0x1c4   : > { %v2411_v24 = vsel %vm1835_vm6, %v4069_v38, 0.0  ;;  %vm1836_vm7 = vcmp.ge.s32.totalorder %v1692_v58, 1677722  ;;  %v1693_v37 = vshrl.u32 %v1549_v47, 8  ;;  %v1551_v59 = vxor.u32 %v1407_v35, %v1263_v18  ;;  %v1989_v58 = vld [vmem:[%s3199_s8 + $0x380] sm:$0xff] }
 0x1c5   : > { %v2555_v41 = vadd.f32 %v2411_v24, %v2123_v61  ;;  %v2412_v36 = vsel %vm1836_vm7, %v4075_v17, 0.0  ;;  %v1694_v45 = vshrl.u32 %v1550_v46, 8  ;;  %v1264_v4 = vmul.u32 2221647499, %v1120_v34 }
 0x1c6   : > { %v2556_v16 = vadd.f32 %v2412_v36, %v2124_v30  ;;  %vm1837_vm8 = vcmp.ge.s32.totalorder %v1693_v37, 1677722  ;;  %v1695_v44 = vshrl.u32 %v1551_v59, 8  ;;  %v545_v20 = vshrl.u32 %v401_v25, 16 }
 0x1c7   : > { %2699 = vst [vmem:[%s3292_s19 + $0x330] sm:$0xff] %v2555_v41  ;;  %v2413_v38 = vsel %vm1837_vm8, %v4094_v28, 0.0  ;;  %vm1838_vm9 = vcmp.ge.s32.totalorder %v1694_v45, 1677722  ;;  %v1408_v14 = vshrl.u32 %v1264_v4, 16  ;;  %v546_v13 = vshrl.u32 %v402_v52, 16 }
 0x1c8   : > { %2700 = vst [vmem:[%s3292_s19 + $0x338] sm:$0xff] %v2556_v16  ;;  %v2557_v17 = vadd.f32 %v2413_v38, %v2125_v11  ;;  %v2414_v9 = vsel %vm1838_vm9, %v4102_v53, 0.0  ;;  %vm1839_vm10 = vcmp.ge.s32.totalorder %v1695_v44, 1677722  ;;  %v689_v31 = vxor.u32 %v545_v20, %v401_v25  ;;  %v1990_v45 = vld [vmem:[%s3199_s8 + $0x388] sm:$0xff] }
 0x1c9   : > { %v2558_v22 = vadd.f32 %v2414_v9, %v2126_v55  ;;  %v2415_v60 = vsel %vm1839_vm10, %v4112_v42, 0.0  ;;  %v1552_v28 = vxor.u32 %v1408_v14, %v1264_v4  ;;  %v403_v63 = vadd.s32 %v287_v23, %v3226_v6 }
 0x1ca   : > { %2701 = vst [vmem:[%s3292_s19 + $0x340] sm:$0xff] %v2557_v17  ;;  %v2559_v40 = vadd.f32 %v2415_v60, %v2127_v19  ;;  %v833_v48 = vmul.u32 2146121005, %v689_v31  ;;  %v404_v27 = vadd.s32 %v287_v23, %v3229_v7  ;;  %v690_v32 = vxor.u32 %v546_v13, %v402_v52  ;;  %v2129_v13 = vld [vmem:[%s3207_s26 + $0x360] sm:$0xff] }
 0x1cb   : > { %2702 = vst [vmem:[%s3292_s19 + $0x348] sm:$0xff] %v2558_v22  ;;  %v1696_v53 = vshrl.u32 %v1552_v28, 8  ;;  %v4146_v50 = vmul.f32 1.1111112, %v1987_v33  ;;  %v405_v62 = vadd.s32 %v287_v23, %v3232_v8  ;;  %v547_v54 = vshrl.u32 %v403_v63, 16 }
 0x1cc   : > { %2703 = vst [vmem:[%s3292_s19 + $0x350] sm:$0xff] %v2559_v40  ;;  %v977_v42 = vshrl.u32 %v833_v48, 15  ;;  %v548_v57 = vshrl.u32 %v404_v27, 16  ;;  %v4150_v56 = vmul.f32 1.1111112, %v1988_v43  ;;  %v406_v18 = vadd.s32 %v287_v23, %v3237_v12 }
 0x1cd   : > { %vm1840_vm11 = vcmp.ge.s32.totalorder %v1696_v53, 1677722  ;;  %v834_v49 = vmul.u32 2146121005, %v690_v32  ;;  %v549_v10 = vshrl.u32 %v405_v62, 16  ;;  %v691_v29 = vxor.u32 %v547_v54, %v403_v63 }
 0x1ce   : > { %v2416_v51 = vsel %vm1840_vm11, %v4117_v15, 0.0  ;;  %v1121_v21 = vxor.u32 %v977_v42, %v833_v48  ;;  %v692_v61 = vxor.u32 %v548_v57, %v404_v27  ;;  %v550_v46 = vshrl.u32 %v406_v18, 16 }
 0x1cf   : > { %v2560_v47 = vadd.f32 %v2416_v51, %v2128_v39  ;;  %v978_v35 = vshrl.u32 %v834_v49, 15  ;;  %v693_v30 = vxor.u32 %v549_v10, %v405_v62  ;;  %v835_v25 = vmul.u32 2146121005, %v691_v29 }
 0x1d0   : > { %v1265_v34 = vmul.u32 2221647499, %v1121_v21  ;;  %v836_v24 = vmul.u32 2146121005, %v692_v61  ;;  %v4156_v41 = vmul.f32 1.1111112, %v1989_v58  ;;  %v694_v23 = vxor.u32 %v550_v46, %v406_v18 }
 0x1d1   : > { %2704 = vst [vmem:[%s3292_s19 + $0x358] sm:$0xff] %v2560_v47  ;;  %v1122_v37 = vxor.u32 %v978_v35, %v834_v49  ;;  %v837_v59 = vmul.u32 2146121005, %v693_v30  ;;  %v979_v15 = vshrl.u32 %v835_v25, 15  ;;  %v232_v4 = vadd.s32 152, %v3214_v1  ;;  %v2130_v49 = vld [vmem:[%s3207_s26 + $0x368] sm:$0xff] }
 0x1d2   : > { %v1409_v36 = vshrl.u32 %v1265_v34, 16  ;;  %v980_v11 = vshrl.u32 %v836_v24, 15  ;;  %v838_v44 = vmul.u32 2146121005, %v694_v23  ;;  %v4161_v31 = vmul.f32 1.1111112, %v1990_v45 }
 0x1d3   : > { %v1266_v16 = vmul.u32 2221647499, %v1122_v37  ;;  %v981_v55 = vshrl.u32 %v837_v59, 15  ;;  %v1123_v38 = vxor.u32 %v979_v15, %v835_v25  ;;  %v257_v14 = vadd.s32 %v3216_v2, %v232_v4  ;;  %v2131_v47 = vld [vmem:[%s3207_s26 + $0x370] sm:$0xff] }
 0x1d4   : > { %v1553_v20 = vxor.u32 %v1409_v36, %v1265_v34  ;;  %v1124_v19 = vxor.u32 %v980_v11, %v836_v24  ;;  %v982_v9 = vshrl.u32 %v838_v44, 15  ;;  %v4167_v63 = vadd.s32 160, %v3214_v1  ;;  %v2132_v34 = vld [vmem:[%s3207_s26 + $0x378] sm:$0xff]  ;;  %v2133_v24 = vld [vmem:[%s3207_s26 + $0x380] sm:$0xff] }
 0x1d5   : > { %v1410_v52 = vshrl.u32 %v1266_v16, 16  ;;  %v1125_v17 = vxor.u32 %v981_v55, %v837_v59  ;;  %v1267_v22 = vmul.u32 2221647499, %v1123_v38  ;;  %v4163_v28 = vmul.u32 768, %v257_v14  ;;  %v1991_v59 = vld [vmem:[%s3199_s8 + $0x390] sm:$0xff]  ;;  %v1992_v38 = vld [vmem:[%s3199_s8 + $0x398] sm:$0xff] }
 0x1d6   : > { %v1697_v33 = vshrl.u32 %v1553_v20, 8  ;;  %v1268_v60 = vmul.u32 2221647499, %v1124_v19  ;;  %v1126_v48 = vxor.u32 %v982_v9, %v838_v44  ;;  %v2134_v44 = vld [vmem:[%s3207_s26 + $0x388] sm:$0xff]  ;;  %v2279_v9 = vmul.f32 1.1111112, %v1991_v59 }
 0x1d7   : > { %v1554_v43 = vxor.u32 %v1410_v52, %v1266_v16  ;;  %v1269_v40 = vmul.u32 2221647499, %v1125_v17  ;;  %v1411_v27 = vshrl.u32 %v1267_v22, 16  ;;  %v407_v39 = vadd.s32 %v4163_v28, %v3218_v3  ;;  %v2135_v59 = vld [vmem:[%s3207_s26 + $0x390] sm:$0xff] }
 0x1d8   : > { %vm1841_vm12 = vcmp.ge.s32.totalorder %v1697_v33, 1677722  ;;  %v1412_v53 = vshrl.u32 %v1268_v60, 16  ;;  %v1270_v54 = vmul.u32 2221647499, %v1126_v48  ;;  %v408_v61 = vadd.s32 %v4163_v28, %v3223_v5 }
 0x1d9   : > { %v2417_v32 = vsel %vm1841_vm12, %v4121_v0, 0.0  ;;  %v1698_v62 = vshrl.u32 %v1554_v43, 8  ;;  %v1413_v42 = vshrl.u32 %v1269_v40, 16  ;;  %v1555_v10 = vxor.u32 %v1411_v27, %v1267_v22 }
 0x1da   : > { %v2561_v57 = vadd.f32 %v2417_v32, %v2129_v13  ;;  %v1556_v18 = vxor.u32 %v1412_v53, %v1268_v60  ;;  %v551_v51 = vshrl.u32 %v407_v39, 16  ;;  %v1414_v29 = vshrl.u32 %v1270_v54, 16 }
 0x1db   : > { %vm1842_vm13 = vcmp.ge.s32.totalorder %v1698_v62, 1677722  ;;  %v1557_v21 = vxor.u32 %v1413_v42, %v1269_v40  ;;  %v1699_v58 = vshrl.u32 %v1555_v10, 8  ;;  %v552_v23 = vshrl.u32 %v408_v61, 16  ;;  %v1995_v40 = vld [vmem:[%s3199_s8 + $0x3b0] sm:$0xff]  ;;  %v1996_v10 = vld [vmem:[%s3199_s8 + $0x3b8] sm:$0xff] }
 0x1dc   : > { %2705 = vst [vmem:[%s3292_s19 + $0x360] sm:$0xff] %v2561_v57  ;;  %v2418_v0 = vsel %vm1842_vm13, %v4124_v26, 0.0  ;;  %v1700_v35 = vshrl.u32 %v1556_v18, 8  ;;  %v695_v30 = vxor.u32 %v551_v51, %v407_v39  ;;  %v1558_v37 = vxor.u32 %v1414_v29, %v1270_v54 }
 0x1dd   : > { %v2562_v46 = vadd.f32 %v2418_v0, %v2130_v49  ;;  %v1701_v25 = vshrl.u32 %v1557_v21, 8  ;;  %vm1843_vm14 = vcmp.ge.s32.totalorder %v1699_v58, 1677722  ;;  %v409_v26 = vadd.s32 %v4163_v28, %v3226_v6 }
 0x1de   : > { %vm1844_vm15 = vcmp.ge.s32.totalorder %v1700_v35, 1677722  ;;  %v839_v36 = vmul.u32 2146121005, %v695_v30  ;;  %v2419_v15 = vsel %vm1843_vm14, %v4146_v50, 0.0  ;;  %v1702_v45 = vshrl.u32 %v1558_v37, 8 }
 0x1df   : > { %2706 = vst [vmem:[%s3292_s19 + $0x368] sm:$0xff] %v2562_v46  ;;  %v2420_v11 = vsel %vm1844_vm15, %v4150_v56, 0.0  ;;  %vm1845_vm0 = vcmp.ge.s32.totalorder %v1701_v25, 1677722  ;;  %v2563_v4 = vadd.f32 %v2419_v15, %v2131_v47  ;;  %v696_v14 = vxor.u32 %v552_v23, %v408_v61  ;;  %v1993_v50 = vld [vmem:[%s3199_s8 + $0x3a0] sm:$0xff] }
 0x1e0   : > { %v2564_v16 = vadd.f32 %v2420_v11, %v2132_v34  ;;  %v2421_v55 = vsel %vm1845_vm0, %v4156_v41, 0.0  ;;  %v983_v20 = vshrl.u32 %v839_v36, 15  ;;  %vm1846_vm1 = vcmp.ge.s32.totalorder %v1702_v45, 1677722  ;;  %v1994_v41 = vld [vmem:[%s3199_s8 + $0x3a8] sm:$0xff] }
 0x1e1   : > { %v2565_v19 = vadd.f32 %v2421_v55, %v2133_v24  ;;  %v553_v52 = vshrl.u32 %v409_v26, 16  ;;  %2707 = vst [vmem:[%s3292_s19 + $0x370] sm:$0xff] %v2563_v4  ;;  %v2422_v56 = vsel %vm1846_vm1, %v4161_v31, 0.0  ;;  %v410_v33 = vadd.s32 %v4163_v28, %v3229_v7 }
 0x1e2   : > { %v1127_v17 = vxor.u32 %v983_v20, %v839_v36  ;;  %2708 = vst [vmem:[%s3292_s19 + $0x378] sm:$0xff] %v2564_v16  ;;  %v2566_v22 = vadd.f32 %v2422_v56, %v2134_v44  ;;  %v840_v60 = vmul.u32 2146121005, %v696_v14  ;;  %v4196_v13 = vmul.f32 1.1111112, %v1992_v38  ;;  %v2136_v56 = vld [vmem:[%s3207_s26 + $0x398] sm:$0xff] }
 0x1e3   : > { %v697_v43 = vxor.u32 %v553_v52, %v409_v26  ;;  %2709 = vst [vmem:[%s3292_s19 + $0x380] sm:$0xff] %v2565_v19  ;;  %v4200_v27 = vmul.f32 1.1111112, %v1993_v50  ;;  %v554_v31 = vshrl.u32 %v410_v33, 16  ;;  %v411_v53 = vadd.s32 %v4163_v28, %v3232_v8 }
 0x1e4   : > { %v1271_v48 = vmul.u32 2221647499, %v1127_v17  ;;  %2710 = vst [vmem:[%s3292_s19 + $0x388] sm:$0xff] %v2566_v22  ;;  %v984_v39 = vshrl.u32 %v840_v60, 15  ;;  %v4205_v62 = vmul.f32 1.1111112, %v1994_v41  ;;  %v412_v42 = vadd.s32 %v4163_v28, %v3237_v12 }
 0x1e5   : > { %v841_v32 = vmul.u32 2146121005, %v697_v43  ;;  %v698_v57 = vxor.u32 %v554_v31, %v410_v33  ;;  %v555_v49 = vshrl.u32 %v411_v53, 16  ;;  %v258_v18 = vadd.s32 %v3216_v2, %v4167_v63 }
 0x1e6   : > { %v1415_v54 = vshrl.u32 %v1271_v48, 16  ;;  %v1128_v51 = vxor.u32 %v984_v39, %v840_v60  ;;  %v4212_v29 = vmul.f32 1.1111112, %v1995_v40  ;;  %v556_v61 = vshrl.u32 %v412_v42, 16  ;;  %v2137_v39 = vld [vmem:[%s3207_s26 + $0x3a0] sm:$0xff] }
 0x1e7   : > { %v985_v21 = vshrl.u32 %v841_v32, 15  ;;  %v842_v58 = vmul.u32 2146121005, %v698_v57  ;;  %v699_v47 = vxor.u32 %v555_v49, %v411_v53  ;;  %v4214_v35 = vmul.u32 768, %v258_v18 }
 0x1e8   : > { %v1559_v0 = vxor.u32 %v1415_v54, %v1271_v48  ;;  %v1272_v30 = vmul.u32 2221647499, %v1128_v51  ;;  %v700_v46 = vxor.u32 %v556_v61, %v412_v42  ;;  %v4216_v34 = vmul.f32 1.1111112, %v1996_v10 }
 0x1e9   : > { %v1129_v28 = vxor.u32 %v985_v21, %v841_v32  ;;  %v986_v24 = vshrl.u32 %v842_v58, 15  ;;  %v843_v37 = vmul.u32 2146121005, %v699_v47  ;;  %v413_v63 = vadd.s32 %v4214_v35, %v3218_v3 }
 0x1ea   : > { %v1703_v25 = vshrl.u32 %v1559_v0, 8  ;;  %v1416_v23 = vshrl.u32 %v1272_v30, 16  ;;  %v844_v26 = vmul.u32 2146121005, %v700_v46  ;;  %v414_v15 = vadd.s32 %v4214_v35, %v3223_v5 }
 0x1eb   : > { %v1273_v36 = vmul.u32 2221647499, %v1129_v28  ;;  %v1130_v11 = vxor.u32 %v986_v24, %v842_v58  ;;  %v987_v45 = vshrl.u32 %v843_v37, 15  ;;  %v557_v4 = vshrl.u32 %v413_v63, 16  ;;  %v2138_v58 = vld [vmem:[%s3207_s26 + $0x3a8] sm:$0xff]  ;;  %v2139_v24 = vld [vmem:[%s3207_s26 + $0x3b0] sm:$0xff] }
 0x1ec   : > { %vm1847_vm2 = vcmp.ge.s32.totalorder %v1703_v25, 1677722  ;;  %v1560_v55 = vxor.u32 %v1416_v23, %v1272_v30  ;;  %v988_v20 = vshrl.u32 %v844_v26, 15  ;;  %v558_v41 = vshrl.u32 %v414_v15, 16 }
 0x1ed   : > { %v2423_v16 = vsel %vm1847_vm2, %v2279_v9, 0.0  ;;  %v1417_v44 = vshrl.u32 %v1273_v36, 16  ;;  %v1274_v19 = vmul.u32 2221647499, %v1130_v11  ;;  %v1131_v14 = vxor.u32 %v987_v45, %v843_v37  ;;  %v1998_v11 = vld [vmem:[%s3199_s8 + $0x3c8] sm:$0xff] }
 0x1ee   : > { %v2567_v38 = vadd.f32 %v2423_v16, %v2135_v59  ;;  %v701_v52 = vxor.u32 %v557_v4, %v413_v63  ;;  %v1704_v50 = vshrl.u32 %v1560_v55, 8  ;;  %v1132_v33 = vxor.u32 %v988_v20, %v844_v26 }
 0x1ef   : > { %v1561_v17 = vxor.u32 %v1417_v44, %v1273_v36  ;;  %v1418_v22 = vshrl.u32 %v1274_v19, 16  ;;  %v1275_v60 = vmul.u32 2221647499, %v1131_v14  ;;  %v415_v9 = vadd.s32 %v4214_v35, %v3226_v6  ;;  %v2140_v36 = vld [vmem:[%s3207_s26 + $0x3b8] sm:$0xff] }
 0x1f0   : > { %2711 = vst [vmem:[%s3292_s19 + $0x390] sm:$0xff] %v2567_v38  ;;  %v845_v43 = vmul.u32 2146121005, %v701_v52  ;;  %vm1848_vm3 = vcmp.ge.s32.totalorder %v1704_v50, 1677722  ;;  %v702_v31 = vxor.u32 %v558_v41, %v414_v15  ;;  %v416_v25 = vadd.s32 %v4214_v35, %v3229_v7  ;;  %v1997_v15 = vld [vmem:[%s3199_s8 + $0x3c0] sm:$0xff] }
 0x1f1   : > { %v1705_v40 = vshrl.u32 %v1561_v17, 8  ;;  %v1276_v48 = vmul.u32 2221647499, %v1132_v33  ;;  %v2424_v53 = vsel %vm1848_vm3, %v4196_v13, 0.0  ;;  %v1562_v32 = vxor.u32 %v1418_v22, %v1274_v19  ;;  %v1999_v38 = vld [vmem:[%s3199_s8 + $0x3d0] sm:$0xff]  ;;  %v2141_v41 = vld [vmem:[%s3207_s26 + $0x3c0] sm:$0xff] }
 0x1f2   : > { %v1419_v42 = vshrl.u32 %v1275_v60, 16  ;;  %v989_v54 = vshrl.u32 %v845_v43, 15  ;;  %v2568_v57 = vadd.f32 %v2424_v53, %v2136_v56  ;;  %v846_v10 = vmul.u32 2146121005, %v702_v31 }
 0x1f3   : > { %vm1849_vm4 = vcmp.ge.s32.totalorder %v1705_v40, 1677722  ;;  %v1420_v49 = vshrl.u32 %v1276_v48, 16  ;;  %v1706_v51 = vshrl.u32 %v1562_v32, 8  ;;  %v559_v30 = vshrl.u32 %v415_v9, 16  ;;  %v2000_v40 = vld [vmem:[%s3199_s8 + $0x3d8] sm:$0xff] }
 0x1f4   : > { %v2425_v18 = vsel %vm1849_vm4, %v4200_v27, 0.0  ;;  %v1563_v21 = vxor.u32 %v1419_v42, %v1275_v60  ;;  %v1133_v61 = vxor.u32 %v989_v54, %v845_v43  ;;  %2712 = vst [vmem:[%s3292_s19 + $0x398] sm:$0xff] %v2568_v57  ;;  %v990_v47 = vshrl.u32 %v846_v10, 15  ;;  %v2142_v57 = vld [vmem:[%s3207_s26 + $0x3c8] sm:$0xff] }
 0x1f5   : > { %v2569_v0 = vadd.f32 %v2425_v18, %v2137_v39  ;;  %v1564_v13 = vxor.u32 %v1420_v49, %v1276_v48  ;;  %vm1850_vm5 = vcmp.ge.s32.totalorder %v1706_v51, 1677722  ;;  %v703_v59 = vxor.u32 %v559_v30, %v415_v9  ;;  %v2001_v18 = vld [vmem:[%s3199_s8 + $0x3e0] sm:$0xff] }
 0x1f6   : > { %v1707_v28 = vshrl.u32 %v1563_v21, 8  ;;  %v1277_v46 = vmul.u32 2221647499, %v1133_v61  ;;  %v2426_v27 = vsel %vm1850_vm5, %v4205_v62, 0.0  ;;  %v1134_v63 = vxor.u32 %v990_v47, %v846_v10 }
 0x1f7   : > { %2713 = vst [vmem:[%s3292_s19 + $0x3a0] sm:$0xff] %v2569_v0  ;;  %v1708_v37 = vshrl.u32 %v1564_v13, 8  ;;  %v2570_v23 = vadd.f32 %v2426_v27, %v2138_v58  ;;  %v560_v16 = vshrl.u32 %v416_v25, 16  ;;  %v847_v20 = vmul.u32 2146121005, %v703_v59  ;;  %v2002_v0 = vld [vmem:[%s3199_s8 + $0x3e8] sm:$0xff] }
 0x1f8   : > { %vm1851_vm6 = vcmp.ge.s32.totalorder %v1707_v28, 1677722  ;;  %v1421_v26 = vshrl.u32 %v1277_v46, 16  ;;  %v1278_v4 = vmul.u32 2221647499, %v1134_v63  ;;  %v417_v33 = vadd.s32 %v4214_v35, %v3232_v8 }
 0x1f9   : > { %v2427_v45 = vsel %vm1851_vm6, %v4212_v29, 0.0  ;;  %vm1852_vm7 = vcmp.ge.s32.totalorder %v1708_v37, 1677722  ;;  %2714 = vst [vmem:[%s3292_s19 + $0x3a8] sm:$0xff] %v2570_v23  ;;  %v2285_v14 = vmul.f32 1.1111112, %v1997_v15  ;;  %v704_v50 = vxor.u32 %v560_v16, %v416_v25 }
 0x1fa   : > { %v2571_v62 = vadd.f32 %v2427_v45, %v2139_v24  ;;  %v2428_v55 = vsel %vm1852_vm7, %v4216_v34, 0.0  ;;  %v1565_v44 = vxor.u32 %v1421_v26, %v1277_v46  ;;  %v1422_v52 = vshrl.u32 %v1278_v4, 16 }
 0x1fb   : > { %v2572_v19 = vadd.f32 %v2428_v55, %v2140_v36  ;;  %v2286_v29 = vmul.f32 1.1111112, %v1998_v11  ;;  %v991_v17 = vshrl.u32 %v847_v20, 15  ;;  %v2287_v34 = vmul.f32 1.1111112, %v1999_v38 }
 0x1fc   : > { %2715 = vst [vmem:[%s3292_s19 + $0x3b0] sm:$0xff] %v2571_v62  ;;  %v1709_v56 = vshrl.u32 %v1565_v44, 8  ;;  %v1566_v22 = vxor.u32 %v1422_v52, %v1278_v4  ;;  %v848_v60 = vmul.u32 2146121005, %v704_v50  ;;  %v418_v43 = vadd.s32 %v4214_v35, %v3237_v12  ;;  %v2143_v62 = vld [vmem:[%s3207_s26 + $0x3d0] sm:$0xff] }
 0x1fd   : > { %2716 = vst [vmem:[%s3292_s19 + $0x3b8] sm:$0xff] %v2572_v19  ;;  %v1135_v9 = vxor.u32 %v991_v17, %v847_v20  ;;  %v561_v48 = vshrl.u32 %v417_v33, 16  ;;  %v234_v31 = vadd.s32 168, %v3214_v1  ;;  %v2288_v21 = vmul.f32 1.1111112, %v2000_v40 }
 0x1fe   : > { %vm1853_vm8 = vcmp.ge.s32.totalorder %v1709_v56, 1677722  ;;  %v1710_v39 = vshrl.u32 %v1566_v22, 8  ;;  %v992_v32 = vshrl.u32 %v848_v60, 15  ;;  %v562_v42 = vshrl.u32 %v418_v43, 16 }
 0x1ff   : > { %v2429_v53 = vsel %vm1853_vm8, %v2285_v14, 0.0  ;;  %v1279_v49 = vmul.u32 2221647499, %v1135_v9  ;;  %v705_v10 = vxor.u32 %v561_v48, %v417_v33  ;;  %v259_v51 = vadd.s32 %v3216_v2, %v234_v31 }
 0x200   : > { %v2573_v54 = vadd.f32 %v2429_v53, %v2141_v41  ;;  %vm1854_vm9 = vcmp.ge.s32.totalorder %v1710_v39, 1677722  ;;  %v1136_v35 = vxor.u32 %v992_v32, %v848_v60  ;;  %v706_v61 = vxor.u32 %v562_v42, %v418_v43  ;;  %v2003_v43 = vld [vmem:[%s3199_s8 + $0x3f0] sm:$0xff] }
 0x201   : > { %v2430_v58 = vsel %vm1854_vm9, %v2286_v29, 0.0  ;;  %v1423_v13 = vshrl.u32 %v1279_v49, 16  ;;  %v849_v47 = vmul.u32 2146121005, %v705_v10  ;;  %v4258_v30 = vmul.u32 768, %v259_v51  ;;  %v2144_v29 = vld [vmem:[%s3207_s26 + $0x3d8] sm:$0xff] }
 0x202   : > { %2717 = vst [vmem:[%s3292_s19 + $0x3c0] sm:$0xff] %v2573_v54  ;;  %v2574_v28 = vadd.f32 %v2430_v58, %v2142_v57  ;;  %v1280_v46 = vmul.u32 2221647499, %v1136_v35  ;;  %v4260_v25 = vmul.f32 1.1111112, %v2001_v18  ;;  %v2145_v18 = vld [vmem:[%s3207_s26 + $0x3e0] sm:$0xff] }
 0x203   : > { %v850_v27 = vmul.u32 2146121005, %v706_v61  ;;  %v1567_v24 = vxor.u32 %v1423_v13, %v1279_v49  ;;  %v993_v37 = vshrl.u32 %v849_v47, 15  ;;  %v419_v63 = vadd.s32 %v4258_v30, %v3218_v3  ;;  %v2146_v58 = vld [vmem:[%s3207_s26 + $0x3e8] sm:$0xff]  ;;  %v2004_v13 = vld [vmem:[%s3199_s8 + $0x3f8] sm:$0xff] }
 0x204   : > { %v420_v59 = vadd.s32 %v4258_v30, %v3223_v5  ;;  %2718 = vst [vmem:[%s3292_s19 + $0x3c8] sm:$0xff] %v2574_v28  ;;  %v1424_v23 = vshrl.u32 %v1280_v46, 16  ;;  %v4267_v26 = vmul.f32 1.1111112, %v2002_v0  ;;  %v421_v15 = vadd.s32 %v4258_v30, %v3226_v6 }
 0x205   : > { %v994_v36 = vshrl.u32 %v850_v27, 15  ;;  %v1711_v11 = vshrl.u32 %v1567_v24, 8  ;;  %v1137_v45 = vxor.u32 %v993_v37, %v849_v47  ;;  %v563_v4 = vshrl.u32 %v419_v63, 16 }
 0x206   : > { %v564_v16 = vshrl.u32 %v420_v59, 16  ;;  %v1568_v55 = vxor.u32 %v1424_v23, %v1280_v46  ;;  %v565_v20 = vshrl.u32 %v421_v15, 16  ;;  %v422_v38 = vadd.s32 %v4258_v30, %v3229_v7 }
 0x207   : > { %v1138_v44 = vxor.u32 %v994_v36, %v850_v27  ;;  %vm1855_vm10 = vcmp.ge.s32.totalorder %v1711_v11, 1677722  ;;  %v1281_v19 = vmul.u32 2221647499, %v1137_v45  ;;  %v707_v14 = vxor.u32 %v563_v4, %v419_v63  ;;  %v2005_v45 = vld [vmem:[%s3199_s8 + $0x400] sm:$0xff] }
 0x208   : > { %v708_v52 = vxor.u32 %v564_v16, %v420_v59  ;;  %v2431_v50 = vsel %vm1855_vm10, %v2287_v34, 0.0  ;;  %v1712_v56 = vshrl.u32 %v1568_v55, 8  ;;  %v709_v33 = vxor.u32 %v565_v20, %v421_v15  ;;  %v2006_v20 = vld [vmem:[%s3199_s8 + $0x408] sm:$0xff] }
 0x209   : > { %v1282_v17 = vmul.u32 2221647499, %v1138_v44  ;;  %v2575_v41 = vadd.f32 %v2431_v50, %v2143_v62  ;;  %v1425_v22 = vshrl.u32 %v1281_v19, 16  ;;  %v851_v60 = vmul.u32 2146121005, %v707_v14 }
 0x20a   : > { %v852_v9 = vmul.u32 2146121005, %v708_v52  ;;  %vm1856_vm11 = vcmp.ge.s32.totalorder %v1712_v56, 1677722  ;;  %v853_v48 = vmul.u32 2146121005, %v709_v33  ;;  %v423_v28 = vadd.s32 %v4258_v30, %v3232_v8 }
 0x20b   : > { %v1426_v40 = vshrl.u32 %v1282_v17, 16  ;;  %v566_v31 = vshrl.u32 %v422_v38, 16  ;;  %2719 = vst [vmem:[%s3292_s19 + $0x3d0] sm:$0xff] %v2575_v41  ;;  %v2432_v53 = vsel %vm1856_vm11, %v2288_v21, 0.0  ;;  %v1569_v34 = vxor.u32 %v1425_v22, %v1281_v19  ;;  %v2147_v56 = vld [vmem:[%s3207_s26 + $0x3f0] sm:$0xff]  ;;  %v2149_v33 = vld [vmem:[%s3207_s26 + $0x400] sm:$0xff] }
 0x20c   : > { %v995_v39 = vshrl.u32 %v851_v60, 15  ;;  %v996_v32 = vshrl.u32 %v852_v9, 15  ;;  %v2576_v42 = vadd.f32 %v2432_v53, %v2144_v29  ;;  %v997_v57 = vshrl.u32 %v853_v48, 15 }
 0x20d   : > { %v1570_v54 = vxor.u32 %v1426_v40, %v1282_v17  ;;  %v710_v49 = vxor.u32 %v566_v31, %v422_v38  ;;  %v1713_v10 = vshrl.u32 %v1569_v34, 8  ;;  %v2291_v35 = vmul.f32 1.1111112, %v2003_v43  ;;  %v2148_v17 = vld [vmem:[%s3207_s26 + $0x3f8] sm:$0xff] }
 0x20e   : > { %v1139_v51 = vxor.u32 %v995_v39, %v851_v60  ;;  %v1140_v61 = vxor.u32 %v996_v32, %v852_v9  ;;  %2720 = vst [vmem:[%s3292_s19 + $0x3d8] sm:$0xff] %v2576_v42  ;;  %v1141_v47 = vxor.u32 %v997_v57, %v853_v48  ;;  %v424_v24 = vadd.s32 %v4258_v30, %v3237_v12  ;;  %v2007_v32 = vld [vmem:[%s3199_s8 + $0x410] sm:$0xff] }
 0x20f   : > { %v1714_v0 = vshrl.u32 %v1570_v54, 8  ;;  %v854_v21 = vmul.u32 2146121005, %v710_v49  ;;  %vm1857_vm12 = vcmp.ge.s32.totalorder %v1713_v10, 1677722  ;;  %v567_v55 = vshrl.u32 %v423_v28, 16 }
 0x210   : > { %v1283_v46 = vmul.u32 2221647499, %v1139_v51  ;;  %v1284_v27 = vmul.u32 2221647499, %v1140_v61  ;;  %v2433_v37 = vsel %vm1857_vm12, %v4260_v25, 0.0  ;;  %v568_v38 = vshrl.u32 %v424_v24, 16 }
 0x211   : > { %vm1858_vm13 = vcmp.ge.s32.totalorder %v1714_v0, 1677722  ;;  %v1285_v63 = vmul.u32 2221647499, %v1141_v47  ;;  %v998_v59 = vshrl.u32 %v854_v21, 15  ;;  %v2577_v23 = vadd.f32 %v2433_v37, %v2145_v18  ;;  %v2150_v0 = vld [vmem:[%s3207_s26 + $0x408] sm:$0xff] }
 0x212   : > { %v2434_v36 = vsel %vm1858_vm13, %v4267_v26, 0.0  ;;  %v1427_v15 = vshrl.u32 %v1283_v46, 16  ;;  %v1428_v11 = vshrl.u32 %v1284_v27, 16  ;;  %v2292_v44 = vmul.f32 1.1111112, %v2004_v13  ;;  %v2008_v47 = vld [vmem:[%s3199_s8 + $0x418] sm:$0xff] }
 0x213   : > { %v2578_v4 = vadd.f32 %v2434_v36, %v2146_v58  ;;  %v1429_v16 = vshrl.u32 %v1285_v63, 16  ;;  %v1142_v62 = vxor.u32 %v998_v59, %v854_v21  ;;  %2721 = vst [vmem:[%s3292_s19 + $0x3e0] sm:$0xff] %v2577_v23  ;;  %v2293_v14 = vmul.f32 1.1111112, %v2005_v45  ;;  %v2009_v36 = vld [vmem:[%s3199_s8 + $0x420] sm:$0xff] }
 0x214   : > { %v1571_v30 = vxor.u32 %v1427_v15, %v1283_v46  ;;  %v1572_v25 = vxor.u32 %v1428_v11, %v1284_v27  ;;  %v711_v52 = vxor.u32 %v567_v55, %v423_v28  ;;  %v712_v41 = vxor.u32 %v568_v38, %v424_v24 }
 0x215   : > { %2722 = vst [vmem:[%s3292_s19 + $0x3e8] sm:$0xff] %v2578_v4  ;;  %v1573_v19 = vxor.u32 %v1429_v16, %v1285_v63  ;;  %v1286_v26 = vmul.u32 2221647499, %v1142_v62  ;;  %v235_v22 = vadd.s32 176, %v3214_v1  ;;  %v2294_v9 = vmul.f32 1.1111112, %v2006_v20 }
 0x216   : > { %v1715_v50 = vshrl.u32 %v1571_v30, 8  ;;  %v1716_v29 = vshrl.u32 %v1572_v25, 8  ;;  %v855_v40 = vmul.u32 2146121005, %v711_v52  ;;  %v856_v48 = vmul.u32 2146121005, %v712_v41 }
 0x217   : > { %v1717_v60 = vshrl.u32 %v1573_v19, 8  ;;  %v1430_v43 = vshrl.u32 %v1286_v26, 16  ;;  %v260_v31 = vadd.s32 %v3216_v2, %v235_v22  ;;  %v2296_v45 = vmul.f32 1.1111112, %v2008_v47  ;;  %v2151_v41 = vld [vmem:[%s3207_s26 + $0x410] sm:$0xff] }
 0x218   : > { %vm1859_vm14 = vcmp.ge.s32.totalorder %v1715_v50, 1677722  ;;  %vm1860_vm15 = vcmp.ge.s32.totalorder %v1716_v29, 1677722  ;;  %v999_v49 = vshrl.u32 %v855_v40, 15  ;;  %v1000_v51 = vshrl.u32 %v856_v48, 15 }
 0x219   : > { %v2435_v53 = vsel %vm1859_vm14, %v2291_v35, 0.0  ;;  %v2436_v34 = vsel %vm1860_vm15, %v2292_v44, 0.0  ;;  %vm1861_vm0 = vcmp.ge.s32.totalorder %v1717_v60, 1677722  ;;  %v1574_v39 = vxor.u32 %v1430_v43, %v1286_v26 }
 0x21a   : > { %v2579_v42 = vadd.f32 %v2435_v53, %v2147_v56  ;;  %v2580_v54 = vadd.f32 %v2436_v34, %v2148_v17  ;;  %v2437_v57 = vsel %vm1861_vm0, %v2293_v14, 0.0  ;;  %v291_v61 = vmul.u32 768, %v260_v31 }
 0x21b   : > { %v2581_v10 = vadd.f32 %v2437_v57, %v2149_v33  ;;  %v1718_v18 = vshrl.u32 %v1574_v39, 8  ;;  %v1143_v58 = vxor.u32 %v999_v49, %v855_v40  ;;  %v2295_v35 = vmul.f32 1.1111112, %v2007_v32  ;;  %v2152_v40 = vld [vmem:[%s3207_s26 + $0x418] sm:$0xff]  ;;  %v2010_v57 = vld [vmem:[%s3199_s8 + $0x428] sm:$0xff] }
 0x21c   : > { %2723 = vst [vmem:[%s3292_s19 + $0x3f0] sm:$0xff] %v2579_v42  ;;  %v1144_v13 = vxor.u32 %v1000_v51, %v856_v48  ;;  %v425_v21 = vadd.s32 %v291_v61, %v3218_v3  ;;  %v426_v28 = vadd.s32 %v291_v61, %v3223_v5  ;;  %v427_v24 = vadd.s32 %v291_v61, %v3226_v6 }
 0x21d   : > { %2724 = vst [vmem:[%s3292_s19 + $0x3f8] sm:$0xff] %v2580_v54  ;;  %vm1862_vm1 = vcmp.ge.s32.totalorder %v1718_v18, 1677722  ;;  %v1287_v27 = vmul.u32 2221647499, %v1143_v58  ;;  %v428_v37 = vadd.s32 %v291_v61, %v3229_v7  ;;  %v429_v25 = vadd.s32 %v291_v61, %v3232_v8 }
 0x21e   : > { %2725 = vst [vmem:[%s3292_s19 + $0x400] sm:$0xff] %v2581_v10  ;;  %v2438_v46 = vsel %vm1862_vm1, %v2294_v9, 0.0  ;;  %v1288_v59 = vmul.u32 2221647499, %v1144_v13  ;;  %v569_v23 = vshrl.u32 %v425_v21, 16  ;;  %v570_v15 = vshrl.u32 %v426_v28, 16 }
 0x21f   : > { %v2582_v63 = vadd.f32 %v2438_v46, %v2150_v0  ;;  %v1431_v11 = vshrl.u32 %v1287_v27, 16  ;;  %v571_v4 = vshrl.u32 %v427_v24, 16  ;;  %v572_v16 = vshrl.u32 %v428_v37, 16  ;;  %v2011_v10 = vld [vmem:[%s3199_s8 + $0x430] sm:$0xff] }
 0x220   : > { %v1432_v62 = vshrl.u32 %v1288_v59, 16  ;;  %v713_v55 = vxor.u32 %v569_v23, %v425_v21  ;;  %v714_v30 = vxor.u32 %v570_v15, %v426_v28  ;;  %v4309_v20 = vmul.f32 1.1111112, %v2009_v36 }
 0x221   : > { %2726 = vst [vmem:[%s3292_s19 + $0x408] sm:$0xff] %v2582_v63  ;;  %v1575_v44 = vxor.u32 %v1431_v11, %v1287_v27  ;;  %v715_v38 = vxor.u32 %v571_v4, %v427_v24  ;;  %v716_v19 = vxor.u32 %v572_v16, %v428_v37  ;;  %v573_v50 = vshrl.u32 %v429_v25, 16  ;;  %v2153_v16 = vld [vmem:[%s3207_s26 + $0x420] sm:$0xff] }
 0x222   : > { %v1576_v14 = vxor.u32 %v1432_v62, %v1288_v59  ;;  %v857_v26 = vmul.u32 2146121005, %v713_v55  ;;  %v858_v52 = vmul.u32 2146121005, %v714_v30  ;;  %v430_v33 = vadd.s32 %v291_v61, %v3237_v12  ;;  %v2012_v59 = vld [vmem:[%s3199_s8 + $0x438] sm:$0xff] }
 0x223   : > { %v1719_v56 = vshrl.u32 %v1575_v44, 8  ;;  %v859_v29 = vmul.u32 2146121005, %v715_v38  ;;  %v860_v17 = vmul.u32 2146121005, %v716_v19  ;;  %v717_v9 = vxor.u32 %v573_v50, %v429_v25  ;;  %v2156_v50 = vld [vmem:[%s3207_s26 + $0x438] sm:$0xff] }
 0x224   : > { %v1720_v22 = vshrl.u32 %v1576_v14, 8  ;;  %v1001_v60 = vshrl.u32 %v857_v26, 15  ;;  %v1002_v43 = vshrl.u32 %v858_v52, 15  ;;  %v574_v53 = vshrl.u32 %v430_v33, 16  ;;  %v2154_v14 = vld [vmem:[%s3207_s26 + $0x428] sm:$0xff] }
 0x225   : > { %vm1863_vm2 = vcmp.ge.s32.totalorder %v1719_v56, 1677722  ;;  %v1003_v48 = vshrl.u32 %v859_v29, 15  ;;  %v1004_v31 = vshrl.u32 %v860_v17, 15  ;;  %v861_v58 = vmul.u32 2146121005, %v717_v9 }
 0x226   : > { %v2439_v34 = vsel %vm1863_vm2, %v2295_v35, 0.0  ;;  %vm1864_vm3 = vcmp.ge.s32.totalorder %v1720_v22, 1677722  ;;  %v1145_v39 = vxor.u32 %v1001_v60, %v857_v26  ;;  %v1146_v32 = vxor.u32 %v1002_v43, %v858_v52  ;;  %v2155_v52 = vld [vmem:[%s3207_s26 + $0x430] sm:$0xff] }
 0x227   : > { %v2583_v42 = vadd.f32 %v2439_v34, %v2151_v41  ;;  %v2440_v54 = vsel %vm1864_vm3, %v2296_v45, 0.0  ;;  %v1147_v49 = vxor.u32 %v1003_v48, %v859_v29  ;;  %v1148_v18 = vxor.u32 %v1004_v31, %v860_v17 }
 0x228   : > { %v2584_v51 = vadd.f32 %v2440_v54, %v2152_v40  ;;  %v1289_v61 = vmul.u32 2221647499, %v1145_v39  ;;  %v1290_v0 = vmul.u32 2221647499, %v1146_v32  ;;  %v718_v21 = vxor.u32 %v574_v53, %v430_v33  ;;  %v2013_v33 = vld [vmem:[%s3199_s8 + $0x440] sm:$0xff] }
 0x229   : > { %2727 = vst [vmem:[%s3292_s19 + $0x410] sm:$0xff] %v2583_v42  ;;  %v1291_v13 = vmul.u32 2221647499, %v1147_v49  ;;  %v1292_v47 = vmul.u32 2221647499, %v1148_v18  ;;  %v236_v35 = vadd.s32 184, %v3214_v1 }
 0x22a   : > { %2728 = vst [vmem:[%s3292_s19 + $0x418] sm:$0xff] %v2584_v51  ;;  %v1433_v28 = vshrl.u32 %v1289_v61, 16  ;;  %v1434_v46 = vshrl.u32 %v1290_v0, 16  ;;  %v2298_v27 = vmul.f32 1.1111112, %v2010_v57  ;;  %v1005_v24 = vshrl.u32 %v861_v58, 15 }
 0x22b   : > { %v1435_v37 = vshrl.u32 %v1291_v13, 16  ;;  %v1436_v63 = vshrl.u32 %v1292_v47, 16  ;;  %v862_v23 = vmul.u32 2146121005, %v718_v21  ;;  %v261_v36 = vadd.s32 %v3216_v2, %v236_v35 }
 0x22c   : > { %v1577_v15 = vxor.u32 %v1433_v28, %v1289_v61  ;;  %v1578_v11 = vxor.u32 %v1434_v46, %v1290_v0  ;;  %v2299_v45 = vmul.f32 1.1111112, %v2011_v10  ;;  %v1149_v4 = vxor.u32 %v1005_v24, %v861_v58  ;;  %v2157_v10 = vld [vmem:[%s3207_s26 + $0x440] sm:$0xff] }
 0x22d   : > { %v1579_v1 = vxor.u32 %v1435_v37, %v1291_v13  ;;  %v1580_v62 = vxor.u32 %v1436_v63, %v1292_v47  ;;  %v1006_v55 = vshrl.u32 %v862_v23, 15  ;;  %v292_v30 = vmul.u32 768, %v261_v36  ;;  %v2158_v37 = vld [vmem:[%s3207_s26 + $0x448] sm:$0xff] }
 0x22e   : > { %v1721_v25 = vshrl.u32 %v1577_v15, 8  ;;  %v1722_v44 = vshrl.u32 %v1578_v11, 8  ;;  %v2300_v38 = vmul.f32 1.1111112, %v2012_v59  ;;  %v1293_v19 = vmul.u32 2221647499, %v1149_v4 }
 0x22f   : > { %v1723_v26 = vshrl.u32 %v1579_v1, 8  ;;  %v1724_v2 = vshrl.u32 %v1580_v62, 8  ;;  %v1150_v56 = vxor.u32 %v1006_v55, %v862_v23  ;;  %v431_v29 = vadd.s32 %v292_v30, %v3218_v3 }
 0x230   : > { %vm1865_vm4 = vcmp.ge.s32.totalorder %v1721_v25, 1677722  ;;  %vm1866_vm5 = vcmp.ge.s32.totalorder %v1722_v44, 1677722  ;;  %v1437_v17 = vshrl.u32 %v1293_v19, 16  ;;  %v432_v41 = vadd.s32 %v292_v30, %v3223_v5  ;;  %v2014_v5 = vld [vmem:[%s3199_s8 + $0x448] sm:$0xff] }
 0x231   : > { %v2441_v22 = vsel %vm1865_vm4, %v4309_v20, 0.0  ;;  %v2442_v60 = vsel %vm1866_vm5, %v2298_v27, 0.0  ;;  %vm1867_vm6 = vcmp.ge.s32.totalorder %v1723_v26, 1677722  ;;  %vm1868_vm7 = vcmp.ge.s32.totalorder %v1724_v2, 1677722 }
 0x232   : > { %v2585_v43 = vadd.f32 %v2441_v22, %v2153_v16  ;;  %v2586_v9 = vadd.f32 %v2442_v60, %v2154_v14  ;;  %v2443_v40 = vsel %vm1867_vm6, %v2299_v45, 0.0  ;;  %v2444_v48 = vsel %vm1868_vm7, %v2300_v38, 0.0  ;;  %v2015_v38 = vld [vmem:[%s3199_s8 + $0x450] sm:$0xff] }
 0x233   : > { %v2587_v3 = vadd.f32 %v2443_v40, %v2155_v52  ;;  %v2588_v31 = vadd.f32 %v2444_v48, %v2156_v50  ;;  %v1581_v53 = vxor.u32 %v1437_v17, %v1293_v19  ;;  %v1294_v34 = vmul.u32 2221647499, %v1150_v56  ;;  %v2018_v17 = vld [vmem:[%s3199_s8 + $0x468] sm:$0xff] }
 0x234   : > { %2729 = vst [vmem:[%s3292_s19 + $0x420] sm:$0xff] %v2585_v43  ;;  %v2301_v39 = vmul.f32 1.1111112, %v2013_v33  ;;  %v575_v32 = vshrl.u32 %v431_v29, 16  ;;  %v576_v20 = vshrl.u32 %v432_v41, 16  ;;  %v433_v42 = vadd.s32 %v292_v30, %v3226_v6 }
 0x235   : > { %2730 = vst [vmem:[%s3292_s19 + $0x428] sm:$0xff] %v2586_v9  ;;  %v1725_v54 = vshrl.u32 %v1581_v53, 8  ;;  %v1438_v57 = vshrl.u32 %v1294_v34, 16  ;;  %v434_v49 = vadd.s32 %v292_v30, %v3229_v7  ;;  %v435_v0 = vadd.s32 %v292_v30, %v3232_v8 }
 0x236   : > { %2731 = vst [vmem:[%s3292_s19 + $0x430] sm:$0xff] %v2587_v3  ;;  %v719_v18 = vxor.u32 %v575_v32, %v431_v29  ;;  %v720_v51 = vxor.u32 %v576_v20, %v432_v41  ;;  %v577_v61 = vshrl.u32 %v433_v42, 16  ;;  %v2302_v13 = vmul.f32 1.1111112, %v2014_v5  ;;  %v2017_v29 = vld [vmem:[%s3199_s8 + $0x460] sm:$0xff]  ;;  %v2019_v3 = vld [vmem:[%s3199_s8 + $0x470] sm:$0xff] }
 0x237   : > { %2732 = vst [vmem:[%s3292_s19 + $0x438] sm:$0xff] %v2588_v31  ;;  %vm1869_vm8 = vcmp.ge.s32.totalorder %v1725_v54, 1677722  ;;  %v1582_v58 = vxor.u32 %v1438_v57, %v1294_v34  ;;  %v578_v47 = vshrl.u32 %v434_v49, 16  ;;  %v579_v24 = vshrl.u32 %v435_v0, 16  ;;  %v2159_v54 = vld [vmem:[%s3207_s26 + $0x450] sm:$0xff] }
 0x238   : > { %v2445_v6 = vsel %vm1869_vm8, %v2301_v39, 0.0  ;;  %v863_v21 = vmul.u32 2146121005, %v719_v18  ;;  %v864_v35 = vmul.u32 2146121005, %v720_v51  ;;  %v721_v28 = vxor.u32 %v577_v61, %v433_v42  ;;  %v2160_v57 = vld [vmem:[%s3207_s26 + $0x458] sm:$0xff] }
 0x239   : > { %v2589_v46 = vadd.f32 %v2445_v6, %v2157_v10  ;;  %v1726_v7 = vshrl.u32 %v1582_v58, 8  ;;  %v722_v27 = vxor.u32 %v578_v47, %v434_v49  ;;  %v436_v8 = vadd.s32 %v292_v30, %v3237_v12  ;;  %v2016_v30 = vld [vmem:[%s3199_s8 + $0x458] sm:$0xff] }
 0x23a   : > { %v1007_v63 = vshrl.u32 %v863_v21, 15  ;;  %v1008_v59 = vshrl.u32 %v864_v35, 15  ;;  %v865_v23 = vmul.u32 2146121005, %v721_v28  ;;  %v723_v15 = vxor.u32 %v579_v24, %v435_v0  ;;  %v2162_v28 = vld [vmem:[%s3207_s26 + $0x468] sm:$0xff] }
 0x23b   : > { %2733 = vst [vmem:[%s3292_s19 + $0x440] sm:$0xff] %v2589_v46  ;;  %vm1870_vm9 = vcmp.ge.s32.totalorder %v1726_v7, 1677722  ;;  %v866_v36 = vmul.u32 2146121005, %v722_v27  ;;  %v580_v25 = vshrl.u32 %v436_v8, 16 }
 0x23c   : > { %v2446_v11 = vsel %vm1870_vm9, %v2302_v13, 0.0  ;;  %v1151_v45 = vxor.u32 %v1007_v63, %v863_v21  ;;  %v1152_v4 = vxor.u32 %v1008_v59, %v864_v35  ;;  %v1009_v16 = vshrl.u32 %v865_v23, 15  ;;  %v2161_v13 = vld [vmem:[%s3207_s26 + $0x460] sm:$0xff]  ;;  %v2163_v63 = vld [vmem:[%s3207_s26 + $0x470] sm:$0xff] }
 0x23d   : > { %v2590_v1 = vadd.f32 %v2446_v11, %v2158_v37  ;;  %v1010_v62 = vshrl.u32 %v866_v36, 15  ;;  %v867_v55 = vmul.u32 2146121005, %v723_v15  ;;  %v724_v52 = vxor.u32 %v580_v25, %v436_v8 }
 0x23e   : > { %v1295_v44 = vmul.u32 2221647499, %v1151_v45  ;;  %v1296_v19 = vmul.u32 2221647499, %v1152_v4  ;;  %v1153_v12 = vxor.u32 %v1009_v16, %v865_v23  ;;  %v2303_v33 = vmul.f32 1.1111112, %v2015_v38 }
 0x23f   : > { %2734 = vst [vmem:[%s3292_s19 + $0x448] sm:$0xff] %v2590_v1  ;;  %v1154_v14 = vxor.u32 %v1010_v62, %v866_v36  ;;  %v1011_v26 = vshrl.u32 %v867_v55, 15  ;;  %v868_v60 = vmul.u32 2146121005, %v724_v52  ;;  %v2304_v40 = vmul.f32 1.1111112, %v2016_v30 }
 0x240   : > { %v1439_v2 = vshrl.u32 %v1295_v44, 16  ;;  %v1440_v50 = vshrl.u32 %v1296_v19, 16  ;;  %v1297_v56 = vmul.u32 2221647499, %v1153_v12  ;;  %v2305_v31 = vmul.f32 1.1111112, %v2017_v29 }
 0x241   : > { %v1298_v41 = vmul.u32 2221647499, %v1154_v14  ;;  %v1155_v22 = vxor.u32 %v1011_v26, %v867_v55  ;;  %v1012_v39 = vshrl.u32 %v868_v60, 15  ;;  %v2306_v42 = vmul.f32 1.1111112, %v2018_v17  ;;  %v2020_v23 = vld [vmem:[%s3199_s8 + $0x478] sm:$0xff] }
 0x242   : > { %v1583_v43 = vxor.u32 %v1439_v2, %v1295_v44  ;;  %v1584_v9 = vxor.u32 %v1440_v50, %v1296_v19  ;;  %v1441_v48 = vshrl.u32 %v1297_v56, 16  ;;  %v2307_v18 = vmul.f32 1.1111112, %v2019_v3  ;;  %v2164_v16 = vld [vmem:[%s3207_s26 + $0x478] sm:$0xff] }
 0x243   : > { %v1442_v53 = vshrl.u32 %v1298_v41, 16  ;;  %v1299_v34 = vmul.u32 2221647499, %v1155_v22  ;;  %v1156_v51 = vxor.u32 %v1012_v39, %v868_v60  ;;  %v2308_v45 = vmul.f32 1.1111112, %v2020_v23 }
 0x244   : > { %v1727_v5 = vshrl.u32 %v1583_v43, 8  ;;  %v1728_v32 = vshrl.u32 %v1584_v9, 8  ;;  %v1585_v20 = vxor.u32 %v1441_v48, %v1297_v56 }
 0x245   : > { %v1586_v49 = vxor.u32 %v1442_v53, %v1298_v41  ;;  %v1443_v10 = vshrl.u32 %v1299_v34, 16  ;;  %v1300_v46 = vmul.u32 2221647499, %v1156_v51 }
 0x246   : > { %vm1871_vm10 = vcmp.ge.s32.totalorder %v1727_v5, 1677722  ;;  %vm1872_vm11 = vcmp.ge.s32.totalorder %v1728_v32, 1677722  ;;  %v1729_v61 = vshrl.u32 %v1585_v20, 8 }
 0x247   : > { %v2447_v0 = vsel %vm1871_vm10, %v2303_v33, 0.0  ;;  %v2448_v58 = vsel %vm1872_vm11, %v2304_v40, 0.0  ;;  %v1730_v47 = vshrl.u32 %v1586_v49, 8  ;;  %v1587_v6 = vxor.u32 %v1443_v10, %v1299_v34 }
 0x248   : > { %v2591_v21 = vadd.f32 %v2447_v0, %v2159_v54  ;;  %v2592_v35 = vadd.f32 %v2448_v58, %v2160_v57  ;;  %vm1873_vm12 = vcmp.ge.s32.totalorder %v1729_v61, 1677722  ;;  %v1444_v59 = vshrl.u32 %v1300_v46, 16 }
 0x249   : > { %v2449_v7 = vsel %vm1873_vm12, %v2305_v31, 0.0  ;;  %vm1874_vm13 = vcmp.ge.s32.totalorder %v1730_v47, 1677722  ;;  %v1731_v27 = vshrl.u32 %v1587_v6, 8 }
 0x24a   : > { %2735 = vst [vmem:[%s3292_s19 + $0x450] sm:$0xff] %v2591_v21  ;;  %v2593_v24 = vadd.f32 %v2449_v7, %v2161_v13  ;;  %v2450_v37 = vsel %vm1874_vm13, %v2306_v42, 0.0  ;;  %v1588_v15 = vxor.u32 %v1444_v59, %v1300_v46 }
 0x24b   : > { %2736 = vst [vmem:[%s3292_s19 + $0x458] sm:$0xff] %v2592_v35  ;;  %v2594_v8 = vadd.f32 %v2450_v37, %v2162_v28  ;;  %vm1875_vm14 = vcmp.ge.s32.totalorder %v1731_v27, 1677722 }
 0x24c   : > { %2737 = vst [vmem:[%s3292_s19 + $0x460] sm:$0xff] %v2593_v24  ;;  %v2451_v36 = vsel %vm1875_vm14, %v2307_v18, 0.0  ;;  %v1732_v4 = vshrl.u32 %v1588_v15, 8 }
 0x24d   : > { %2738 = vst [vmem:[%s3292_s19 + $0x468] sm:$0xff] %v2594_v8  ;;  %v2595_v11 = vadd.f32 %v2451_v36, %v2163_v63 }
 0x24e   : > { %vm1876_vm15 = vcmp.ge.s32.totalorder %v1732_v4, 1677722 }
 0x24f   : > { %2739 = vst [vmem:[%s3292_s19 + $0x470] sm:$0xff] %v2595_v11  ;;  %v2452_v1 = vsel %vm1876_vm15, %v2308_v45, 0.0 }
 0x250   : > { %v2596_v62 = vadd.f32 %v2452_v1, %v2164_v16 }
 0x252   : > { %2740 = vst [vmem:[%s3292_s19 + $0x478] sm:$0xff] %v2596_v62 }
 0x253   : > { %3014 = shalt.err (!%p3011_p7)
}
 0x254   : > { %s3061_s22 = smov 768   ;;  %s3062_s8 = smov 48  }
 0x255   : > { %2873 = dma.vmem_to_hbm [thread:$0]  (%p3124_p11), %s2756_s16, 18432, %s2758_s17, %s2742_s30, %s3061_s22, %s3061_s22, %s3062_s8  }
 0x256 PF: > { %s2772_s25 = sand.u32 1, %s3045_s9   ;;  %p2883_p0 = pnand %p2856_p9, %p3128_p12 }
 0x257   : > { %s2773_s26 = scalar_lea.sflag [#allocation4], %s2772_s25 }
 0x258   : > { %p2884_p8 = pneg %p2883_p0 }
 0x25a   : > { %3040 = dma.done.wait (%p2884_p8), %s2773_s26, 18432  }
 0x25b   : > { %3042 = vsyncadd (%p2884_p8), %s2773_s26, 4294948864  ;;  %p18_p10 = scmp.ge.s32.totalorder %s3103_s15, 4   ;;  %s4402_s9 = smov %s3049_s10 }
 0x25c   : > { %s4403_s10 = smov %s3053_s11  ;;  %s4404_s11 = smov %s3115_s18 }
 0x25d   : > { %s4405_s12 = smov %s3103_s15  ;;  %20 = sbr.rel (!%p18_p10) target bundleno = 7 (0x7), region = 86 }
 0x262   :  { %2779 = vsyncpa [#allocation3], 1 }
 0x263   :  { %2781 = vsyncpa [#allocation3 + $0x1], 1 }
 0x264   :  { %2782 = vsyncpa [#allocation6], 1 }
 0x265   :  { %2784 = vsyncpa [#allocation6 + $0x1], 1 }
 0x266   :  { %2785 = vsyncpa [#allocation4], 1 }
 0x267   :  { %2787 = vsyncpa [#allocation4 + $0x1], 1 }

</bundles_post_ra>
